<compile_context>
chip_gen: v5e
topology: v5e:2x2
jax: 0.10.0
libtpu: 0.0.40
codegen_flags: <defaults>
</compile_context>

<pallas_src>
import math

import jax
import jax.numpy as jnp
from jax import lax
from jax.experimental import pallas as pl
from jax.experimental.pallas import tpu as pltpu

LANE = 128


def _round_up(x, m):
    return (x + m - 1) // m * m


def _pad_to(a, shape):
    cfg = [(0, t - s) for s, t in zip(a.shape, shape)]
    if all(lo == 0 and hi == 0 for lo, hi in cfg):
        return a
    return jnp.pad(a, cfg)


def _bn_relu(x, scale, shift):
    # folded inference BatchNorm + ReLU (f32), per-channel affine broadcast
    return jnp.maximum(x * scale + shift, 0.0)


# ------------------------------ Pallas kernels -------------------------------

def _block_down_kernel(xee_ref, xeo_ref, xoe_ref, xoo_ref,
                       s1_ref, b1_ref, w1_ref, s2_ref, b2_ref, w2_ref, wsc_ref,
                       o_ref, pee, peo, poe, pad2):
    """Fused BasicBlock with stride=2 conv1 and a 1x1-conv shortcut.

    Inputs are the 4 stride-2 spatial phase planes of the raw NHWC input (all
    (1, Ho, Wo, Cin)); BN1+ReLU is applied in-kernel (it commutes with the
    phase split).  The three planes that need a zero halo are written into
    zero-initialised VMEM scratches whose interiors start at sublane offset 8
    (aligned stores); every conv tap is then a contiguous slice.
    """
    ho, wo, cin = xoo_ref.shape[1], xoo_ref.shape[2], xoo_ref.shape[3]
    cout = o_ref.shape[3]
    s1, b1 = s1_ref[...], b1_ref[...]

    # BN1 + ReLU on the phase planes; pad with zeros via the scratch halo.
    pee[...] = jnp.zeros(pee.shape, pee.dtype)
    peo[...] = jnp.zeros(peo.shape, peo.dtype)
    poe[...] = jnp.zeros(poe.shape, poe.dtype)
    pee[1:1 + ho, 8:8 + wo, :] = _bn_relu(xee_ref[0], s1, b1)
    peo[1:1 + ho, 0:wo, :] = _bn_relu(xeo_ref[0], s1, b1)
    poe[0:ho, 8:8 + wo, :] = _bn_relu(xoe_ref[0], s1, b1)
    a_oo = _bn_relu(xoo_ref[0], s1, b1)                       # (ho, wo, cin)

    def tap(kh, kw):
        # padded act1 sampled at rows 2i+kh, cols 2j+kw, as a contiguous slice
        ro, co = kh // 2, kw // 2
        if kh % 2 == 0 and kw % 2 == 0:
            a = pee[ro:ro + ho, 7 + co:7 + co + wo, :]
        elif kh % 2 == 0:
            a = peo[ro:ro + ho, 0:wo, :]
        elif kw % 2 == 0:
            a = poe[0:ho, 7 + co:7 + co + wo, :]
        else:
            a = a_oo
        return a.reshape(ho * wo, cin).astype(jnp.bfloat16)

    # conv1 (3x3, stride 2): 9 accumulating bf16 MXU matmuls, f32 accumulator.
    acc1 = jnp.zeros((ho * wo, cout), jnp.float32)
    for kh in range(3):
        for kw in range(3):
            acc1 += jnp.dot(tap(kh, kw), w1_ref[kh * 3 + kw],
                            preferred_element_type=jnp.float32)

    # shortcut 1x1 conv, stride 2, on act1 (== even-row/even-col phase), fused here
    res = jnp.dot(a_oo.reshape(ho * wo, cin).astype(jnp.bfloat16), wsc_ref[...],
                  preferred_element_type=jnp.float32)

    # BN2 + ReLU fused into the epilogue of conv1, then conv2 (3x3, stride 1).
    act2 = _bn_relu(acc1, s2_ref[...], b2_ref[...])
    pad2[...] = jnp.zeros(pad2.shape, pad2.dtype)
    pad2[1:1 + ho, 8:8 + wo, :] = act2.reshape(ho, wo, cout)

    out = res
    for kh in range(3):
        for kw in range(3):
            a = pad2[kh:kh + ho, 7 + kw:7 + kw + wo, :].reshape(ho * wo, cout)
            out += jnp.dot(a.astype(jnp.bfloat16), w2_ref[kh * 3 + kw],
                           preferred_element_type=jnp.float32)

    o_ref[0] = out.reshape(ho, wo, cout).astype(o_ref.dtype)


def _make_block_s1_kernel(has_shortcut):
    """Fused BasicBlock with stride=1 convs (identity or 1x1-conv shortcut)."""

    def kernel(x_ref, s1_ref, b1_ref, w1_ref, s2_ref, b2_ref, w2_ref, *rest):
        if has_shortcut:
            wsc_ref, o_ref, pad1, pad2 = rest
        else:
            o_ref, pad1, pad2 = rest
        h, w, cin = x_ref.shape[1], x_ref.shape[2], x_ref.shape[3]
        cout = o_ref.shape[3]

        x = x_ref[0]                                          # (h, w, cin) f32
        act1 = _bn_relu(x, s1_ref[...], b1_ref[...])

        # zero-padded act1 in VMEM (interior at sublane offset 8 -> aligned store)
        pad1[...] = jnp.zeros(pad1.shape, pad1.dtype)
        pad1[1:1 + h, 8:8 + w, :] = act1

        acc1 = jnp.zeros((h * w, cout), jnp.float32)
        for kh in range(3):
            for kw in range(3):
                a = pad1[kh:kh + h, 7 + kw:7 + kw + w, :].reshape(h * w, cin)
                acc1 += jnp.dot(a.astype(jnp.bfloat16), w1_ref[kh * 3 + kw],
                                preferred_element_type=jnp.float32)

        if has_shortcut:
            res = jnp.dot(act1.reshape(h * w, cin).astype(jnp.bfloat16),
                          wsc_ref[...], preferred_element_type=jnp.float32)
        else:
            res = x.reshape(h * w, cout)                      # identity residual

        # TODO(synk): F.dropout for dropRate>0 not implemented (dropRate=0.0 here).
        act2 = _bn_relu(acc1, s2_ref[...], b2_ref[...])
        pad2[...] = jnp.zeros(pad2.shape, pad2.dtype)
        pad2[1:1 + h, 8:8 + w, :] = act2.reshape(h, w, cout)

        out = res
        for kh in range(3):
            for kw in range(3):
                a = pad2[kh:kh + h, 7 + kw:7 + kw + w, :].reshape(h * w, cout)
                out += jnp.dot(a.astype(jnp.bfloat16), w2_ref[kh * 3 + kw],
                               preferred_element_type=jnp.float32)

        o_ref[0] = out.reshape(h, w, cout).astype(o_ref.dtype)

    return kernel


# --------------------------------- wrappers ----------------------------------

def _basic_block(x, q, stride, equal_in_out):
    """x: (N, H, W, Cin_p) f32, channel-padded NHWC.  Returns (N, Ho, Wo, Cout_p)."""
    n, h, w, cin_p = x.shape
    cout_p = q["w1"].shape[-1]

    params = (q["bn1_scale"], q["bn1_shift"], q["w1"],
              q["bn2_scale"], q["bn2_shift"], q["w2"])
    param_specs = [
        pl.BlockSpec((1, cin_p), lambda b: (0, 0)),
        pl.BlockSpec((1, cin_p), lambda b: (0, 0)),
        pl.BlockSpec((9, cin_p, cout_p), lambda b: (0, 0, 0)),
        pl.BlockSpec((1, cout_p), lambda b: (0, 0)),
        pl.BlockSpec((1, cout_p), lambda b: (0, 0)),
        pl.BlockSpec((9, cout_p, cout_p), lambda b: (0, 0, 0)),
    ]
    wsc_spec = pl.BlockSpec((cin_p, cout_p), lambda b: (0, 0))
    cparams = pltpu.CompilerParams(dimension_semantics=("parallel",))

    if stride == 2:
        # same implicit assumption as the PyTorch module: downsampling block
        # always has a conv shortcut (in_planes != out_planes).
        assert not equal_in_out and h % 2 == 0 and w % 2 == 0
        ho, wo = h // 2, w // 2
        # stride-2 spatial phase planes of the raw input (cheap XLA slices);
        # BN1+ReLU is applied in-kernel, so no activation round-trips HBM.
        x_ee = x[:, 1::2, 1::2, :]
        x_eo = x[:, 1::2, 0::2, :]
        x_oe = x[:, 0::2, 1::2, :]
        x_oo = x[:, 0::2, 0::2, :]
        phase_spec = pl.BlockSpec((1, ho, wo, cin_p), lambda b: (b, 0, 0, 0))
        return pl.pallas_call(
            _block_down_kernel,
            out_shape=jax.ShapeDtypeStruct((n, ho, wo, cout_p), jnp.float32),
            grid=(n,),
            in_specs=[phase_spec] * 4 + param_specs + [wsc_spec],
            out_specs=pl.BlockSpec((1, ho, wo, cout_p), lambda b: (b, 0, 0, 0)),
            scratch_shapes=[
                pltpu.VMEM((ho + 1, wo + 8, cin_p), jnp.float32),    # E-row/E-col
                pltpu.VMEM((ho + 1, wo, cin_p), jnp.float32),        # E-row/O-col
                pltpu.VMEM((ho, wo + 8, cin_p), jnp.float32),        # O-row/E-col
                pltpu.VMEM((ho + 2, wo + 16, cout_p), jnp.float32),  # padded act2
            ],
            compiler_params=cparams,
        )(x_ee, x_eo, x_oe, x_oo, *params, q["wsc"])

    assert stride == 1
    inputs = (x,) + params
    in_specs = [pl.BlockSpec((1, h, w, cin_p), lambda b: (b, 0, 0, 0))] + param_specs
    if not equal_in_out:
        inputs = inputs + (q["wsc"],)
        in_specs = in_specs + [wsc_spec]
    return pl.pallas_call(
        _make_block_s1_kernel(has_shortcut=not equal_in_out),
        out_shape=jax.ShapeDtypeStruct((n, h, w, cout_p), jnp.float32),
        grid=(n,),
        in_specs=in_specs,
        out_specs=pl.BlockSpec((1, h, w, cout_p), lambda b: (b, 0, 0, 0)),
        scratch_shapes=[
            pltpu.VMEM((h + 2, w + 16, cin_p), jnp.float32),   # padded act1
            pltpu.VMEM((h + 2, w + 16, cout_p), jnp.float32),  # padded act2
        ],
        compiler_params=cparams,
    )(*inputs)


def network_block_forward(x_nchw, prepared_params, stride, out_planes):
    n, c, h, w = x_nchw.shape
    cin_p = prepared_params[0]["w1"].shape[1]
    x = jnp.transpose(x_nchw, (0, 2, 3, 1))        # NCHW -> NHWC
    x = _pad_to(x, (n, h, w, cin_p))               # lane-dense channels
    for i, q in enumerate(prepared_params):
        s = stride if i == 0 else 1
        x = _basic_block(x, q, s, equal_in_out=("wsc" not in q))
    x = x[:, :, :, :out_planes]                    # drop channel padding
    return jnp.transpose(x, (0, 3, 1, 2))          # NHWC -> NCHW


# --------------------- deterministic parameter init --------------------------

def make_block_params(key, in_planes, out_planes):
    ks = jax.random.split(key, 5)
    eps = 1e-5

    def bn_params(kk, c):
        k1, k2, k3, k4 = jax.random.split(kk, 4)
        gamma = 1.0 + 0.1 * jax.random.normal(k1, (c,), jnp.float32)
        beta = 0.1 * jax.random.normal(k2, (c,), jnp.float32)
        mean = 0.05 * jax.random.normal(k3, (c,), jnp.float32)
        var = 1.0 + 0.1 * jax.random.uniform(k4, (c,), jnp.float32)
        scale = gamma * lax.rsqrt(var + eps)
        shift = beta - mean * scale
        return scale.reshape(1, c), shift.reshape(1, c)

    std = math.sqrt(2.0 / (9 * out_planes))  # WRN kaiming init
    p = {}
    p["bn1_scale"], p["bn1_shift"] = bn_params(ks[0], in_planes)
    p["conv1_w"] = std * jax.random.normal(ks[1], (out_planes, in_planes, 3, 3), jnp.float32)
    p["bn2_scale"], p["bn2_shift"] = bn_params(ks[2], out_planes)
    p["conv2_w"] = std * jax.random.normal(ks[3], (out_planes, out_planes, 3, 3), jnp.float32)
    if in_planes != out_planes:
        p["sc_w"] = math.sqrt(2.0 / out_planes) * jax.random.normal(
            ks[4], (out_planes, in_planes, 1, 1), jnp.float32)
    return p


def prepare_block_params(p, cin_p, cout_p):
    """Channel-pad to lane-dense (multiple-of-128) widths, reshape conv weights
    into per-tap (Cin_p, Cout_p) matrices (kh*3+kw major), cast MXU operands to
    bf16 (accumulation stays f32 in-kernel)."""
    def w3x3(w_oihw, kip):
        cout, cin = w_oihw.shape[0], w_oihw.shape[1]
        w = jnp.transpose(w_oihw, (2, 3, 1, 0)).reshape(9, cin, cout)
        return _pad_to(w, (9, kip, cout_p)).astype(jnp.bfloat16)

    q = {
        "bn1_scale": _pad_to(p["bn1_scale"], (1, cin_p)),
        "bn1_shift": _pad_to(p["bn1_shift"], (1, cin_p)),
        "w1": w3x3(p["conv1_w"], cin_p),
        "bn2_scale": _pad_to(p["bn2_scale"], (1, cout_p)),
        "bn2_shift": _pad_to(p["bn2_shift"], (1, cout_p)),
        "w2": w3x3(p["conv2_w"], cout_p),
    }
    if "sc_w" in p:
        wsc = jnp.transpose(p["sc_w"][:, :, 0, 0], (1, 0))   # (cin, cout)
        q["wsc"] = _pad_to(wsc, (cin_p, cout_p)).astype(jnp.bfloat16)
    return q


# ------------------------------ pure-JAX reference ---------------------------

def ref_block(x_nhwc, p, stride, equal_in_out):
    def bn_relu_ref(x, scale, shift):
        return jnp.maximum(x * scale.reshape(1, 1, 1, -1) + shift.reshape(1, 1, 1, -1), 0.0)

    def conv(x, w_oihw, s, pad):
        w = jnp.transpose(w_oihw, (2, 3, 1, 0))  # HWIO
        return lax.conv_general_dilated(x, w, (s, s), [(pad, pad), (pad, pad)],
                                        dimension_numbers=("NHWC", "HWIO", "NHWC"))

    act1 = bn_relu_ref(x_nhwc, p["bn1_scale"], p["bn1_shift"])
    h1 = conv(act1, p["conv1_w"], stride, 1)
    act2 = bn_relu_ref(h1, p["bn2_scale"], p["bn2_shift"])
    out = conv(act2, p["conv2_w"], 1, 1)
    res = x_nhwc if equal_in_out else conv(act1, p["sc_w"], stride, 0)
    return res + out


def ref_network_block(x_nchw, layer_params, stride):
    x = jnp.transpose(x_nchw, (0, 2, 3, 1))
    for i, p in enumerate(layer_params):
        s = stride if i == 0 else 1
        x = ref_block(x, p, s, equal_in_out=("sc_w" not in p))
    return jnp.transpose(x, (0, 3, 1, 2))


# ------------------------------------ main ------------------------------------

if __name__ == "__main__":
    nb_layers, in_planes, out_planes, stride = 2, 4, 8, 2

    key = jax.random.PRNGKey(0)
    kx, kp = jax.random.split(key)
    x = jax.random.normal(kx, (2, in_planes, 16, 16), jnp.float32)  # NCHW, like PyTorch

    layer_params = []
    for i, bk in enumerate(jax.random.split(kp, nb_layers)):
        ip = in_planes if i == 0 else out_planes
        layer_params.append(make_block_params(bk, ip, out_planes))

    cin_p = _round_up(in_planes, LANE)
    cout_p = _round_up(out_planes, LANE)
    prepared = []
    for i, p in enumerate(layer_params):
        prepared.append(prepare_block_params(p, cin_p if i == 0 else cout_p, cout_p))

    fwd = jax.jit(lambda xx, ps: network_block_forward(xx, ps, stride, out_planes))
    out = jax.block_until_ready(fwd(x, prepared))
    assert out.shape == (2, out_planes, 8, 8), out.shape

    ref = jax.block_until_ready(ref_network_block(x, layer_params, stride))
    # bf16 matmul operands (f32 accumulation) vs the all-f32 reference -> loosened tol
    assert jnp.allclose(out, ref, atol=2e-2, rtol=2e-2), float(jnp.max(jnp.abs(out - ref)))

    print("KERNEL_OK")
</pallas_src>

<mosaic_0001>
module attributes {stable_mosaic.version = 11 : i64} {
  func.func @kernel(%arg0: i32, %arg1: memref<1x8x8x128xf32, #tpu.memory_space<vmem>>, %arg2: memref<1x128xf32, #tpu.memory_space<vmem>>, %arg3: memref<1x128xf32, #tpu.memory_space<vmem>>, %arg4: memref<9x128x128xbf16, #tpu.memory_space<vmem>>, %arg5: memref<1x128xf32, #tpu.memory_space<vmem>>, %arg6: memref<1x128xf32, #tpu.memory_space<vmem>>, %arg7: memref<9x128x128xbf16, #tpu.memory_space<vmem>>, %arg8: memref<1x8x8x128xf32, #tpu.memory_space<vmem>>, %arg9: memref<10x24x128xf32, #tpu.memory_space<vmem>>, %arg10: memref<10x24x128xf32, #tpu.memory_space<vmem>>) attributes {dimension_semantics = [#tpu.dimension_semantics<parallel>], iteration_bounds = array<i64: 2>, scalar_prefetch = 0 : i64, scratch_operands = 2 : i64, tpu.core_type = #tpu.core_type<tc>, window_params = [{transform_indices = @transform_0, window_bounds = array<i64: 1, 8, 8, 128>}, {pipeline_mode = #tpu.pipeline_mode<synchronous>, transform_indices = @transform_1, window_bounds = array<i64: 1, 128>}, {pipeline_mode = #tpu.pipeline_mode<synchronous>, transform_indices = @transform_2, window_bounds = array<i64: 1, 128>}, {pipeline_mode = #tpu.pipeline_mode<synchronous>, transform_indices = @transform_3, window_bounds = array<i64: 9, 128, 128>}, {pipeline_mode = #tpu.pipeline_mode<synchronous>, transform_indices = @transform_4, window_bounds = array<i64: 1, 128>}, {pipeline_mode = #tpu.pipeline_mode<synchronous>, transform_indices = @transform_5, window_bounds = array<i64: 1, 128>}, {pipeline_mode = #tpu.pipeline_mode<synchronous>, transform_indices = @transform_6, window_bounds = array<i64: 9, 128, 128>}, {transform_indices = @transform_7, window_bounds = array<i64: 1, 8, 8, 128>}]} {
    %c0 = arith.constant 0 : index
    %c0_0 = arith.constant 0 : index
    %c0_1 = arith.constant 0 : index
    %c0_2 = arith.constant 0 : index
    %0 = vector.load %arg1[%c0, %c0_0, %c0_1, %c0_2] : memref<1x8x8x128xf32, #tpu.memory_space<vmem>>, vector<1x8x8x128xf32>
    %1 = vector.shape_cast %0 : vector<1x8x8x128xf32> to vector<8x8x128xf32>
    %c0_3 = arith.constant 0 : index
    %c0_4 = arith.constant 0 : index
    %2 = vector.load %arg2[%c0_3, %c0_4] : memref<1x128xf32, #tpu.memory_space<vmem>>, vector<1x128xf32>
    %c0_5 = arith.constant 0 : index
    %c0_6 = arith.constant 0 : index
    %3 = vector.load %arg3[%c0_5, %c0_6] : memref<1x128xf32, #tpu.memory_space<vmem>>, vector<1x128xf32>
    %4 = vector.shape_cast %2 : vector<1x128xf32> to vector<1x1x128xf32>
    %5 = vector.broadcast %4 : vector<1x1x128xf32> to vector<8x8x128xf32>
    %6 = arith.mulf %1, %5 : vector<8x8x128xf32>
    %7 = vector.shape_cast %3 : vector<1x128xf32> to vector<1x1x128xf32>
    %8 = vector.broadcast %7 : vector<1x1x128xf32> to vector<8x8x128xf32>
    %9 = arith.addf %6, %8 : vector<8x8x128xf32>
    %cst = arith.constant 0.000000e+00 : f32
    %10 = vector.broadcast %cst : f32 to vector<8x8x128xf32>
    %11 = arith.maximumf %9, %10 : vector<8x8x128xf32>
    %cst_7 = arith.constant 0.000000e+00 : f32
    %12 = vector.broadcast %cst_7 : f32 to vector<10x24x128xf32>
    %c0_8 = arith.constant 0 : index
    %c0_9 = arith.constant 0 : index
    %c0_10 = arith.constant 0 : index
    %13 = vector.load %arg9[%c0_8, %c0_9, %c0_10] : memref<10x24x128xf32, #tpu.memory_space<vmem>>, vector<10x24x128xf32>
    tpu.vector_store %arg9[%c0_8, %c0_9, %c0_10], %12 {strides = array<i32>} : memref<10x24x128xf32, #tpu.memory_space<vmem>>, vector<10x24x128xf32>,
    %c1 = arith.constant 1 : index
    %c8 = arith.constant 8 : index
    %c0_11 = arith.constant 0 : index
    %14 = vector.load %arg9[%c1, %c8, %c0_11] : memref<10x24x128xf32, #tpu.memory_space<vmem>>, vector<8x8x128xf32>
    tpu.vector_store %arg9[%c1, %c8, %c0_11], %11 {strides = array<i32>} : memref<10x24x128xf32, #tpu.memory_space<vmem>>, vector<8x8x128xf32>,
    %cst_12 = arith.constant 0.000000e+00 : f32
    %15 = vector.broadcast %cst_12 : f32 to vector<64x128xf32>
    %c0_13 = arith.constant 0 : index
    %c7 = arith.constant 7 : index
    %c0_14 = arith.constant 0 : index
    %16 = vector.load %arg9[%c0_13, %c7, %c0_14] : memref<10x24x128xf32, #tpu.memory_space<vmem>>, vector<8x8x128xf32>
    %17 = vector.shape_cast %16 : vector<8x8x128xf32> to vector<64x128xf32>
    %18 = arith.truncf %17 : vector<64x128xf32> to vector<64x128xbf16>
    %c0_15 = arith.constant 0 : index
    %c0_16 = arith.constant 0 : index
    %c0_17 = arith.constant 0 : index
    %19 = vector.load %arg4[%c0_15, %c0_16, %c0_17] : memref<9x128x128xbf16, #tpu.memory_space<vmem>>, vector<1x128x128xbf16>
    %20 = vector.shape_cast %19 : vector<1x128x128xbf16> to vector<128x128xbf16>
    %cst_18 = arith.constant dense<0.000000e+00> : vector<64x128xf32>
    %21 = tpu.matmul %18, %20, %cst_18 {dimension_numbers = #tpu.dot_dimension_numbers<[1], [0], [0], [1], [0, 0, 1, 1], [], []>} : vector<64x128xbf16>, vector<128x128xbf16>, vector<64x128xf32> -> vector<64x128xf32>
    %22 = arith.addf %15, %21 : vector<64x128xf32>
    %c0_19 = arith.constant 0 : index
    %c8_20 = arith.constant 8 : index
    %c0_21 = arith.constant 0 : index
    %23 = vector.load %arg9[%c0_19, %c8_20, %c0_21] : memref<10x24x128xf32, #tpu.memory_space<vmem>>, vector<8x8x128xf32>
    %24 = vector.shape_cast %23 : vector<8x8x128xf32> to vector<64x128xf32>
    %25 = arith.truncf %24 : vector<64x128xf32> to vector<64x128xbf16>
    %c1_22 = arith.constant 1 : index
    %c0_23 = arith.constant 0 : index
    %c0_24 = arith.constant 0 : index
    %26 = vector.load %arg4[%c1_22, %c0_23, %c0_24] : memref<9x128x128xbf16, #tpu.memory_space<vmem>>, vector<1x128x128xbf16>
    %27 = vector.shape_cast %26 : vector<1x128x128xbf16> to vector<128x128xbf16>
    %cst_25 = arith.constant dense<0.000000e+00> : vector<64x128xf32>
    %28 = tpu.matmul %25, %27, %cst_25 {dimension_numbers = #tpu.dot_dimension_numbers<[1], [0], [0], [1], [0, 0, 1, 1], [], []>} : vector<64x128xbf16>, vector<128x128xbf16>, vector<64x128xf32> -> vector<64x128xf32>
    %29 = arith.addf %22, %28 : vector<64x128xf32>
    %c0_26 = arith.constant 0 : index
    %c9 = arith.constant 9 : index
    %c0_27 = arith.constant 0 : index
    %30 = vector.load %arg9[%c0_26, %c9, %c0_27] : memref<10x24x128xf32, #tpu.memory_space<vmem>>, vector<8x8x128xf32>
    %31 = vector.shape_cast %30 : vector<8x8x128xf32> to vector<64x128xf32>
    %32 = arith.truncf %31 : vector<64x128xf32> to vector<64x128xbf16>
    %c2 = arith.constant 2 : index
    %c0_28 = arith.constant 0 : index
    %c0_29 = arith.constant 0 : index
    %33 = vector.load %arg4[%c2, %c0_28, %c0_29] : memref<9x128x128xbf16, #tpu.memory_space<vmem>>, vector<1x128x128xbf16>
    %34 = vector.shape_cast %33 : vector<1x128x128xbf16> to vector<128x128xbf16>
    %cst_30 = arith.constant dense<0.000000e+00> : vector<64x128xf32>
    %35 = tpu.matmul %32, %34, %cst_30 {dimension_numbers = #tpu.dot_dimension_numbers<[1], [0], [0], [1], [0, 0, 1, 1], [], []>} : vector<64x128xbf16>, vector<128x128xbf16>, vector<64x128xf32> -> vector<64x128xf32>
    %36 = arith.addf %29, %35 : vector<64x128xf32>
    %c1_31 = arith.constant 1 : index
    %c7_32 = arith.constant 7 : index
    %c0_33 = arith.constant 0 : index
    %37 = vector.load %arg9[%c1_31, %c7_32, %c0_33] : memref<10x24x128xf32, #tpu.memory_space<vmem>>, vector<8x8x128xf32>
    %38 = vector.shape_cast %37 : vector<8x8x128xf32> to vector<64x128xf32>
    %39 = arith.truncf %38 : vector<64x128xf32> to vector<64x128xbf16>
    %c3 = arith.constant 3 : index
    %c0_34 = arith.constant 0 : index
    %c0_35 = arith.constant 0 : index
    %40 = vector.load %arg4[%c3, %c0_34, %c0_35] : memref<9x128x128xbf16, #tpu.memory_space<vmem>>, vector<1x128x128xbf16>
    %41 = vector.shape_cast %40 : vector<1x128x128xbf16> to vector<128x128xbf16>
    %cst_36 = arith.constant dense<0.000000e+00> : vector<64x128xf32>
    %42 = tpu.matmul %39, %41, %cst_36 {dimension_numbers = #tpu.dot_dimension_numbers<[1], [0], [0], [1], [0, 0, 1, 1], [], []>} : vector<64x128xbf16>, vector<128x128xbf16>, vector<64x128xf32> -> vector<64x128xf32>
    %43 = arith.addf %36, %42 : vector<64x128xf32>
    %c1_37 = arith.constant 1 : index
    %c8_38 = arith.constant 8 : index
    %c0_39 = arith.constant 0 : index
    %44 = vector.load %arg9[%c1_37, %c8_38, %c0_39] : memref<10x24x128xf32, #tpu.memory_space<vmem>>, vector<8x8x128xf32>
    %45 = vector.shape_cast %44 : vector<8x8x128xf32> to vector<64x128xf32>
    %46 = arith.truncf %45 : vector<64x128xf32> to vector<64x128xbf16>
    %c4 = arith.constant 4 : index
    %c0_40 = arith.constant 0 : index
    %c0_41 = arith.constant 0 : index
    %47 = vector.load %arg4[%c4, %c0_40, %c0_41] : memref<9x128x128xbf16, #tpu.memory_space<vmem>>, vector<1x128x128xbf16>
    %48 = vector.shape_cast %47 : vector<1x128x128xbf16> to vector<128x128xbf16>
    %cst_42 = arith.constant dense<0.000000e+00> : vector<64x128xf32>
    %49 = tpu.matmul %46, %48, %cst_42 {dimension_numbers = #tpu.dot_dimension_numbers<[1], [0], [0], [1], [0, 0, 1, 1], [], []>} : vector<64x128xbf16>, vector<128x128xbf16>, vector<64x128xf32> -> vector<64x128xf32>
    %50 = arith.addf %43, %49 : vector<64x128xf32>
    %c1_43 = arith.constant 1 : index
    %c9_44 = arith.constant 9 : index
    %c0_45 = arith.constant 0 : index
    %51 = vector.load %arg9[%c1_43, %c9_44, %c0_45] : memref<10x24x128xf32, #tpu.memory_space<vmem>>, vector<8x8x128xf32>
    %52 = vector.shape_cast %51 : vector<8x8x128xf32> to vector<64x128xf32>
    %53 = arith.truncf %52 : vector<64x128xf32> to vector<64x128xbf16>
    %c5 = arith.constant 5 : index
    %c0_46 = arith.constant 0 : index
    %c0_47 = arith.constant 0 : index
    %54 = vector.load %arg4[%c5, %c0_46, %c0_47] : memref<9x128x128xbf16, #tpu.memory_space<vmem>>, vector<1x128x128xbf16>
    %55 = vector.shape_cast %54 : vector<1x128x128xbf16> to vector<128x128xbf16>
    %cst_48 = arith.constant dense<0.000000e+00> : vector<64x128xf32>
    %56 = tpu.matmul %53, %55, %cst_48 {dimension_numbers = #tpu.dot_dimension_numbers<[1], [0], [0], [1], [0, 0, 1, 1], [], []>} : vector<64x128xbf16>, vector<128x128xbf16>, vector<64x128xf32> -> vector<64x128xf32>
    %57 = arith.addf %50, %56 : vector<64x128xf32>
    %c2_49 = arith.constant 2 : index
    %c7_50 = arith.constant 7 : index
    %c0_51 = arith.constant 0 : index
    %58 = vector.load %arg9[%c2_49, %c7_50, %c0_51] : memref<10x24x128xf32, #tpu.memory_space<vmem>>, vector<8x8x128xf32>
    %59 = vector.shape_cast %58 : vector<8x8x128xf32> to vector<64x128xf32>
    %60 = arith.truncf %59 : vector<64x128xf32> to vector<64x128xbf16>
    %c6 = arith.constant 6 : index
    %c0_52 = arith.constant 0 : index
    %c0_53 = arith.constant 0 : index
    %61 = vector.load %arg4[%c6, %c0_52, %c0_53] : memref<9x128x128xbf16, #tpu.memory_space<vmem>>, vector<1x128x128xbf16>
    %62 = vector.shape_cast %61 : vector<1x128x128xbf16> to vector<128x128xbf16>
    %cst_54 = arith.constant dense<0.000000e+00> : vector<64x128xf32>
    %63 = tpu.matmul %60, %62, %cst_54 {dimension_numbers = #tpu.dot_dimension_numbers<[1], [0], [0], [1], [0, 0, 1, 1], [], []>} : vector<64x128xbf16>, vector<128x128xbf16>, vector<64x128xf32> -> vector<64x128xf32>
    %64 = arith.addf %57, %63 : vector<64x128xf32>
    %c2_55 = arith.constant 2 : index
    %c8_56 = arith.constant 8 : index
    %c0_57 = arith.constant 0 : index
    %65 = vector.load %arg9[%c2_55, %c8_56, %c0_57] : memref<10x24x128xf32, #tpu.memory_space<vmem>>, vector<8x8x128xf32>
    %66 = vector.shape_cast %65 : vector<8x8x128xf32> to vector<64x128xf32>
    %67 = arith.truncf %66 : vector<64x128xf32> to vector<64x128xbf16>
    %c7_58 = arith.constant 7 : index
    %c0_59 = arith.constant 0 : index
    %c0_60 = arith.constant 0 : index
    %68 = vector.load %arg4[%c7_58, %c0_59, %c0_60] : memref<9x128x128xbf16, #tpu.memory_space<vmem>>, vector<1x128x128xbf16>
    %69 = vector.shape_cast %68 : vector<1x128x128xbf16> to vector<128x128xbf16>
    %cst_61 = arith.constant dense<0.000000e+00> : vector<64x128xf32>
    %70 = tpu.matmul %67, %69, %cst_61 {dimension_numbers = #tpu.dot_dimension_numbers<[1], [0], [0], [1], [0, 0, 1, 1], [], []>} : vector<64x128xbf16>, vector<128x128xbf16>, vector<64x128xf32> -> vector<64x128xf32>
    %71 = arith.addf %64, %70 : vector<64x128xf32>
    %c2_62 = arith.constant 2 : index
    %c9_63 = arith.constant 9 : index
    %c0_64 = arith.constant 0 : index
    %72 = vector.load %arg9[%c2_62, %c9_63, %c0_64] : memref<10x24x128xf32, #tpu.memory_space<vmem>>, vector<8x8x128xf32>
    %73 = vector.shape_cast %72 : vector<8x8x128xf32> to vector<64x128xf32>
    %74 = arith.truncf %73 : vector<64x128xf32> to vector<64x128xbf16>
    %c8_65 = arith.constant 8 : index
    %c0_66 = arith.constant 0 : index
    %c0_67 = arith.constant 0 : index
    %75 = vector.load %arg4[%c8_65, %c0_66, %c0_67] : memref<9x128x128xbf16, #tpu.memory_space<vmem>>, vector<1x128x128xbf16>
    %76 = vector.shape_cast %75 : vector<1x128x128xbf16> to vector<128x128xbf16>
    %cst_68 = arith.constant dense<0.000000e+00> : vector<64x128xf32>
    %77 = tpu.matmul %74, %76, %cst_68 {dimension_numbers = #tpu.dot_dimension_numbers<[1], [0], [0], [1], [0, 0, 1, 1], [], []>} : vector<64x128xbf16>, vector<128x128xbf16>, vector<64x128xf32> -> vector<64x128xf32>
    %78 = arith.addf %71, %77 : vector<64x128xf32>
    %79 = vector.shape_cast %1 : vector<8x8x128xf32> to vector<64x128xf32>
    %c0_69 = arith.constant 0 : index
    %c0_70 = arith.constant 0 : index
    %80 = vector.load %arg5[%c0_69, %c0_70] : memref<1x128xf32, #tpu.memory_space<vmem>>, vector<1x128xf32>
    %c0_71 = arith.constant 0 : index
    %c0_72 = arith.constant 0 : index
    %81 = vector.load %arg6[%c0_71, %c0_72] : memref<1x128xf32, #tpu.memory_space<vmem>>, vector<1x128xf32>
    %82 = vector.broadcast %80 : vector<1x128xf32> to vector<64x128xf32>
    %83 = arith.mulf %78, %82 : vector<64x128xf32>
    %84 = vector.broadcast %81 : vector<1x128xf32> to vector<64x128xf32>
    %85 = arith.addf %83, %84 : vector<64x128xf32>
    %cst_73 = arith.constant 0.000000e+00 : f32
    %86 = vector.broadcast %cst_73 : f32 to vector<64x128xf32>
    %87 = arith.maximumf %85, %86 : vector<64x128xf32>
    %cst_74 = arith.constant 0.000000e+00 : f32
    %88 = vector.broadcast %cst_74 : f32 to vector<10x24x128xf32>
    %c0_75 = arith.constant 0 : index
    %c0_76 = arith.constant 0 : index
    %c0_77 = arith.constant 0 : index
    %89 = vector.load %arg10[%c0_75, %c0_76, %c0_77] : memref<10x24x128xf32, #tpu.memory_space<vmem>>, vector<10x24x128xf32>
    tpu.vector_store %arg10[%c0_75, %c0_76, %c0_77], %88 {strides = array<i32>} : memref<10x24x128xf32, #tpu.memory_space<vmem>>, vector<10x24x128xf32>,
    %90 = vector.shape_cast %87 : vector<64x128xf32> to vector<8x8x128xf32>
    %c1_78 = arith.constant 1 : index
    %c8_79 = arith.constant 8 : index
    %c0_80 = arith.constant 0 : index
    %91 = vector.load %arg10[%c1_78, %c8_79, %c0_80] : memref<10x24x128xf32, #tpu.memory_space<vmem>>, vector<8x8x128xf32>
    tpu.vector_store %arg10[%c1_78, %c8_79, %c0_80], %90 {strides = array<i32>} : memref<10x24x128xf32, #tpu.memory_space<vmem>>, vector<8x8x128xf32>,
    %c0_81 = arith.constant 0 : index
    %c7_82 = arith.constant 7 : index
    %c0_83 = arith.constant 0 : index
    %92 = vector.load %arg10[%c0_81, %c7_82, %c0_83] : memref<10x24x128xf32, #tpu.memory_space<vmem>>, vector<8x8x128xf32>
    %93 = vector.shape_cast %92 : vector<8x8x128xf32> to vector<64x128xf32>
    %94 = arith.truncf %93 : vector<64x128xf32> to vector<64x128xbf16>
    %c0_84 = arith.constant 0 : index
    %c0_85 = arith.constant 0 : index
    %c0_86 = arith.constant 0 : index
    %95 = vector.load %arg7[%c0_84, %c0_85, %c0_86] : memref<9x128x128xbf16, #tpu.memory_space<vmem>>, vector<1x128x128xbf16>
    %96 = vector.shape_cast %95 : vector<1x128x128xbf16> to vector<128x128xbf16>
    %cst_87 = arith.constant dense<0.000000e+00> : vector<64x128xf32>
    %97 = tpu.matmul %94, %96, %cst_87 {dimension_numbers = #tpu.dot_dimension_numbers<[1], [0], [0], [1], [0, 0, 1, 1], [], []>} : vector<64x128xbf16>, vector<128x128xbf16>, vector<64x128xf32> -> vector<64x128xf32>
    %98 = arith.addf %79, %97 : vector<64x128xf32>
    %c0_88 = arith.constant 0 : index
    %c8_89 = arith.constant 8 : index
    %c0_90 = arith.constant 0 : index
    %99 = vector.load %arg10[%c0_88, %c8_89, %c0_90] : memref<10x24x128xf32, #tpu.memory_space<vmem>>, vector<8x8x128xf32>
    %100 = vector.shape_cast %99 : vector<8x8x128xf32> to vector<64x128xf32>
    %101 = arith.truncf %100 : vector<64x128xf32> to vector<64x128xbf16>
    %c1_91 = arith.constant 1 : index
    %c0_92 = arith.constant 0 : index
    %c0_93 = arith.constant 0 : index
    %102 = vector.load %arg7[%c1_91, %c0_92, %c0_93] : memref<9x128x128xbf16, #tpu.memory_space<vmem>>, vector<1x128x128xbf16>
    %103 = vector.shape_cast %102 : vector<1x128x128xbf16> to vector<128x128xbf16>
    %cst_94 = arith.constant dense<0.000000e+00> : vector<64x128xf32>
    %104 = tpu.matmul %101, %103, %cst_94 {dimension_numbers = #tpu.dot_dimension_numbers<[1], [0], [0], [1], [0, 0, 1, 1], [], []>} : vector<64x128xbf16>, vector<128x128xbf16>, vector<64x128xf32> -> vector<64x128xf32>
    %105 = arith.addf %98, %104 : vector<64x128xf32>
    %c0_95 = arith.constant 0 : index
    %c9_96 = arith.constant 9 : index
    %c0_97 = arith.constant 0 : index
    %106 = vector.load %arg10[%c0_95, %c9_96, %c0_97] : memref<10x24x128xf32, #tpu.memory_space<vmem>>, vector<8x8x128xf32>
    %107 = vector.shape_cast %106 : vector<8x8x128xf32> to vector<64x128xf32>
    %108 = arith.truncf %107 : vector<64x128xf32> to vector<64x128xbf16>
    %c2_98 = arith.constant 2 : index
    %c0_99 = arith.constant 0 : index
    %c0_100 = arith.constant 0 : index
    %109 = vector.load %arg7[%c2_98, %c0_99, %c0_100] : memref<9x128x128xbf16, #tpu.memory_space<vmem>>, vector<1x128x128xbf16>
    %110 = vector.shape_cast %109 : vector<1x128x128xbf16> to vector<128x128xbf16>
    %cst_101 = arith.constant dense<0.000000e+00> : vector<64x128xf32>
    %111 = tpu.matmul %108, %110, %cst_101 {dimension_numbers = #tpu.dot_dimension_numbers<[1], [0], [0], [1], [0, 0, 1, 1], [], []>} : vector<64x128xbf16>, vector<128x128xbf16>, vector<64x128xf32> -> vector<64x128xf32>
    %112 = arith.addf %105, %111 : vector<64x128xf32>
    %c1_102 = arith.constant 1 : index
    %c7_103 = arith.constant 7 : index
    %c0_104 = arith.constant 0 : index
    %113 = vector.load %arg10[%c1_102, %c7_103, %c0_104] : memref<10x24x128xf32, #tpu.memory_space<vmem>>, vector<8x8x128xf32>
    %114 = vector.shape_cast %113 : vector<8x8x128xf32> to vector<64x128xf32>
    %115 = arith.truncf %114 : vector<64x128xf32> to vector<64x128xbf16>
    %c3_105 = arith.constant 3 : index
    %c0_106 = arith.constant 0 : index
    %c0_107 = arith.constant 0 : index
    %116 = vector.load %arg7[%c3_105, %c0_106, %c0_107] : memref<9x128x128xbf16, #tpu.memory_space<vmem>>, vector<1x128x128xbf16>
    %117 = vector.shape_cast %116 : vector<1x128x128xbf16> to vector<128x128xbf16>
    %cst_108 = arith.constant dense<0.000000e+00> : vector<64x128xf32>
    %118 = tpu.matmul %115, %117, %cst_108 {dimension_numbers = #tpu.dot_dimension_numbers<[1], [0], [0], [1], [0, 0, 1, 1], [], []>} : vector<64x128xbf16>, vector<128x128xbf16>, vector<64x128xf32> -> vector<64x128xf32>
    %119 = arith.addf %112, %118 : vector<64x128xf32>
    %c1_109 = arith.constant 1 : index
    %c8_110 = arith.constant 8 : index
    %c0_111 = arith.constant 0 : index
    %120 = vector.load %arg10[%c1_109, %c8_110, %c0_111] : memref<10x24x128xf32, #tpu.memory_space<vmem>>, vector<8x8x128xf32>
    %121 = vector.shape_cast %120 : vector<8x8x128xf32> to vector<64x128xf32>
    %122 = arith.truncf %121 : vector<64x128xf32> to vector<64x128xbf16>
    %c4_112 = arith.constant 4 : index
    %c0_113 = arith.constant 0 : index
    %c0_114 = arith.constant 0 : index
    %123 = vector.load %arg7[%c4_112, %c0_113, %c0_114] : memref<9x128x128xbf16, #tpu.memory_space<vmem>>, vector<1x128x128xbf16>
    %124 = vector.shape_cast %123 : vector<1x128x128xbf16> to vector<128x128xbf16>
    %cst_115 = arith.constant dense<0.000000e+00> : vector<64x128xf32>
    %125 = tpu.matmul %122, %124, %cst_115 {dimension_numbers = #tpu.dot_dimension_numbers<[1], [0], [0], [1], [0, 0, 1, 1], [], []>} : vector<64x128xbf16>, vector<128x128xbf16>, vector<64x128xf32> -> vector<64x128xf32>
    %126 = arith.addf %119, %125 : vector<64x128xf32>
    %c1_116 = arith.constant 1 : index
    %c9_117 = arith.constant 9 : index
    %c0_118 = arith.constant 0 : index
    %127 = vector.load %arg10[%c1_116, %c9_117, %c0_118] : memref<10x24x128xf32, #tpu.memory_space<vmem>>, vector<8x8x128xf32>
    %128 = vector.shape_cast %127 : vector<8x8x128xf32> to vector<64x128xf32>
    %129 = arith.truncf %128 : vector<64x128xf32> to vector<64x128xbf16>
    %c5_119 = arith.constant 5 : index
    %c0_120 = arith.constant 0 : index
    %c0_121 = arith.constant 0 : index
    %130 = vector.load %arg7[%c5_119, %c0_120, %c0_121] : memref<9x128x128xbf16, #tpu.memory_space<vmem>>, vector<1x128x128xbf16>
    %131 = vector.shape_cast %130 : vector<1x128x128xbf16> to vector<128x128xbf16>
    %cst_122 = arith.constant dense<0.000000e+00> : vector<64x128xf32>
    %132 = tpu.matmul %129, %131, %cst_122 {dimension_numbers = #tpu.dot_dimension_numbers<[1], [0], [0], [1], [0, 0, 1, 1], [], []>} : vector<64x128xbf16>, vector<128x128xbf16>, vector<64x128xf32> -> vector<64x128xf32>
    %133 = arith.addf %126, %132 : vector<64x128xf32>
    %c2_123 = arith.constant 2 : index
    %c7_124 = arith.constant 7 : index
    %c0_125 = arith.constant 0 : index
    %134 = vector.load %arg10[%c2_123, %c7_124, %c0_125] : memref<10x24x128xf32, #tpu.memory_space<vmem>>, vector<8x8x128xf32>
    %135 = vector.shape_cast %134 : vector<8x8x128xf32> to vector<64x128xf32>
    %136 = arith.truncf %135 : vector<64x128xf32> to vector<64x128xbf16>
    %c6_126 = arith.constant 6 : index
    %c0_127 = arith.constant 0 : index
    %c0_128 = arith.constant 0 : index
    %137 = vector.load %arg7[%c6_126, %c0_127, %c0_128] : memref<9x128x128xbf16, #tpu.memory_space<vmem>>, vector<1x128x128xbf16>
    %138 = vector.shape_cast %137 : vector<1x128x128xbf16> to vector<128x128xbf16>
    %cst_129 = arith.constant dense<0.000000e+00> : vector<64x128xf32>
    %139 = tpu.matmul %136, %138, %cst_129 {dimension_numbers = #tpu.dot_dimension_numbers<[1], [0], [0], [1], [0, 0, 1, 1], [], []>} : vector<64x128xbf16>, vector<128x128xbf16>, vector<64x128xf32> -> vector<64x128xf32>
    %140 = arith.addf %133, %139 : vector<64x128xf32>
    %c2_130 = arith.constant 2 : index
    %c8_131 = arith.constant 8 : index
    %c0_132 = arith.constant 0 : index
    %141 = vector.load %arg10[%c2_130, %c8_131, %c0_132] : memref<10x24x128xf32, #tpu.memory_space<vmem>>, vector<8x8x128xf32>
    %142 = vector.shape_cast %141 : vector<8x8x128xf32> to vector<64x128xf32>
    %143 = arith.truncf %142 : vector<64x128xf32> to vector<64x128xbf16>
    %c7_133 = arith.constant 7 : index
    %c0_134 = arith.constant 0 : index
    %c0_135 = arith.constant 0 : index
    %144 = vector.load %arg7[%c7_133, %c0_134, %c0_135] : memref<9x128x128xbf16, #tpu.memory_space<vmem>>, vector<1x128x128xbf16>
    %145 = vector.shape_cast %144 : vector<1x128x128xbf16> to vector<128x128xbf16>
    %cst_136 = arith.constant dense<0.000000e+00> : vector<64x128xf32>
    %146 = tpu.matmul %143, %145, %cst_136 {dimension_numbers = #tpu.dot_dimension_numbers<[1], [0], [0], [1], [0, 0, 1, 1], [], []>} : vector<64x128xbf16>, vector<128x128xbf16>, vector<64x128xf32> -> vector<64x128xf32>
    %147 = arith.addf %140, %146 : vector<64x128xf32>
    %c2_137 = arith.constant 2 : index
    %c9_138 = arith.constant 9 : index
    %c0_139 = arith.constant 0 : index
    %148 = vector.load %arg10[%c2_137, %c9_138, %c0_139] : memref<10x24x128xf32, #tpu.memory_space<vmem>>, vector<8x8x128xf32>
    %149 = vector.shape_cast %148 : vector<8x8x128xf32> to vector<64x128xf32>
    %150 = arith.truncf %149 : vector<64x128xf32> to vector<64x128xbf16>
    %c8_140 = arith.constant 8 : index
    %c0_141 = arith.constant 0 : index
    %c0_142 = arith.constant 0 : index
    %151 = vector.load %arg7[%c8_140, %c0_141, %c0_142] : memref<9x128x128xbf16, #tpu.memory_space<vmem>>, vector<1x128x128xbf16>
    %152 = vector.shape_cast %151 : vector<1x128x128xbf16> to vector<128x128xbf16>
    %cst_143 = arith.constant dense<0.000000e+00> : vector<64x128xf32>
    %153 = tpu.matmul %150, %152, %cst_143 {dimension_numbers = #tpu.dot_dimension_numbers<[1], [0], [0], [1], [0, 0, 1, 1], [], []>} : vector<64x128xbf16>, vector<128x128xbf16>, vector<64x128xf32> -> vector<64x128xf32>
    %154 = arith.addf %147, %153 : vector<64x128xf32>
    %155 = vector.shape_cast %154 : vector<64x128xf32> to vector<8x8x128xf32>
    %c0_144 = arith.constant 0 : index
    %c0_145 = arith.constant 0 : index
    %c0_146 = arith.constant 0 : index
    %c0_147 = arith.constant 0 : index
    %156 = vector.load %arg8[%c0_144, %c0_145, %c0_146, %c0_147] : memref<1x8x8x128xf32, #tpu.memory_space<vmem>>, vector<1x8x8x128xf32>
    %157 = vector.shape_cast %156 : vector<1x8x8x128xf32> to vector<8x8x128xf32>
    %158 = vector.shape_cast %155 : vector<8x8x128xf32> to vector<1x8x8x128xf32>
    tpu.vector_store %arg8[%c0_144, %c0_145, %c0_146, %c0_147], %158 {strides = array<i32>} : memref<1x8x8x128xf32, #tpu.memory_space<vmem>>, vector<1x8x8x128xf32>,
    return
  }
  func.func @transform_0(%arg0: i32) -> (i32, i32, i32, i32) {
    %c0_i32 = arith.constant 0 : i32
    %c0_i32_0 = arith.constant 0 : i32
    %c0_i32_1 = arith.constant 0 : i32
    %c0_i32_2 = arith.constant 0 : i32
    return %arg0, %c0_i32, %c0_i32_0, %c0_i32_1 : i32, i32, i32, i32
  }
  func.func @transform_1(%arg0: i32) -> (i32, i32) {
    %c0_i32 = arith.constant 0 : i32
    %c0_i32_0 = arith.constant 0 : i32
    %c0_i32_1 = arith.constant 0 : i32
    return %c0_i32, %c0_i32_0 : i32, i32
  }
  func.func @transform_2(%arg0: i32) -> (i32, i32) {
    %c0_i32 = arith.constant 0 : i32
    %c0_i32_0 = arith.constant 0 : i32
    %c0_i32_1 = arith.constant 0 : i32
    return %c0_i32, %c0_i32_0 : i32, i32
  }
  func.func @transform_3(%arg0: i32) -> (i32, i32, i32) {
    %c0_i32 = arith.constant 0 : i32
    %c0_i32_0 = arith.constant 0 : i32
    %c0_i32_1 = arith.constant 0 : i32
    %c0_i32_2 = arith.constant 0 : i32
    return %c0_i32, %c0_i32_0, %c0_i32_1 : i32, i32, i32
  }
  func.func @transform_4(%arg0: i32) -> (i32, i32) {
    %c0_i32 = arith.constant 0 : i32
    %c0_i32_0 = arith.constant 0 : i32
    %c0_i32_1 = arith.constant 0 : i32
    return %c0_i32, %c0_i32_0 : i32, i32
  }
  func.func @transform_5(%arg0: i32) -> (i32, i32) {
    %c0_i32 = arith.constant 0 : i32
    %c0_i32_0 = arith.constant 0 : i32
    %c0_i32_1 = arith.constant 0 : i32
    return %c0_i32, %c0_i32_0 : i32, i32
  }
  func.func @transform_6(%arg0: i32) -> (i32, i32, i32) {
    %c0_i32 = arith.constant 0 : i32
    %c0_i32_0 = arith.constant 0 : i32
    %c0_i32_1 = arith.constant 0 : i32
    %c0_i32_2 = arith.constant 0 : i32
    return %c0_i32, %c0_i32_0, %c0_i32_1 : i32, i32, i32
  }
  func.func @transform_7(%arg0: i32) -> (i32, i32, i32, i32) {
    %c0_i32 = arith.constant 0 : i32
    %c0_i32_0 = arith.constant 0 : i32
    %c0_i32_1 = arith.constant 0 : i32
    %c0_i32_2 = arith.constant 0 : i32
    return %arg0, %c0_i32, %c0_i32_0, %c0_i32_1 : i32, i32, i32, i32
  }
}

module attributes {stable_mosaic.version = 11 : i64} {
  func.func @_block_down_kernel(%arg0: i32, %arg1: memref<1x8x8x128xf32, #tpu.memory_space<vmem>>, %arg2: memref<1x8x8x128xf32, #tpu.memory_space<vmem>>, %arg3: memref<1x8x8x128xf32, #tpu.memory_space<vmem>>, %arg4: memref<1x8x8x128xf32, #tpu.memory_space<vmem>>, %arg5: memref<1x128xf32, #tpu.memory_space<vmem>>, %arg6: memref<1x128xf32, #tpu.memory_space<vmem>>, %arg7: memref<9x128x128xbf16, #tpu.memory_space<vmem>>, %arg8: memref<1x128xf32, #tpu.memory_space<vmem>>, %arg9: memref<1x128xf32, #tpu.memory_space<vmem>>, %arg10: memref<9x128x128xbf16, #tpu.memory_space<vmem>>, %arg11: memref<128x128xbf16, #tpu.memory_space<vmem>>, %arg12: memref<1x8x8x128xf32, #tpu.memory_space<vmem>>, %arg13: memref<9x16x128xf32, #tpu.memory_space<vmem>>, %arg14: memref<9x8x128xf32, #tpu.memory_space<vmem>>, %arg15: memref<8x16x128xf32, #tpu.memory_space<vmem>>, %arg16: memref<10x24x128xf32, #tpu.memory_space<vmem>>) attributes {dimension_semantics = [#tpu.dimension_semantics<parallel>], iteration_bounds = array<i64: 2>, scalar_prefetch = 0 : i64, scratch_operands = 4 : i64, tpu.core_type = #tpu.core_type<tc>, window_params = [{transform_indices = @transform_0, window_bounds = array<i64: 1, 8, 8, 128>}, {transform_indices = @transform_1, window_bounds = array<i64: 1, 8, 8, 128>}, {transform_indices = @transform_2, window_bounds = array<i64: 1, 8, 8, 128>}, {transform_indices = @transform_3, window_bounds = array<i64: 1, 8, 8, 128>}, {pipeline_mode = #tpu.pipeline_mode<synchronous>, transform_indices = @transform_4, window_bounds = array<i64: 1, 128>}, {pipeline_mode = #tpu.pipeline_mode<synchronous>, transform_indices = @transform_5, window_bounds = array<i64: 1, 128>}, {pipeline_mode = #tpu.pipeline_mode<synchronous>, transform_indices = @transform_6, window_bounds = array<i64: 9, 128, 128>}, {pipeline_mode = #tpu.pipeline_mode<synchronous>, transform_indices = @transform_7, window_bounds = array<i64: 1, 128>}, {pipeline_mode = #tpu.pipeline_mode<synchronous>, transform_indices = @transform_8, window_bounds = array<i64: 1, 128>}, {pipeline_mode = #tpu.pipeline_mode<synchronous>, transform_indices = @transform_9, window_bounds = array<i64: 9, 128, 128>}, {pipeline_mode = #tpu.pipeline_mode<synchronous>, transform_indices = @transform_10, window_bounds = array<i64: 128, 128>}, {transform_indices = @transform_11, window_bounds = array<i64: 1, 8, 8, 128>}]} {
    %c0 = arith.constant 0 : index
    %c0_0 = arith.constant 0 : index
    %0 = vector.load %arg5[%c0, %c0_0] : memref<1x128xf32, #tpu.memory_space<vmem>>, vector<1x128xf32>
    %c0_1 = arith.constant 0 : index
    %c0_2 = arith.constant 0 : index
    %1 = vector.load %arg6[%c0_1, %c0_2] : memref<1x128xf32, #tpu.memory_space<vmem>>, vector<1x128xf32>
    %cst = arith.constant 0.000000e+00 : f32
    %2 = vector.broadcast %cst : f32 to vector<9x16x128xf32>
    %c0_3 = arith.constant 0 : index
    %c0_4 = arith.constant 0 : index
    %c0_5 = arith.constant 0 : index
    %3 = vector.load %arg13[%c0_3, %c0_4, %c0_5] : memref<9x16x128xf32, #tpu.memory_space<vmem>>, vector<9x16x128xf32>
    tpu.vector_store %arg13[%c0_3, %c0_4, %c0_5], %2 {strides = array<i32>} : memref<9x16x128xf32, #tpu.memory_space<vmem>>, vector<9x16x128xf32>,
    %cst_6 = arith.constant 0.000000e+00 : f32
    %4 = vector.broadcast %cst_6 : f32 to vector<9x8x128xf32>
    %c0_7 = arith.constant 0 : index
    %c0_8 = arith.constant 0 : index
    %c0_9 = arith.constant 0 : index
    %5 = vector.load %arg14[%c0_7, %c0_8, %c0_9] : memref<9x8x128xf32, #tpu.memory_space<vmem>>, vector<9x8x128xf32>
    tpu.vector_store %arg14[%c0_7, %c0_8, %c0_9], %4 {strides = array<i32>} : memref<9x8x128xf32, #tpu.memory_space<vmem>>, vector<9x8x128xf32>,
    %cst_10 = arith.constant 0.000000e+00 : f32
    %6 = vector.broadcast %cst_10 : f32 to vector<8x16x128xf32>
    %c0_11 = arith.constant 0 : index
    %c0_12 = arith.constant 0 : index
    %c0_13 = arith.constant 0 : index
    %7 = vector.load %arg15[%c0_11, %c0_12, %c0_13] : memref<8x16x128xf32, #tpu.memory_space<vmem>>, vector<8x16x128xf32>
    tpu.vector_store %arg15[%c0_11, %c0_12, %c0_13], %6 {strides = array<i32>} : memref<8x16x128xf32, #tpu.memory_space<vmem>>, vector<8x16x128xf32>,
    %c0_14 = arith.constant 0 : index
    %c0_15 = arith.constant 0 : index
    %c0_16 = arith.constant 0 : index
    %c0_17 = arith.constant 0 : index
    %8 = vector.load %arg1[%c0_14, %c0_15, %c0_16, %c0_17] : memref<1x8x8x128xf32, #tpu.memory_space<vmem>>, vector<1x8x8x128xf32>
    %9 = vector.shape_cast %8 : vector<1x8x8x128xf32> to vector<8x8x128xf32>
    %10 = vector.shape_cast %0 : vector<1x128xf32> to vector<1x1x128xf32>
    %11 = vector.broadcast %10 : vector<1x1x128xf32> to vector<8x8x128xf32>
    %12 = arith.mulf %9, %11 : vector<8x8x128xf32>
    %13 = vector.shape_cast %1 : vector<1x128xf32> to vector<1x1x128xf32>
    %14 = vector.broadcast %13 : vector<1x1x128xf32> to vector<8x8x128xf32>
    %15 = arith.addf %12, %14 : vector<8x8x128xf32>
    %cst_18 = arith.constant 0.000000e+00 : f32
    %16 = vector.broadcast %cst_18 : f32 to vector<8x8x128xf32>
    %17 = arith.maximumf %15, %16 : vector<8x8x128xf32>
    %c1 = arith.constant 1 : index
    %c8 = arith.constant 8 : index
    %c0_19 = arith.constant 0 : index
    %18 = vector.load %arg13[%c1, %c8, %c0_19] : memref<9x16x128xf32, #tpu.memory_space<vmem>>, vector<8x8x128xf32>
    tpu.vector_store %arg13[%c1, %c8, %c0_19], %17 {strides = array<i32>} : memref<9x16x128xf32, #tpu.memory_space<vmem>>, vector<8x8x128xf32>,
    %c0_20 = arith.constant 0 : index
    %c0_21 = arith.constant 0 : index
    %c0_22 = arith.constant 0 : index
    %c0_23 = arith.constant 0 : index
    %19 = vector.load %arg2[%c0_20, %c0_21, %c0_22, %c0_23] : memref<1x8x8x128xf32, #tpu.memory_space<vmem>>, vector<1x8x8x128xf32>
    %20 = vector.shape_cast %19 : vector<1x8x8x128xf32> to vector<8x8x128xf32>
    %21 = vector.shape_cast %0 : vector<1x128xf32> to vector<1x1x128xf32>
    %22 = vector.broadcast %21 : vector<1x1x128xf32> to vector<8x8x128xf32>
    %23 = arith.mulf %20, %22 : vector<8x8x128xf32>
    %24 = vector.shape_cast %1 : vector<1x128xf32> to vector<1x1x128xf32>
    %25 = vector.broadcast %24 : vector<1x1x128xf32> to vector<8x8x128xf32>
    %26 = arith.addf %23, %25 : vector<8x8x128xf32>
    %cst_24 = arith.constant 0.000000e+00 : f32
    %27 = vector.broadcast %cst_24 : f32 to vector<8x8x128xf32>
    %28 = arith.maximumf %26, %27 : vector<8x8x128xf32>
    %c1_25 = arith.constant 1 : index
    %c0_26 = arith.constant 0 : index
    %c0_27 = arith.constant 0 : index
    %29 = vector.load %arg14[%c1_25, %c0_26, %c0_27] : memref<9x8x128xf32, #tpu.memory_space<vmem>>, vector<8x8x128xf32>
    tpu.vector_store %arg14[%c1_25, %c0_26, %c0_27], %28 {strides = array<i32>} : memref<9x8x128xf32, #tpu.memory_space<vmem>>, vector<8x8x128xf32>,
    %c0_28 = arith.constant 0 : index
    %c0_29 = arith.constant 0 : index
    %c0_30 = arith.constant 0 : index
    %c0_31 = arith.constant 0 : index
    %30 = vector.load %arg3[%c0_28, %c0_29, %c0_30, %c0_31] : memref<1x8x8x128xf32, #tpu.memory_space<vmem>>, vector<1x8x8x128xf32>
    %31 = vector.shape_cast %30 : vector<1x8x8x128xf32> to vector<8x8x128xf32>
    %32 = vector.shape_cast %0 : vector<1x128xf32> to vector<1x1x128xf32>
    %33 = vector.broadcast %32 : vector<1x1x128xf32> to vector<8x8x128xf32>
    %34 = arith.mulf %31, %33 : vector<8x8x128xf32>
    %35 = vector.shape_cast %1 : vector<1x128xf32> to vector<1x1x128xf32>
    %36 = vector.broadcast %35 : vector<1x1x128xf32> to vector<8x8x128xf32>
    %37 = arith.addf %34, %36 : vector<8x8x128xf32>
    %cst_32 = arith.constant 0.000000e+00 : f32
    %38 = vector.broadcast %cst_32 : f32 to vector<8x8x128xf32>
    %39 = arith.maximumf %37, %38 : vector<8x8x128xf32>
    %c0_33 = arith.constant 0 : index
    %c8_34 = arith.constant 8 : index
    %c0_35 = arith.constant 0 : index
    %40 = vector.load %arg15[%c0_33, %c8_34, %c0_35] : memref<8x16x128xf32, #tpu.memory_space<vmem>>, vector<8x8x128xf32>
    tpu.vector_store %arg15[%c0_33, %c8_34, %c0_35], %39 {strides = array<i32>} : memref<8x16x128xf32, #tpu.memory_space<vmem>>, vector<8x8x128xf32>,
    %c0_36 = arith.constant 0 : index
    %c0_37 = arith.constant 0 : index
    %c0_38 = arith.constant 0 : index
    %c0_39 = arith.constant 0 : index
    %41 = vector.load %arg4[%c0_36, %c0_37, %c0_38, %c0_39] : memref<1x8x8x128xf32, #tpu.memory_space<vmem>>, vector<1x8x8x128xf32>
    %42 = vector.shape_cast %41 : vector<1x8x8x128xf32> to vector<8x8x128xf32>
    %43 = vector.shape_cast %0 : vector<1x128xf32> to vector<1x1x128xf32>
    %44 = vector.broadcast %43 : vector<1x1x128xf32> to vector<8x8x128xf32>
    %45 = arith.mulf %42, %44 : vector<8x8x128xf32>
    %46 = vector.shape_cast %1 : vector<1x128xf32> to vector<1x1x128xf32>
    %47 = vector.broadcast %46 : vector<1x1x128xf32> to vector<8x8x128xf32>
    %48 = arith.addf %45, %47 : vector<8x8x128xf32>
    %cst_40 = arith.constant 0.000000e+00 : f32
    %49 = vector.broadcast %cst_40 : f32 to vector<8x8x128xf32>
    %50 = arith.maximumf %48, %49 : vector<8x8x128xf32>
    %cst_41 = arith.constant 0.000000e+00 : f32
    %51 = vector.broadcast %cst_41 : f32 to vector<64x128xf32>
    %c0_42 = arith.constant 0 : index
    %c7 = arith.constant 7 : index
    %c0_43 = arith.constant 0 : index
    %52 = vector.load %arg13[%c0_42, %c7, %c0_43] : memref<9x16x128xf32, #tpu.memory_space<vmem>>, vector<8x8x128xf32>
    %53 = vector.shape_cast %52 : vector<8x8x128xf32> to vector<64x128xf32>
    %54 = arith.truncf %53 : vector<64x128xf32> to vector<64x128xbf16>
    %c0_44 = arith.constant 0 : index
    %c0_45 = arith.constant 0 : index
    %c0_46 = arith.constant 0 : index
    %55 = vector.load %arg7[%c0_44, %c0_45, %c0_46] : memref<9x128x128xbf16, #tpu.memory_space<vmem>>, vector<1x128x128xbf16>
    %56 = vector.shape_cast %55 : vector<1x128x128xbf16> to vector<128x128xbf16>
    %cst_47 = arith.constant dense<0.000000e+00> : vector<64x128xf32>
    %57 = tpu.matmul %54, %56, %cst_47 {dimension_numbers = #tpu.dot_dimension_numbers<[1], [0], [0], [1], [0, 0, 1, 1], [], []>} : vector<64x128xbf16>, vector<128x128xbf16>, vector<64x128xf32> -> vector<64x128xf32>
    %58 = arith.addf %51, %57 : vector<64x128xf32>
    %c0_48 = arith.constant 0 : index
    %c0_49 = arith.constant 0 : index
    %c0_50 = arith.constant 0 : index
    %59 = vector.load %arg14[%c0_48, %c0_49, %c0_50] : memref<9x8x128xf32, #tpu.memory_space<vmem>>, vector<8x8x128xf32>
    %60 = vector.shape_cast %59 : vector<8x8x128xf32> to vector<64x128xf32>
    %61 = arith.truncf %60 : vector<64x128xf32> to vector<64x128xbf16>
    %c1_51 = arith.constant 1 : index
    %c0_52 = arith.constant 0 : index
    %c0_53 = arith.constant 0 : index
    %62 = vector.load %arg7[%c1_51, %c0_52, %c0_53] : memref<9x128x128xbf16, #tpu.memory_space<vmem>>, vector<1x128x128xbf16>
    %63 = vector.shape_cast %62 : vector<1x128x128xbf16> to vector<128x128xbf16>
    %cst_54 = arith.constant dense<0.000000e+00> : vector<64x128xf32>
    %64 = tpu.matmul %61, %63, %cst_54 {dimension_numbers = #tpu.dot_dimension_numbers<[1], [0], [0], [1], [0, 0, 1, 1], [], []>} : vector<64x128xbf16>, vector<128x128xbf16>, vector<64x128xf32> -> vector<64x128xf32>
    %65 = arith.addf %58, %64 : vector<64x128xf32>
    %c0_55 = arith.constant 0 : index
    %c8_56 = arith.constant 8 : index
    %c0_57 = arith.constant 0 : index
    %66 = vector.load %arg13[%c0_55, %c8_56, %c0_57] : memref<9x16x128xf32, #tpu.memory_space<vmem>>, vector<8x8x128xf32>
    %67 = vector.shape_cast %66 : vector<8x8x128xf32> to vector<64x128xf32>
    %68 = arith.truncf %67 : vector<64x128xf32> to vector<64x128xbf16>
    %c2 = arith.constant 2 : index
    %c0_58 = arith.constant 0 : index
    %c0_59 = arith.constant 0 : index
    %69 = vector.load %arg7[%c2, %c0_58, %c0_59] : memref<9x128x128xbf16, #tpu.memory_space<vmem>>, vector<1x128x128xbf16>
    %70 = vector.shape_cast %69 : vector<1x128x128xbf16> to vector<128x128xbf16>
    %cst_60 = arith.constant dense<0.000000e+00> : vector<64x128xf32>
    %71 = tpu.matmul %68, %70, %cst_60 {dimension_numbers = #tpu.dot_dimension_numbers<[1], [0], [0], [1], [0, 0, 1, 1], [], []>} : vector<64x128xbf16>, vector<128x128xbf16>, vector<64x128xf32> -> vector<64x128xf32>
    %72 = arith.addf %65, %71 : vector<64x128xf32>
    %c0_61 = arith.constant 0 : index
    %c7_62 = arith.constant 7 : index
    %c0_63 = arith.constant 0 : index
    %73 = vector.load %arg15[%c0_61, %c7_62, %c0_63] : memref<8x16x128xf32, #tpu.memory_space<vmem>>, vector<8x8x128xf32>
    %74 = vector.shape_cast %73 : vector<8x8x128xf32> to vector<64x128xf32>
    %75 = arith.truncf %74 : vector<64x128xf32> to vector<64x128xbf16>
    %c3 = arith.constant 3 : index
    %c0_64 = arith.constant 0 : index
    %c0_65 = arith.constant 0 : index
    %76 = vector.load %arg7[%c3, %c0_64, %c0_65] : memref<9x128x128xbf16, #tpu.memory_space<vmem>>, vector<1x128x128xbf16>
    %77 = vector.shape_cast %76 : vector<1x128x128xbf16> to vector<128x128xbf16>
    %cst_66 = arith.constant dense<0.000000e+00> : vector<64x128xf32>
    %78 = tpu.matmul %75, %77, %cst_66 {dimension_numbers = #tpu.dot_dimension_numbers<[1], [0], [0], [1], [0, 0, 1, 1], [], []>} : vector<64x128xbf16>, vector<128x128xbf16>, vector<64x128xf32> -> vector<64x128xf32>
    %79 = arith.addf %72, %78 : vector<64x128xf32>
    %80 = vector.shape_cast %50 : vector<8x8x128xf32> to vector<64x128xf32>
    %81 = arith.truncf %80 : vector<64x128xf32> to vector<64x128xbf16>
    %c4 = arith.constant 4 : index
    %c0_67 = arith.constant 0 : index
    %c0_68 = arith.constant 0 : index
    %82 = vector.load %arg7[%c4, %c0_67, %c0_68] : memref<9x128x128xbf16, #tpu.memory_space<vmem>>, vector<1x128x128xbf16>
    %83 = vector.shape_cast %82 : vector<1x128x128xbf16> to vector<128x128xbf16>
    %cst_69 = arith.constant dense<0.000000e+00> : vector<64x128xf32>
    %84 = tpu.matmul %81, %83, %cst_69 {dimension_numbers = #tpu.dot_dimension_numbers<[1], [0], [0], [1], [0, 0, 1, 1], [], []>} : vector<64x128xbf16>, vector<128x128xbf16>, vector<64x128xf32> -> vector<64x128xf32>
    %85 = arith.addf %79, %84 : vector<64x128xf32>
    %c0_70 = arith.constant 0 : index
    %c8_71 = arith.constant 8 : index
    %c0_72 = arith.constant 0 : index
    %86 = vector.load %arg15[%c0_70, %c8_71, %c0_72] : memref<8x16x128xf32, #tpu.memory_space<vmem>>, vector<8x8x128xf32>
    %87 = vector.shape_cast %86 : vector<8x8x128xf32> to vector<64x128xf32>
    %88 = arith.truncf %87 : vector<64x128xf32> to vector<64x128xbf16>
    %c5 = arith.constant 5 : index
    %c0_73 = arith.constant 0 : index
    %c0_74 = arith.constant 0 : index
    %89 = vector.load %arg7[%c5, %c0_73, %c0_74] : memref<9x128x128xbf16, #tpu.memory_space<vmem>>, vector<1x128x128xbf16>
    %90 = vector.shape_cast %89 : vector<1x128x128xbf16> to vector<128x128xbf16>
    %cst_75 = arith.constant dense<0.000000e+00> : vector<64x128xf32>
    %91 = tpu.matmul %88, %90, %cst_75 {dimension_numbers = #tpu.dot_dimension_numbers<[1], [0], [0], [1], [0, 0, 1, 1], [], []>} : vector<64x128xbf16>, vector<128x128xbf16>, vector<64x128xf32> -> vector<64x128xf32>
    %92 = arith.addf %85, %91 : vector<64x128xf32>
    %c1_76 = arith.constant 1 : index
    %c7_77 = arith.constant 7 : index
    %c0_78 = arith.constant 0 : index
    %93 = vector.load %arg13[%c1_76, %c7_77, %c0_78] : memref<9x16x128xf32, #tpu.memory_space<vmem>>, vector<8x8x128xf32>
    %94 = vector.shape_cast %93 : vector<8x8x128xf32> to vector<64x128xf32>
    %95 = arith.truncf %94 : vector<64x128xf32> to vector<64x128xbf16>
    %c6 = arith.constant 6 : index
    %c0_79 = arith.constant 0 : index
    %c0_80 = arith.constant 0 : index
    %96 = vector.load %arg7[%c6, %c0_79, %c0_80] : memref<9x128x128xbf16, #tpu.memory_space<vmem>>, vector<1x128x128xbf16>
    %97 = vector.shape_cast %96 : vector<1x128x128xbf16> to vector<128x128xbf16>
    %cst_81 = arith.constant dense<0.000000e+00> : vector<64x128xf32>
    %98 = tpu.matmul %95, %97, %cst_81 {dimension_numbers = #tpu.dot_dimension_numbers<[1], [0], [0], [1], [0, 0, 1, 1], [], []>} : vector<64x128xbf16>, vector<128x128xbf16>, vector<64x128xf32> -> vector<64x128xf32>
    %99 = arith.addf %92, %98 : vector<64x128xf32>
    %c1_82 = arith.constant 1 : index
    %c0_83 = arith.constant 0 : index
    %c0_84 = arith.constant 0 : index
    %100 = vector.load %arg14[%c1_82, %c0_83, %c0_84] : memref<9x8x128xf32, #tpu.memory_space<vmem>>, vector<8x8x128xf32>
    %101 = vector.shape_cast %100 : vector<8x8x128xf32> to vector<64x128xf32>
    %102 = arith.truncf %101 : vector<64x128xf32> to vector<64x128xbf16>
    %c7_85 = arith.constant 7 : index
    %c0_86 = arith.constant 0 : index
    %c0_87 = arith.constant 0 : index
    %103 = vector.load %arg7[%c7_85, %c0_86, %c0_87] : memref<9x128x128xbf16, #tpu.memory_space<vmem>>, vector<1x128x128xbf16>
    %104 = vector.shape_cast %103 : vector<1x128x128xbf16> to vector<128x128xbf16>
    %cst_88 = arith.constant dense<0.000000e+00> : vector<64x128xf32>
    %105 = tpu.matmul %102, %104, %cst_88 {dimension_numbers = #tpu.dot_dimension_numbers<[1], [0], [0], [1], [0, 0, 1, 1], [], []>} : vector<64x128xbf16>, vector<128x128xbf16>, vector<64x128xf32> -> vector<64x128xf32>
    %106 = arith.addf %99, %105 : vector<64x128xf32>
    %c1_89 = arith.constant 1 : index
    %c8_90 = arith.constant 8 : index
    %c0_91 = arith.constant 0 : index
    %107 = vector.load %arg13[%c1_89, %c8_90, %c0_91] : memref<9x16x128xf32, #tpu.memory_space<vmem>>, vector<8x8x128xf32>
    %108 = vector.shape_cast %107 : vector<8x8x128xf32> to vector<64x128xf32>
    %109 = arith.truncf %108 : vector<64x128xf32> to vector<64x128xbf16>
    %c8_92 = arith.constant 8 : index
    %c0_93 = arith.constant 0 : index
    %c0_94 = arith.constant 0 : index
    %110 = vector.load %arg7[%c8_92, %c0_93, %c0_94] : memref<9x128x128xbf16, #tpu.memory_space<vmem>>, vector<1x128x128xbf16>
    %111 = vector.shape_cast %110 : vector<1x128x128xbf16> to vector<128x128xbf16>
    %cst_95 = arith.constant dense<0.000000e+00> : vector<64x128xf32>
    %112 = tpu.matmul %109, %111, %cst_95 {dimension_numbers = #tpu.dot_dimension_numbers<[1], [0], [0], [1], [0, 0, 1, 1], [], []>} : vector<64x128xbf16>, vector<128x128xbf16>, vector<64x128xf32> -> vector<64x128xf32>
    %113 = arith.addf %106, %112 : vector<64x128xf32>
    %114 = vector.shape_cast %50 : vector<8x8x128xf32> to vector<64x128xf32>
    %115 = arith.truncf %114 : vector<64x128xf32> to vector<64x128xbf16>
    %c0_96 = arith.constant 0 : index
    %c0_97 = arith.constant 0 : index
    %116 = vector.load %arg11[%c0_96, %c0_97] : memref<128x128xbf16, #tpu.memory_space<vmem>>, vector<128x128xbf16>
    %cst_98 = arith.constant dense<0.000000e+00> : vector<64x128xf32>
    %117 = tpu.matmul %115, %116, %cst_98 {dimension_numbers = #tpu.dot_dimension_numbers<[1], [0], [0], [1], [0, 0, 1, 1], [], []>} : vector<64x128xbf16>, vector<128x128xbf16>, vector<64x128xf32> -> vector<64x128xf32>
    %c0_99 = arith.constant 0 : index
    %c0_100 = arith.constant 0 : index
    %118 = vector.load %arg8[%c0_99, %c0_100] : memref<1x128xf32, #tpu.memory_space<vmem>>, vector<1x128xf32>
    %c0_101 = arith.constant 0 : index
    %c0_102 = arith.constant 0 : index
    %119 = vector.load %arg9[%c0_101, %c0_102] : memref<1x128xf32, #tpu.memory_space<vmem>>, vector<1x128xf32>
    %120 = vector.broadcast %118 : vector<1x128xf32> to vector<64x128xf32>
    %121 = arith.mulf %113, %120 : vector<64x128xf32>
    %122 = vector.broadcast %119 : vector<1x128xf32> to vector<64x128xf32>
    %123 = arith.addf %121, %122 : vector<64x128xf32>
    %cst_103 = arith.constant 0.000000e+00 : f32
    %124 = vector.broadcast %cst_103 : f32 to vector<64x128xf32>
    %125 = arith.maximumf %123, %124 : vector<64x128xf32>
    %cst_104 = arith.constant 0.000000e+00 : f32
    %126 = vector.broadcast %cst_104 : f32 to vector<10x24x128xf32>
    %c0_105 = arith.constant 0 : index
    %c0_106 = arith.constant 0 : index
    %c0_107 = arith.constant 0 : index
    %127 = vector.load %arg16[%c0_105, %c0_106, %c0_107] : memref<10x24x128xf32, #tpu.memory_space<vmem>>, vector<10x24x128xf32>
    tpu.vector_store %arg16[%c0_105, %c0_106, %c0_107], %126 {strides = array<i32>} : memref<10x24x128xf32, #tpu.memory_space<vmem>>, vector<10x24x128xf32>,
    %128 = vector.shape_cast %125 : vector<64x128xf32> to vector<8x8x128xf32>
    %c1_108 = arith.constant 1 : index
    %c8_109 = arith.constant 8 : index
    %c0_110 = arith.constant 0 : index
    %129 = vector.load %arg16[%c1_108, %c8_109, %c0_110] : memref<10x24x128xf32, #tpu.memory_space<vmem>>, vector<8x8x128xf32>
    tpu.vector_store %arg16[%c1_108, %c8_109, %c0_110], %128 {strides = array<i32>} : memref<10x24x128xf32, #tpu.memory_space<vmem>>, vector<8x8x128xf32>,
    %c0_111 = arith.constant 0 : index
    %c7_112 = arith.constant 7 : index
    %c0_113 = arith.constant 0 : index
    %130 = vector.load %arg16[%c0_111, %c7_112, %c0_113] : memref<10x24x128xf32, #tpu.memory_space<vmem>>, vector<8x8x128xf32>
    %131 = vector.shape_cast %130 : vector<8x8x128xf32> to vector<64x128xf32>
    %132 = arith.truncf %131 : vector<64x128xf32> to vector<64x128xbf16>
    %c0_114 = arith.constant 0 : index
    %c0_115 = arith.constant 0 : index
    %c0_116 = arith.constant 0 : index
    %133 = vector.load %arg10[%c0_114, %c0_115, %c0_116] : memref<9x128x128xbf16, #tpu.memory_space<vmem>>, vector<1x128x128xbf16>
    %134 = vector.shape_cast %133 : vector<1x128x128xbf16> to vector<128x128xbf16>
    %cst_117 = arith.constant dense<0.000000e+00> : vector<64x128xf32>
    %135 = tpu.matmul %132, %134, %cst_117 {dimension_numbers = #tpu.dot_dimension_numbers<[1], [0], [0], [1], [0, 0, 1, 1], [], []>} : vector<64x128xbf16>, vector<128x128xbf16>, vector<64x128xf32> -> vector<64x128xf32>
    %136 = arith.addf %117, %135 : vector<64x128xf32>
    %c0_118 = arith.constant 0 : index
    %c8_119 = arith.constant 8 : index
    %c0_120 = arith.constant 0 : index
    %137 = vector.load %arg16[%c0_118, %c8_119, %c0_120] : memref<10x24x128xf32, #tpu.memory_space<vmem>>, vector<8x8x128xf32>
    %138 = vector.shape_cast %137 : vector<8x8x128xf32> to vector<64x128xf32>
    %139 = arith.truncf %138 : vector<64x128xf32> to vector<64x128xbf16>
    %c1_121 = arith.constant 1 : index
    %c0_122 = arith.constant 0 : index
    %c0_123 = arith.constant 0 : index
    %140 = vector.load %arg10[%c1_121, %c0_122, %c0_123] : memref<9x128x128xbf16, #tpu.memory_space<vmem>>, vector<1x128x128xbf16>
    %141 = vector.shape_cast %140 : vector<1x128x128xbf16> to vector<128x128xbf16>
    %cst_124 = arith.constant dense<0.000000e+00> : vector<64x128xf32>
    %142 = tpu.matmul %139, %141, %cst_124 {dimension_numbers = #tpu.dot_dimension_numbers<[1], [0], [0], [1], [0, 0, 1, 1], [], []>} : vector<64x128xbf16>, vector<128x128xbf16>, vector<64x128xf32> -> vector<64x128xf32>
    %143 = arith.addf %136, %142 : vector<64x128xf32>
    %c0_125 = arith.constant 0 : index
    %c9 = arith.constant 9 : index
    %c0_126 = arith.constant 0 : index
    %144 = vector.load %arg16[%c0_125, %c9, %c0_126] : memref<10x24x128xf32, #tpu.memory_space<vmem>>, vector<8x8x128xf32>
    %145 = vector.shape_cast %144 : vector<8x8x128xf32> to vector<64x128xf32>
    %146 = arith.truncf %145 : vector<64x128xf32> to vector<64x128xbf16>
    %c2_127 = arith.constant 2 : index
    %c0_128 = arith.constant 0 : index
    %c0_129 = arith.constant 0 : index
    %147 = vector.load %arg10[%c2_127, %c0_128, %c0_129] : memref<9x128x128xbf16, #tpu.memory_space<vmem>>, vector<1x128x128xbf16>
    %148 = vector.shape_cast %147 : vector<1x128x128xbf16> to vector<128x128xbf16>
    %cst_130 = arith.constant dense<0.000000e+00> : vector<64x128xf32>
    %149 = tpu.matmul %146, %148, %cst_130 {dimension_numbers = #tpu.dot_dimension_numbers<[1], [0], [0], [1], [0, 0, 1, 1], [], []>} : vector<64x128xbf16>, vector<128x128xbf16>, vector<64x128xf32> -> vector<64x128xf32>
    %150 = arith.addf %143, %149 : vector<64x128xf32>
    %c1_131 = arith.constant 1 : index
    %c7_132 = arith.constant 7 : index
    %c0_133 = arith.constant 0 : index
    %151 = vector.load %arg16[%c1_131, %c7_132, %c0_133] : memref<10x24x128xf32, #tpu.memory_space<vmem>>, vector<8x8x128xf32>
    %152 = vector.shape_cast %151 : vector<8x8x128xf32> to vector<64x128xf32>
    %153 = arith.truncf %152 : vector<64x128xf32> to vector<64x128xbf16>
    %c3_134 = arith.constant 3 : index
    %c0_135 = arith.constant 0 : index
    %c0_136 = arith.constant 0 : index
    %154 = vector.load %arg10[%c3_134, %c0_135, %c0_136] : memref<9x128x128xbf16, #tpu.memory_space<vmem>>, vector<1x128x128xbf16>
    %155 = vector.shape_cast %154 : vector<1x128x128xbf16> to vector<128x128xbf16>
    %cst_137 = arith.constant dense<0.000000e+00> : vector<64x128xf32>
    %156 = tpu.matmul %153, %155, %cst_137 {dimension_numbers = #tpu.dot_dimension_numbers<[1], [0], [0], [1], [0, 0, 1, 1], [], []>} : vector<64x128xbf16>, vector<128x128xbf16>, vector<64x128xf32> -> vector<64x128xf32>
    %157 = arith.addf %150, %156 : vector<64x128xf32>
    %c1_138 = arith.constant 1 : index
    %c8_139 = arith.constant 8 : index
    %c0_140 = arith.constant 0 : index
    %158 = vector.load %arg16[%c1_138, %c8_139, %c0_140] : memref<10x24x128xf32, #tpu.memory_space<vmem>>, vector<8x8x128xf32>
    %159 = vector.shape_cast %158 : vector<8x8x128xf32> to vector<64x128xf32>
    %160 = arith.truncf %159 : vector<64x128xf32> to vector<64x128xbf16>
    %c4_141 = arith.constant 4 : index
    %c0_142 = arith.constant 0 : index
    %c0_143 = arith.constant 0 : index
    %161 = vector.load %arg10[%c4_141, %c0_142, %c0_143] : memref<9x128x128xbf16, #tpu.memory_space<vmem>>, vector<1x128x128xbf16>
    %162 = vector.shape_cast %161 : vector<1x128x128xbf16> to vector<128x128xbf16>
    %cst_144 = arith.constant dense<0.000000e+00> : vector<64x128xf32>
    %163 = tpu.matmul %160, %162, %cst_144 {dimension_numbers = #tpu.dot_dimension_numbers<[1], [0], [0], [1], [0, 0, 1, 1], [], []>} : vector<64x128xbf16>, vector<128x128xbf16>, vector<64x128xf32> -> vector<64x128xf32>
    %164 = arith.addf %157, %163 : vector<64x128xf32>
    %c1_145 = arith.constant 1 : index
    %c9_146 = arith.constant 9 : index
    %c0_147 = arith.constant 0 : index
    %165 = vector.load %arg16[%c1_145, %c9_146, %c0_147] : memref<10x24x128xf32, #tpu.memory_space<vmem>>, vector<8x8x128xf32>
    %166 = vector.shape_cast %165 : vector<8x8x128xf32> to vector<64x128xf32>
    %167 = arith.truncf %166 : vector<64x128xf32> to vector<64x128xbf16>
    %c5_148 = arith.constant 5 : index
    %c0_149 = arith.constant 0 : index
    %c0_150 = arith.constant 0 : index
    %168 = vector.load %arg10[%c5_148, %c0_149, %c0_150] : memref<9x128x128xbf16, #tpu.memory_space<vmem>>, vector<1x128x128xbf16>
    %169 = vector.shape_cast %168 : vector<1x128x128xbf16> to vector<128x128xbf16>
    %cst_151 = arith.constant dense<0.000000e+00> : vector<64x128xf32>
    %170 = tpu.matmul %167, %169, %cst_151 {dimension_numbers = #tpu.dot_dimension_numbers<[1], [0], [0], [1], [0, 0, 1, 1], [], []>} : vector<64x128xbf16>, vector<128x128xbf16>, vector<64x128xf32> -> vector<64x128xf32>
    %171 = arith.addf %164, %170 : vector<64x128xf32>
    %c2_152 = arith.constant 2 : index
    %c7_153 = arith.constant 7 : index
    %c0_154 = arith.constant 0 : index
    %172 = vector.load %arg16[%c2_152, %c7_153, %c0_154] : memref<10x24x128xf32, #tpu.memory_space<vmem>>, vector<8x8x128xf32>
    %173 = vector.shape_cast %172 : vector<8x8x128xf32> to vector<64x128xf32>
    %174 = arith.truncf %173 : vector<64x128xf32> to vector<64x128xbf16>
    %c6_155 = arith.constant 6 : index
    %c0_156 = arith.constant 0 : index
    %c0_157 = arith.constant 0 : index
    %175 = vector.load %arg10[%c6_155, %c0_156, %c0_157] : memref<9x128x128xbf16, #tpu.memory_space<vmem>>, vector<1x128x128xbf16>
    %176 = vector.shape_cast %175 : vector<1x128x128xbf16> to vector<128x128xbf16>
    %cst_158 = arith.constant dense<0.000000e+00> : vector<64x128xf32>
    %177 = tpu.matmul %174, %176, %cst_158 {dimension_numbers = #tpu.dot_dimension_numbers<[1], [0], [0], [1], [0, 0, 1, 1], [], []>} : vector<64x128xbf16>, vector<128x128xbf16>, vector<64x128xf32> -> vector<64x128xf32>
    %178 = arith.addf %171, %177 : vector<64x128xf32>
    %c2_159 = arith.constant 2 : index
    %c8_160 = arith.constant 8 : index
    %c0_161 = arith.constant 0 : index
    %179 = vector.load %arg16[%c2_159, %c8_160, %c0_161] : memref<10x24x128xf32, #tpu.memory_space<vmem>>, vector<8x8x128xf32>
    %180 = vector.shape_cast %179 : vector<8x8x128xf32> to vector<64x128xf32>
    %181 = arith.truncf %180 : vector<64x128xf32> to vector<64x128xbf16>
    %c7_162 = arith.constant 7 : index
    %c0_163 = arith.constant 0 : index
    %c0_164 = arith.constant 0 : index
    %182 = vector.load %arg10[%c7_162, %c0_163, %c0_164] : memref<9x128x128xbf16, #tpu.memory_space<vmem>>, vector<1x128x128xbf16>
    %183 = vector.shape_cast %182 : vector<1x128x128xbf16> to vector<128x128xbf16>
    %cst_165 = arith.constant dense<0.000000e+00> : vector<64x128xf32>
    %184 = tpu.matmul %181, %183, %cst_165 {dimension_numbers = #tpu.dot_dimension_numbers<[1], [0], [0], [1], [0, 0, 1, 1], [], []>} : vector<64x128xbf16>, vector<128x128xbf16>, vector<64x128xf32> -> vector<64x128xf32>
    %185 = arith.addf %178, %184 : vector<64x128xf32>
    %c2_166 = arith.constant 2 : index
    %c9_167 = arith.constant 9 : index
    %c0_168 = arith.constant 0 : index
    %186 = vector.load %arg16[%c2_166, %c9_167, %c0_168] : memref<10x24x128xf32, #tpu.memory_space<vmem>>, vector<8x8x128xf32>
    %187 = vector.shape_cast %186 : vector<8x8x128xf32> to vector<64x128xf32>
    %188 = arith.truncf %187 : vector<64x128xf32> to vector<64x128xbf16>
    %c8_169 = arith.constant 8 : index
    %c0_170 = arith.constant 0 : index
    %c0_171 = arith.constant 0 : index
    %189 = vector.load %arg10[%c8_169, %c0_170, %c0_171] : memref<9x128x128xbf16, #tpu.memory_space<vmem>>, vector<1x128x128xbf16>
    %190 = vector.shape_cast %189 : vector<1x128x128xbf16> to vector<128x128xbf16>
    %cst_172 = arith.constant dense<0.000000e+00> : vector<64x128xf32>
    %191 = tpu.matmul %188, %190, %cst_172 {dimension_numbers = #tpu.dot_dimension_numbers<[1], [0], [0], [1], [0, 0, 1, 1], [], []>} : vector<64x128xbf16>, vector<128x128xbf16>, vector<64x128xf32> -> vector<64x128xf32>
    %192 = arith.addf %185, %191 : vector<64x128xf32>
    %193 = vector.shape_cast %192 : vector<64x128xf32> to vector<8x8x128xf32>
    %c0_173 = arith.constant 0 : index
    %c0_174 = arith.constant 0 : index
    %c0_175 = arith.constant 0 : index
    %c0_176 = arith.constant 0 : index
    %194 = vector.load %arg12[%c0_173, %c0_174, %c0_175, %c0_176] : memref<1x8x8x128xf32, #tpu.memory_space<vmem>>, vector<1x8x8x128xf32>
    %195 = vector.shape_cast %194 : vector<1x8x8x128xf32> to vector<8x8x128xf32>
    %196 = vector.shape_cast %193 : vector<8x8x128xf32> to vector<1x8x8x128xf32>
    tpu.vector_store %arg12[%c0_173, %c0_174, %c0_175, %c0_176], %196 {strides = array<i32>} : memref<1x8x8x128xf32, #tpu.memory_space<vmem>>, vector<1x8x8x128xf32>,
    return
  }
  func.func @transform_0(%arg0: i32) -> (i32, i32, i32, i32) {
    %c0_i32 = arith.constant 0 : i32
    %c0_i32_0 = arith.constant 0 : i32
    %c0_i32_1 = arith.constant 0 : i32
    %c0_i32_2 = arith.constant 0 : i32
    return %arg0, %c0_i32, %c0_i32_0, %c0_i32_1 : i32, i32, i32, i32
  }
  func.func @transform_1(%arg0: i32) -> (i32, i32, i32, i32) {
    %c0_i32 = arith.constant 0 : i32
    %c0_i32_0 = arith.constant 0 : i32
    %c0_i32_1 = arith.constant 0 : i32
    %c0_i32_2 = arith.constant 0 : i32
    return %arg0, %c0_i32, %c0_i32_0, %c0_i32_1 : i32, i32, i32, i32
  }
  func.func @transform_2(%arg0: i32) -> (i32, i32, i32, i32) {
    %c0_i32 = arith.constant 0 : i32
    %c0_i32_0 = arith.constant 0 : i32
    %c0_i32_1 = arith.constant 0 : i32
    %c0_i32_2 = arith.constant 0 : i32
    return %arg0, %c0_i32, %c0_i32_0, %c0_i32_1 : i32, i32, i32, i32
  }
  func.func @transform_3(%arg0: i32) -> (i32, i32, i32, i32) {
    %c0_i32 = arith.constant 0 : i32
    %c0_i32_0 = arith.constant 0 : i32
    %c0_i32_1 = arith.constant 0 : i32
    %c0_i32_2 = arith.constant 0 : i32
    return %arg0, %c0_i32, %c0_i32_0, %c0_i32_1 : i32, i32, i32, i32
  }
  func.func @transform_4(%arg0: i32) -> (i32, i32) {
    %c0_i32 = arith.constant 0 : i32
    %c0_i32_0 = arith.constant 0 : i32
    %c0_i32_1 = arith.constant 0 : i32
    return %c0_i32, %c0_i32_0 : i32, i32
  }
  func.func @transform_5(%arg0: i32) -> (i32, i32) {
    %c0_i32 = arith.constant 0 : i32
    %c0_i32_0 = arith.constant 0 : i32
    %c0_i32_1 = arith.constant 0 : i32
    return %c0_i32, %c0_i32_0 : i32, i32
  }
  func.func @transform_6(%arg0: i32) -> (i32, i32, i32) {
    %c0_i32 = arith.constant 0 : i32
    %c0_i32_0 = arith.constant 0 : i32
    %c0_i32_1 = arith.constant 0 : i32
    %c0_i32_2 = arith.constant 0 : i32
    return %c0_i32, %c0_i32_0, %c0_i32_1 : i32, i32, i32
  }
  func.func @transform_7(%arg0: i32) -> (i32, i32) {
    %c0_i32 = arith.constant 0 : i32
    %c0_i32_0 = arith.constant 0 : i32
    %c0_i32_1 = arith.constant 0 : i32
    return %c0_i32, %c0_i32_0 : i32, i32
  }
  func.func @transform_8(%arg0: i32) -> (i32, i32) {
    %c0_i32 = arith.constant 0 : i32
    %c0_i32_0 = arith.constant 0 : i32
    %c0_i32_1 = arith.constant 0 : i32
    return %c0_i32, %c0_i32_0 : i32, i32
  }
  func.func @transform_9(%arg0: i32) -> (i32, i32, i32) {
    %c0_i32 = arith.constant 0 : i32
    %c0_i32_0 = arith.constant 0 : i32
    %c0_i32_1 = arith.constant 0 : i32
    %c0_i32_2 = arith.constant 0 : i32
    return %c0_i32, %c0_i32_0, %c0_i32_1 : i32, i32, i32
  }
  func.func @transform_10(%arg0: i32) -> (i32, i32) {
    %c0_i32 = arith.constant 0 : i32
    %c0_i32_0 = arith.constant 0 : i32
    %c0_i32_1 = arith.constant 0 : i32
    return %c0_i32, %c0_i32_0 : i32, i32
  }
  func.func @transform_11(%arg0: i32) -> (i32, i32, i32, i32) {
    %c0_i32 = arith.constant 0 : i32
    %c0_i32_0 = arith.constant 0 : i32
    %c0_i32_1 = arith.constant 0 : i32
    %c0_i32_2 = arith.constant 0 : i32
    return %arg0, %c0_i32, %c0_i32_0, %c0_i32_1 : i32, i32, i32, i32
  }
}

</mosaic_0001>

<bundles_post_ra>
// kernel: _lambda_.3
= control target key start
LH: loop header
LB: loop body
LE: loop exit
PB: predicated region body
PF: predicated region fallthrough
CT: control target
= control target key end

     0   :  { %s3604_s24 = smov 0   ;;  %s4535_s0 = inlined_call_operand.vmem [shape: f32[2,8,8,128], index: 0, kind: input, shape index: {}]   ;;  %s4536_s1 = inlined_call_operand.vmem [shape: f32[1,128], index: 1, kind: input, shape index: {}]   ;;  %s4537_s2 = inlined_call_operand.vmem [shape: f32[1,128], index: 2, kind: input, shape index: {}]   ;;  %s4538_s3 = inlined_call_operand.vmem [shape: bf16[9,128,128], index: 3, kind: input, shape index: {}]   ;;  %s4539_s4 = inlined_call_operand.vmem [shape: f32[1,128], index: 4, kind: input, shape index: {}]   ;;  %s4540_s5 = inlined_call_operand.vmem [shape: f32[1,128], index: 5, kind: input, shape index: {}]   ;;  %s4541_s6 = inlined_call_operand.vmem [shape: bf16[9,128,128], index: 6, kind: input, shape index: {}]   ;;  %s4542_s7 = inlined_call_operand.vmem [shape: f32[2,8,8,128], index: 7, kind: output, shape index: {}]  }
   0x1 LB: > { %s2528_s25 = sadd.s32 4294967295, %s3561_s24   ;;  %p2532_p0 = scmp.ge.s32.totalorder %s3561_s24, 1  ;;  %s3561_s24 = sphi %s3604_s24, %s17_s24  }
   0x2   : > { %p237_p1 = scmp.lt.s32.totalorder %s3561_s24, 3 }
   0x4   : > { %p238_p2 = pnand %p2532_p0, %p237_p1 }
   0x5   : > { %p269_p3 = scmp.lt.s32.totalorder (!%p238_p2), %s2528_s25, 1 }
   0x6   : > { %241 = sbr.rel (%p238_p2) target bundleno = 615 (0x267), region = 48 }
   0xb   : > { %v3388_v0 = vld [vmem:[%s4538_s3 + $0x78] sm:$0xff]  ;;  %v3563_v2 = vmov 0.0   ;;  %v3387_v3 = vld [vmem:[%s4538_s3 + $0x70] sm:$0xff]  ;;  %s4544_s25 = smov (!%p269_p3, %s2528_s25), 1  ;;  %v3386_v5 = vld [vmem:[%s4538_s3 + $0x68] sm:$0xff] }
   0xc   : > { %v3380_v1 = vld [vmem:[%s4538_s3 + $0x38] sm:$0xff]  ;;  %319 = vst [vmem:[#allocation2] sm:$0xff] %v3563_v2  ;;  %3517 = vmatpush.bf16.msra.mxu2 %v3388_v0  ;;  %v3379_v4 = vld [vmem:[%s4538_s3 + $0x30] sm:$0xff]  ;;  %463 = vmatpush.bf16.msra.mxu0 %v3388_v0  ;;  %s3371_s13 = sshll.u32 %s4544_s25, 6  ;;  %v3378_v6 = vld [vmem:[%s4538_s3 + $0x28] sm:$0xff] }
   0xd   : > { %3525 = vmatpush.bf16.msra.mxu3 %v3380_v1  ;;  %320 = vst [vmem:[#allocation2 + $0x8] sm:$0xff] %v3563_v2  ;;  %540 = vmatpush.bf16.msra.mxu1 %v3380_v1  ;;  %s3642_s18 = scalar_lea.vmem %s4535_s0, %s3371_s13  ;;  %v3650_v9 = vld [vmem:[%s4536_s1] ss:$0 sm:$0xff]  ;;  %v3384_v19 = vld [vmem:[%s4538_s3 + $0x58] sm:$0xff]  ;;  %v3383_v22 = vld [vmem:[%s4538_s3 + $0x50] sm:$0xff]  ;;  %s4495_s20 = scalar_lea.vmem %s4542_s7, %s3371_s13 }
   0xe   : > { %321 = vst [vmem:[#allocation2 + $0x10] sm:$0xff] %v3563_v2  ;;  %v282_v7 = vld [vmem:[%s3642_s18 + $0x18] sm:$0xff]  ;;  %v283_v8 = vld [vmem:[%s3642_s18 + $0x20] sm:$0xff]  ;;  %v3375_v23 = vld [vmem:[%s4538_s3 + $0x10] sm:$0xff] }
   0xf   : > { %322 = vst [vmem:[#allocation2 + $0x18] sm:$0xff] %v3563_v2  ;;  %v3656_v10 = vld [vmem:[%s4537_s2] ss:$0 sm:$0xff]  ;;  %v295_v11 = vmul.f32 %v3650_v9, %v282_v7  ;;  %v296_v12 = vmul.f32 %v3650_v9, %v283_v8  ;;  %v3376_v20 = vld [vmem:[%s4538_s3 + $0x18] sm:$0xff]  ;;  %v3382_v25 = vld [vmem:[%s4538_s3 + $0x48] sm:$0xff] }
  0x10   : > { %324 = vst [vmem:[#allocation2 + $0x28] sm:$0xff] %v3563_v2  ;;  %3518 = vmatpush.bf16.msra.mxu2 %v3387_v3  ;;  %464 = vmatpush.bf16.msra.mxu0 %v3387_v3  ;;  %v3385_v13 = vld [vmem:[%s4538_s3 + $0x60] sm:$0xff]  ;;  %v3374_v26 = vld [vmem:[%s4538_s3 + $0x8] sm:$0xff]  ;;  %v3396_v32 = vld [vmem:[%s4538_s3 + $0xb8] sm:$0xff] }
  0x11   : > { %3526 = vmatpush.bf16.msra.mxu3 %v3379_v4  ;;  %325 = vst [vmem:[#allocation2 + $0x30] sm:$0xff] %v3563_v2  ;;  %541 = vmatpush.bf16.msra.mxu1 %v3379_v4  ;;  %v3377_v14 = vld [vmem:[%s4538_s3 + $0x20] sm:$0xff]  ;;  %v306_v15 = vadd.f32 %v3656_v10, %v295_v11  ;;  %v307_v16 = vadd.f32 %v3656_v10, %v296_v12  ;;  %v3404_v33 = vld [vmem:[%s4538_s3 + $0xf8] sm:$0xff]  ;;  %v284_v40 = vld [vmem:[%s3642_s18 + $0x28] sm:$0xff] }
  0x12   : > { %327 = vst [vmem:[#allocation2 + $0x40] sm:$0xff] %v3563_v2  ;;  %v279_v21 = vld [vmem:[%s3642_s18] sm:$0xff]  ;;  %v3420_v38 = vld [vmem:[%s4538_s3 + $0x178] sm:$0xff]  ;;  %v3395_v41 = vld [vmem:[%s4538_s3 + $0xb0] sm:$0xff]  ;;  %v297_v48 = vmul.f32 %v3650_v9, %v284_v40 }
  0x13   : > { %328 = vst [vmem:[#allocation2 + $0x48] sm:$0xff] %v3563_v2  ;;  %v3673_v17 = vmax.f32 %v306_v15, 0.0  ;;  %v3675_v18 = vmax.f32 %v307_v16, 0.0  ;;  %v292_v24 = vmul.f32 %v3650_v9, %v279_v21  ;;  %v3381_v28 = vld [vmem:[%s4538_s3 + $0x40] sm:$0xff]  ;;  %v3412_v39 = vld [vmem:[%s4538_s3 + $0x138] sm:$0xff]  ;;  %v3403_v42 = vld [vmem:[%s4538_s3 + $0xf0] sm:$0xff] }
  0x14   : > { %330 = vst [vmem:[#allocation2 + $0x58] sm:$0xff] %v3563_v2  ;;  %3519 = vmatpush.bf16.msra.mxu2 %v3386_v5  ;;  %465 = vmatpush.bf16.msra.mxu0 %v3386_v5  ;;  %v3373_v29 = vld [vmem:[%s4538_s3] sm:$0xff]  ;;  %v285_v43 = vld [vmem:[%s3642_s18 + $0x30] sm:$0xff]  ;;  %v280_v44 = vld [vmem:[%s3642_s18 + $0x8] sm:$0xff]  ;;  %v308_v55 = vadd.f32 %v3656_v10, %v297_v48 }
  0x15   : > { %3527 = vmatpush.bf16.msra.mxu3 %v3378_v6  ;;  %331 = vst [vmem:[#allocation2 + $0x60] sm:$0xff] %v3563_v2  ;;  %542 = vmatpush.bf16.msra.mxu1 %v3378_v6  ;;  %v303_v27 = vadd.f32 %v3656_v10, %v292_v24  ;;  %v3735_v35 = vpack.c.bf16 %v3675_v18, %v3673_v17  ;;  %v281_v45 = vld [vmem:[%s3642_s18 + $0x10] sm:$0xff]  ;;  %v3394_v50 = vld [vmem:[%s4538_s3 + $0xa8] sm:$0xff]  ;;  %v3393_v57 = vld [vmem:[%s4538_s3 + $0xa0] sm:$0xff] }
  0x16   : > { %333 = vst [vmem:[#allocation2 + $0x70] sm:$0xff] %v3563_v2  ;;  %v3419_v46 = vld [vmem:[%s4538_s3 + $0x170] sm:$0xff]  ;;  %v298_v49 = vmul.f32 %v3650_v9, %v285_v43  ;;  %v3402_v51 = vld [vmem:[%s4538_s3 + $0xe8] sm:$0xff]  ;;  %v293_v52 = vmul.f32 %v3650_v9, %v280_v44  ;;  %v294_v53 = vmul.f32 %v3650_v9, %v281_v45  ;;  %v3401_v58 = vld [vmem:[%s4538_s3 + $0xe0] sm:$0xff]  ;;  %v3811_v63 = vmax.f32 %v308_v55, 0.0 }
  0x17   : > { %334 = vst [vmem:[#allocation2 + $0x78] sm:$0xff] %v3563_v2  ;;  %v3731_v34 = vmax.f32 %v303_v27, 0.0  ;;  %v3411_v47 = vld [vmem:[%s4538_s3 + $0x130] sm:$0xff]  ;;  %v3410_v54 = vld [vmem:[%s4538_s3 + $0x128] sm:$0xff]  ;;  %v3409_v62 = vld [vmem:[%s4538_s3 + $0x120] sm:$0xff] }
  0x18   : > { %336 = vst [vmem:[#allocation2 + $0x88] sm:$0xff] %v3563_v2  ;;  %3520 = vmatpush.bf16.msra.mxu2 %v3385_v13  ;;  %466 = vmatpush.bf16.msra.mxu0 %v3385_v13  ;;  %v309_v56 = vadd.f32 %v3656_v10, %v298_v49  ;;  %v304_v59 = vadd.f32 %v3656_v10, %v293_v52  ;;  %v3418_v61 = vld [vmem:[%s4538_s3 + $0x168] sm:$0xff]  ;;  %v3417_v1 = vld [vmem:[%s4538_s3 + $0x160] sm:$0xff]  ;;  %v3392_v3 = vld [vmem:[%s4538_s3 + $0x98] sm:$0xff] }
  0x19   : > { %3528 = vmatpush.bf16.msra.mxu3 %v3377_v14  ;;  %353 = vst [vmem:[#allocation2 + $0x68] sm:$0xff] %v3673_v17  ;;  %543 = vmatpush.bf16.msra.mxu1 %v3377_v14  ;;  %v394_v37 = vpack.c.bf16 %v3731_v34, %v3563_v2  ;;  %v305_v60 = vadd.f32 %v3656_v10, %v294_v53  ;;  %v3400_v4 = vld [vmem:[%s4538_s3 + $0xd8] sm:$0xff]  ;;  %v3391_v13 = vld [vmem:[%s4538_s3 + $0x90] sm:$0xff]  ;;  %v3398_v21 = vld [vmem:[%s4538_s3 + $0xc8] sm:$0xff] }
  0x1a   : > { %354 = vst [vmem:[#allocation2 + $0x80] sm:$0xff] %v3675_v18  ;;  %v3813_v0 = vmax.f32 %v309_v56, 0.0  ;;  %v3825_v5 = vmax.f32 %v304_v59, 0.0  ;;  %v3408_v11 = vld [vmem:[%s4538_s3 + $0x118] sm:$0xff]  ;;  %v3399_v14 = vld [vmem:[%s4538_s3 + $0xd0] sm:$0xff]  ;;  %v3389_v27 = vld [vmem:[%s4538_s3 + $0x80] sm:$0xff] }
  0x1b   : > { %337 = vst [vmem:[#allocation2 + $0x90] sm:$0xff] %v3563_v2  ;;  %v3827_v6 = vmax.f32 %v305_v60, 0.0  ;;  %v3416_v12 = vld [vmem:[%s4538_s3 + $0x158] sm:$0xff]  ;;  %v3407_v15 = vld [vmem:[%s4538_s3 + $0x110] sm:$0xff]  ;;  %v3405_v40 = vld [vmem:[%s4538_s3 + $0x100] sm:$0xff] }
  0x1c   : > { %339 = vst [vmem:[#allocation2 + $0xa0] sm:$0xff] %v3563_v2  ;;  %3521 = vmatpush.bf16.msra.mxu2 %v3384_v19  ;;  %467 = vmatpush.bf16.msra.mxu0 %v3384_v19  ;;  %v3832_v7 = vpack.c.bf16 %v3813_v0, %v3811_v63  ;;  %v3415_v16 = vld [vmem:[%s4538_s3 + $0x150] sm:$0xff]  ;;  %v358_v19 = vld [vmem:[#allocation2 + $0x7] sm:$0xff]  ;;  %v805_v44 = vpack.c.bf16 %v3825_v5, %v3731_v34 }
  0x1d   : > { %3529 = vmatpush.bf16.msra.mxu3 %v3376_v20  ;;  %340 = vst [vmem:[#allocation2 + $0xa8] sm:$0xff] %v3563_v2  ;;  %544 = vmatpush.bf16.msra.mxu1 %v3376_v20  ;;  %v3837_v8 = vpack.c.bf16 %v3827_v6, %v3825_v5  ;;  %v3390_v20 = vld [vmem:[%s4538_s3 + $0x88] sm:$0xff]  ;;  %v3435_v43 = vld [vmem:[%s4538_s3 + $0x1f0] sm:$0xff]  ;;  %v3433_v53 = vld [vmem:[%s4538_s3 + $0x1e0] sm:$0xff] }
  0x1e   : > { %342 = vst [vmem:[#allocation2 + $0xb8] sm:$0xff] %v3563_v2  ;;  %v3427_v45 = vld [vmem:[%s4538_s3 + $0x1b0] sm:$0xff]  ;;  %v3441_v59 = vld [vmem:[%s4538_s3 + $0x220] sm:$0xff] }
  0x1f   : > { %343 = vst [vmem:[#allocation2 + $0xc0] sm:$0xff] %v3563_v2 }
  0x20   : > { %345 = vst [vmem:[#allocation2 + $0xd0] sm:$0xff] %v3563_v2  ;;  %3522 = vmatpush.bf16.msra.mxu2 %v3383_v22  ;;  %468 = vmatpush.bf16.msra.mxu0 %v3383_v22  ;;  %v3719_v30 = vld [vmem:[#allocation2 + $0x67] sm:$0xff] }
  0x21   : > { %3530 = vmatpush.bf16.msra.mxu3 %v3375_v23  ;;  %346 = vst [vmem:[#allocation2 + $0xd8] sm:$0xff] %v3563_v2  ;;  %545 = vmatpush.bf16.msra.mxu1 %v3375_v23  ;;  %v3721_v31 = vld [vmem:[#allocation2 + $0x7f] sm:$0xff] }
  0x22   : > { %347 = vst [vmem:[#allocation2 + $0xe0] sm:$0xff] %v3563_v2  ;;  %v3740_v36 = vpack.c.bf16 %v3721_v31, %v3719_v30 }
  0x23   : > { %348 = vst [vmem:[#allocation2 + $0xe8] sm:$0xff] %v3563_v2 }
  0x24   : > { %1400 = vst [vmem:[#allocation3] sm:$0xff] %v3563_v2  ;;  %3523 = vmatpush.bf16.msra.mxu2 %v3382_v25  ;;  %469 = vmatpush.bf16.msra.mxu0 %v3382_v25  ;;  %v3406_v25 = vld [vmem:[%s4538_s3 + $0x108] sm:$0xff] }
  0x25   : > { %3531 = vmatpush.bf16.msra.mxu3 %v3374_v26  ;;  %1401 = vst [vmem:[#allocation3 + $0x8] sm:$0xff] %v3563_v2  ;;  %546 = vmatpush.bf16.msra.mxu1 %v3374_v26 }
  0x26   : > { %1402 = vst [vmem:[#allocation3 + $0x10] sm:$0xff] %v3563_v2 }
  0x27   : > { %1403 = vst [vmem:[#allocation3 + $0x18] sm:$0xff] %v3563_v2 }
  0x28   : > { %1405 = vst [vmem:[#allocation3 + $0x28] sm:$0xff] %v3563_v2  ;;  %3524 = vmatpush.bf16.msra.mxu2 %v3381_v28  ;;  %470 = vmatpush.bf16.msra.mxu0 %v3381_v28  ;;  %v3397_v28 = vld [vmem:[%s4538_s3 + $0xc0] sm:$0xff] }
  0x29   : > { %3532 = vmatpush.bf16.msra.mxu3 %v3373_v29  ;;  %1406 = vst [vmem:[#allocation3 + $0x30] sm:$0xff] %v3563_v2  ;;  %547 = vmatpush.bf16.msra.mxu1 %v3373_v29 }
  0x2a   : > { %1408 = vst [vmem:[#allocation3 + $0x40] sm:$0xff] %v3563_v2 }
  0x2b   : > { %1409 = vst [vmem:[#allocation3 + $0x48] sm:$0xff] %v3563_v2  ;;  %481 = vmatmul.bf16.vlgmr.msra.gmra.mxu2 %v3735_v35  ;;  %471 = vmatmul.bf16.vlgmr.msra.gmra.mxu0 %v394_v37  ;;  %v569_v37 = vld [vmem:[#allocation2 + $0x9] sm:$0xff] }
  0x2c   : > { %646 = vmatpush.bf16.msrb.mxu2 %v3396_v32  ;;  %1411 = vst [vmem:[#allocation3 + $0x58] sm:$0xff] %v3563_v2  ;;  %558 = vmatmul.bf16.vlgmr.msra.gmra.mxu3 %v3740_v36  ;;  %v3428_v32 = vld [vmem:[%s4538_s3 + $0x1b8] sm:$0xff] }
  0x2d   : > { %760 = vmatpush.bf16.msrb.mxu3 %v3404_v33  ;;  %1412 = vst [vmem:[#allocation3 + $0x60] sm:$0xff] %v3563_v2  ;;  %988 = vmatpush.bf16.msrb.mxu1 %v3420_v38  ;;  %v3436_v33 = vld [vmem:[%s4538_s3 + $0x1f8] sm:$0xff] }
  0x2e   : > { %1414 = vst [vmem:[#allocation3 + $0x70] sm:$0xff] %v3563_v2  ;;  %874 = vmatpush.bf16.msrb.mxu0 %v3412_v39  ;;  %v3414_v39 = vld [vmem:[%s4538_s3 + $0x148] sm:$0xff] }
  0x2f   : > { %1415 = vst [vmem:[#allocation3 + $0x78] sm:$0xff] %v3563_v2 }
  0x30   : > { %647 = vmatpush.bf16.msrb.mxu2 %v3395_v41  ;;  %1417 = vst [vmem:[#allocation3 + $0x88] sm:$0xff] %v3563_v2  ;;  %v3444_v41 = vld [vmem:[%s4538_s3 + $0x238] sm:$0xff] }
  0x31   : > { %761 = vmatpush.bf16.msrb.mxu3 %v3403_v42  ;;  %1418 = vst [vmem:[#allocation3 + $0x90] sm:$0xff] %v3563_v2  ;;  %989 = vmatpush.bf16.msrb.mxu1 %v3419_v46  ;;  %v3413_v46 = vld [vmem:[%s4538_s3 + $0x140] sm:$0xff] }
  0x32   : > { %1420 = vst [vmem:[#allocation3 + $0xa0] sm:$0xff] %v3563_v2  ;;  %875 = vmatpush.bf16.msrb.mxu0 %v3411_v47  ;;  %v3443_v47 = vld [vmem:[%s4538_s3 + $0x230] sm:$0xff] }
  0x33   : > { %1421 = vst [vmem:[#allocation3 + $0xa8] sm:$0xff] %v3563_v2 }
  0x34   : > { %648 = vmatpush.bf16.msrb.mxu2 %v3394_v50  ;;  %1423 = vst [vmem:[#allocation3 + $0xb8] sm:$0xff] %v3563_v2  ;;  %v3426_v50 = vld [vmem:[%s4538_s3 + $0x1a8] sm:$0xff] }
  0x35   : > { %762 = vmatpush.bf16.msrb.mxu3 %v3402_v51  ;;  %1424 = vst [vmem:[#allocation3 + $0xc0] sm:$0xff] %v3563_v2  ;;  %990 = vmatpush.bf16.msrb.mxu1 %v3418_v61  ;;  %v3442_v51 = vld [vmem:[%s4538_s3 + $0x228] sm:$0xff] }
  0x36   : > { %1426 = vst [vmem:[#allocation3 + $0xd0] sm:$0xff] %v3563_v2  ;;  %876 = vmatpush.bf16.msrb.mxu0 %v3410_v54  ;;  %v3425_v54 = vld [vmem:[%s4538_s3 + $0x1a0] sm:$0xff] }
  0x37   : > { %1427 = vst [vmem:[#allocation3 + $0xd8] sm:$0xff] %v3563_v2 }
  0x38   : > { %649 = vmatpush.bf16.msrb.mxu2 %v3393_v57  ;;  %1428 = vst [vmem:[#allocation3 + $0xe0] sm:$0xff] %v3563_v2  ;;  %v3424_v57 = vld [vmem:[%s4538_s3 + $0x198] sm:$0xff] }
  0x39   : > { %763 = vmatpush.bf16.msrb.mxu3 %v3401_v58  ;;  %1429 = vst [vmem:[#allocation3 + $0xe8] sm:$0xff] %v3563_v2  ;;  %991 = vmatpush.bf16.msrb.mxu1 %v3417_v1  ;;  %v3432_v58 = vld [vmem:[%s4538_s3 + $0x1d8] sm:$0xff]  ;;  %v806_v1 = vpack.c.bf16 %v3673_v17, %v3827_v6 }
  0x3a   : > { %350 = vst [vmem:[#allocation2 + $0x20] sm:$0xff] %v3731_v34  ;;  %877 = vmatpush.bf16.msrb.mxu0 %v3409_v62  ;;  %v3434_v34 = vld [vmem:[%s4538_s3 + $0x1e8] sm:$0xff]  ;;  %v3431_v62 = vld [vmem:[%s4538_s3 + $0x1d0] sm:$0xff] }
  0x3b   : > { %355 = vst [vmem:[#allocation2 + $0x98] sm:$0xff] %v3811_v63  ;;  %486 = vmatmul.bf16.gmra.mxu2 %v3832_v7  ;;  %476 = vmatmul.bf16.gmra.mxu0 %v3837_v8 }
  0x3c   : > { %650 = vmatpush.bf16.msrb.mxu2 %v3392_v3  ;;  %356 = vst [vmem:[#allocation2 + $0xb0] sm:$0xff] %v3813_v0  ;;  %v3423_v3 = vld [vmem:[%s4538_s3 + $0x190] sm:$0xff] }
  0x3d   : > { %764 = vmatpush.bf16.msrb.mxu3 %v3400_v4  ;;  %351 = vst [vmem:[#allocation2 + $0x38] sm:$0xff] %v3825_v5  ;;  %992 = vmatpush.bf16.msrb.mxu1 %v3416_v12  ;;  %v3440_v4 = vld [vmem:[%s4538_s3 + $0x218] sm:$0xff] }
  0x3e   : > { %352 = vst [vmem:[#allocation2 + $0x50] sm:$0xff] %v3827_v6  ;;  %878 = vmatpush.bf16.msrb.mxu0 %v3408_v11  ;;  %v286_v11 = vld [vmem:[%s3642_s18 + $0x38] sm:$0xff] }
  0x3f   : > { %v299_v17 = vmul.f32 %v3650_v9, %v286_v11  ;;  %v914_v9 = vld [vmem:[#allocation2 + $0x69] sm:$0xff]  ;;  %v3449_v11 = vld [vmem:[%s4541_s6 + $0x20] sm:$0xff] }
  0x40   : > { %651 = vmatpush.bf16.msrb.mxu2 %v3391_v13  ;;  %v574_v13 = vld [vmem:[#allocation2 + $0x81] sm:$0xff] }
  0x41   : > { %765 = vmatpush.bf16.msrb.mxu3 %v3399_v14  ;;  %v359_v22 = vld [vmem:[#allocation2 + $0x1f] sm:$0xff]  ;;  %993 = vmatpush.bf16.msrb.mxu1 %v3415_v16  ;;  %v310_v6 = vadd.f32 %v3656_v10, %v299_v17  ;;  %v3430_v16 = vld [vmem:[%s4538_s3 + $0x1c8] sm:$0xff] }
  0x42   : > { %v366_v23 = vpack.c.bf16 %v359_v22, %v358_v19  ;;  %v3870_v24 = vld [vmem:[#allocation2 + $0x97] sm:$0xff]  ;;  %879 = vmatpush.bf16.msrb.mxu0 %v3407_v15  ;;  %v3893_v38 = vld [vmem:[#allocation2 + $0x21] sm:$0xff]  ;;  %v579_v19 = vpack.c.bf16 %v574_v13, %v914_v9 }
  0x43   : > { %v3875_v26 = vld [vmem:[#allocation2 + $0xaf] sm:$0xff]  ;;  %v577_v42 = vpack.c.bf16 %v3893_v38, %v569_v37  ;;  %v3963_v14 = vmax.f32 %v310_v6, 0.0  ;;  %v3429_v10 = vld [vmem:[%s4538_s3 + $0x1c0] sm:$0xff] }
  0x44   : > { %652 = vmatpush.bf16.msrb.mxu2 %v3390_v20  ;;  %548 = vmatmul.bf16.vlgmr.msra.gmra.mxu1 %v366_v23  ;;  %v3885_v29 = vpack.c.bf16 %v3875_v26, %v3870_v24  ;;  %v360_v48 = vld [vmem:[#allocation2 + $0x37] sm:$0xff]  ;;  %v3422_v15 = vld [vmem:[%s4538_s3 + $0x188] sm:$0xff]  ;;  %v807_v20 = vpack.c.bf16 %v3811_v63, %v3675_v18  ;;  %v3437_v18 = vld [vmem:[%s4538_s3 + $0x200] sm:$0xff] }
  0x45   : > { %766 = vmatpush.bf16.msrb.mxu3 %v3398_v21  ;;  %994 = vmatpush.bf16.msrb.mxu1 %v3414_v39  ;;  %v361_v49 = vld [vmem:[#allocation2 + $0x4f] sm:$0xff]  ;;  %v691_v55 = vpack.c.bf16 %v360_v48, %v359_v22  ;;  %v912_v60 = vld [vmem:[#allocation2 + $0x39] sm:$0xff]  ;;  %357 = vst [vmem:[#allocation2 + $0xc8] sm:$0xff] %v3963_v14 }
  0x46   : > { %563 = vmatmul.bf16.gmra.mxu3 %v3885_v29  ;;  %880 = vmatpush.bf16.msrb.mxu0 %v3406_v25  ;;  %v3929_v52 = vpack.c.bf16 %v361_v49, %v360_v48  ;;  %v572_v56 = vld [vmem:[#allocation2 + $0x51] sm:$0xff]  ;;  %v919_v5 = vpack.c.bf16 %v912_v60, %v3893_v38  ;;  %v692_v12 = vpack.c.bf16 %v3719_v30, %v361_v49  ;;  %v3421_v21 = vld [vmem:[%s4538_s3 + $0x180] sm:$0xff]  ;;  %v3438_v22 = vld [vmem:[%s4538_s3 + $0x208] sm:$0xff] }
  0x47   : > { %v578_v61 = vpack.c.bf16 %v572_v56, %v912_v60  ;;  %v3439_v30 = vld [vmem:[%s4538_s3 + $0x210] sm:$0xff]  ;;  %v920_v23 = vpack.c.bf16 %v914_v9, %v572_v56  ;;  %v693_v25 = vpack.c.bf16 %v3870_v24, %v3721_v31 }
  0x48   : > { %653 = vmatpush.bf16.msrb.mxu2 %v3389_v27  ;;  %v576_v63 = vld [vmem:[#allocation2 + $0xb1] sm:$0xff]  ;;  %v916_v27 = vld [vmem:[#allocation2 + $0x99] sm:$0xff] }
  0x49   : > { %767 = vmatpush.bf16.msrb.mxu3 %v3397_v28  ;;  %995 = vmatpush.bf16.msrb.mxu1 %v3413_v46  ;;  %v580_v28 = vpack.c.bf16 %v576_v63, %v916_v27  ;;  %v921_v37 = vpack.c.bf16 %v916_v27, %v574_v13  ;;  %v1151_v46 = vpack.c.bf16 0.0, %v3963_v14  ;;  %v3467_v9 = vld [vmem:[%s4541_s6 + $0xb0] sm:$0xff] }
  0x4a   : > { %881 = vmatpush.bf16.msrb.mxu0 %v3405_v40 }
  0x4b   : > { %654 = vmatmul.bf16.vlgmr.msrb.gmra.mxu2 %v577_v42  ;;  %v1033_v42 = vld [vmem:[#allocation2 + $0xdf] sm:$0xff] }
  0x4c   : > { %1103 = vmatpush.bf16.msra.mxu2 %v3428_v32  ;;  %v808_v32 = vpack.c.bf16 %v3963_v14, %v3813_v0  ;;  %v918_v31 = vld [vmem:[#allocation2 + $0xc9] sm:$0xff]  ;;  %v3448_v14 = vld [vmem:[%s4541_s6 + $0x18] sm:$0xff] }
  0x4d   : > { %1217 = vmatpush.bf16.msra.mxu3 %v3436_v33  ;;  %882 = vmatmul.bf16.vlgmr.msrb.gmra.mxu0 %v805_v44  ;;  %v690_v33 = vld [vmem:[#allocation2 + $0xc7] sm:$0xff]  ;;  %v922_v24 = vpack.c.bf16 %v918_v31, %v576_v63 }
  0x4e   : > { %1331 = vmatpush.bf16.msra.mxu0 %v3444_v41  ;;  %v694_v38 = vpack.c.bf16 %v690_v33, %v3875_v26 }
  0x50   : > { %1104 = vmatpush.bf16.msra.mxu2 %v3427_v45 }
  0x51   : > { %1218 = vmatpush.bf16.msra.mxu3 %v3435_v43 }
  0x52   : > { %1332 = vmatpush.bf16.msra.mxu0 %v3443_v47 }
  0x54   : > { %1105 = vmatpush.bf16.msra.mxu2 %v3426_v50  ;;  %553 = vmatmul.bf16.gmra.mxu1 %v3929_v52 }
  0x55   : > { %1219 = vmatpush.bf16.msra.mxu3 %v3434_v34 }
  0x56   : > { %1333 = vmatpush.bf16.msra.mxu0 %v3442_v51  ;;  %768 = vmatmul.bf16.vlgmr.msrb.gmra.mxu3 %v691_v55 }
  0x58   : > { %1106 = vmatpush.bf16.msra.mxu2 %v3425_v54 }
  0x59   : > { %1220 = vmatpush.bf16.msra.mxu3 %v3433_v53  ;;  %v3452_v53 = vld [vmem:[%s4541_s6 + $0x38] sm:$0xff] }
  0x5a   : > { %1334 = vmatpush.bf16.msra.mxu0 %v3441_v59  ;;  %1515 = vmatpush.bf16.msra.mxu1 %v3452_v53 }
  0x5b   : > { %659 = vmatmul.bf16.gmra.mxu2 %v578_v61 }
  0x5c   : > { %1107 = vmatpush.bf16.msra.mxu2 %v3424_v57  ;;  %v3451_v57 = vld [vmem:[%s4541_s6 + $0x30] sm:$0xff] }
  0x5d   : > { %1221 = vmatpush.bf16.msra.mxu3 %v3432_v58  ;;  %887 = vmatmul.bf16.gmra.mxu0 %v806_v1 }
  0x5e   : > { %1335 = vmatpush.bf16.msra.mxu0 %v3440_v4  ;;  %1516 = vmatpush.bf16.msra.mxu1 %v3451_v57  ;;  %v3463_v57 = vld [vmem:[%s4541_s6 + $0x90] sm:$0xff] }
  0x60   : > { %1108 = vmatpush.bf16.msra.mxu2 %v3423_v3 }
  0x61   : > { %1222 = vmatpush.bf16.msra.mxu3 %v3431_v62  ;;  %v3450_v62 = vld [vmem:[%s4541_s6 + $0x28] sm:$0xff] }
  0x62   : > { %1336 = vmatpush.bf16.msra.mxu0 %v3439_v30  ;;  %1517 = vmatpush.bf16.msra.mxu1 %v3450_v62  ;;  %v3459_v30 = vld [vmem:[%s4541_s6 + $0x70] sm:$0xff] }
  0x64   : > { %996 = vmatmul.bf16.vlgmr.msrb.gmra.mxu1 %v919_v5  ;;  %1109 = vmatpush.bf16.msra.mxu2 %v3422_v15  ;;  %v3460_v15 = vld [vmem:[%s4541_s6 + $0x78] sm:$0xff] }
  0x65   : > { %1223 = vmatpush.bf16.msra.mxu3 %v3430_v16  ;;  %v3468_v16 = vld [vmem:[%s4541_s6 + $0xb8] sm:$0xff] }
  0x66   : > { %773 = vmatmul.bf16.gmra.mxu3 %v692_v12  ;;  %1337 = vmatpush.bf16.msra.mxu0 %v3438_v22  ;;  %v3447_v22 = vld [vmem:[%s4541_s6 + $0x10] sm:$0xff] }
  0x67   : > { %1518 = vmatpush.bf16.msra.mxu1 %v3449_v11  ;;  %v3453_v11 = vld [vmem:[%s4541_s6 + $0x40] sm:$0xff] }
  0x68   : > { %1110 = vmatpush.bf16.msra.mxu2 %v3421_v21 }
  0x69   : > { %1224 = vmatpush.bf16.msra.mxu3 %v3429_v10 }
  0x6a   : > { %1338 = vmatpush.bf16.msra.mxu0 %v3437_v18  ;;  %v3457_v18 = vld [vmem:[%s4541_s6 + $0x60] sm:$0xff] }
  0x6b   : > { %664 = vmatmul.bf16.gmra.mxu2 %v579_v19  ;;  %1519 = vmatpush.bf16.msra.mxu1 %v3448_v14 }
  0x6c   : > { %1629 = vmatpush.bf16.msrb.mxu2 %v3460_v15 }
  0x6d   : > { %892 = vmatmul.bf16.gmra.mxu0 %v807_v20  ;;  %1743 = vmatpush.bf16.msrb.mxu3 %v3468_v16 }
  0x6f   : > { %1520 = vmatpush.bf16.msra.mxu1 %v3447_v22  ;;  %v3484_v22 = vld [vmem:[%s4541_s6 + $0x138] sm:$0xff] }
  0x70   : > { %1630 = vmatpush.bf16.msrb.mxu2 %v3459_v30 }
  0x71   : > { %1744 = vmatpush.bf16.msrb.mxu3 %v3467_v9 }
  0x74   : > { %1001 = vmatmul.bf16.gmra.mxu1 %v920_v23  ;;  %v3458_v23 = vld [vmem:[%s4541_s6 + $0x68] sm:$0xff] }
  0x75   : > { %1631 = vmatpush.bf16.msrb.mxu2 %v3458_v23 }
  0x76   : > { %778 = vmatmul.bf16.gmra.mxu3 %v693_v25 }
  0x79   : > { %1632 = vmatpush.bf16.msrb.mxu2 %v3457_v18 }
  0x7b   : > { %669 = vmatmul.bf16.gmra.mxu2 %v580_v28 }
  0x7d   : > { %897 = vmatmul.bf16.gmra.mxu0 %v808_v32  ;;  %v3466_v32 = vld [vmem:[%s4541_s6 + $0xa8] sm:$0xff] }
  0x7e   : > { %1745 = vmatpush.bf16.msrb.mxu3 %v3466_v32 }
  0x84   : > { %1006 = vmatmul.bf16.gmra.mxu1 %v921_v37  ;;  %v3456_v37 = vld [vmem:[%s4541_s6 + $0x58] sm:$0xff] }
  0x85   : > { %1633 = vmatpush.bf16.msrb.mxu2 %v3456_v37 }
  0x86   : > { %783 = vmatmul.bf16.gmra.mxu3 %v694_v38  ;;  %v3446_v38 = vld [vmem:[%s4541_s6 + $0x8] sm:$0xff] }
  0x87   : > { %1521 = vmatpush.bf16.msra.mxu1 %v3446_v38 }
  0x8b   : > { %1111 = vmatmul.bf16.vlgmr.msra.gmra.mxu2 %v3929_v52 }
  0x8d   : > { %1339 = vmatmul.bf16.vlgmr.msra.gmra.mxu0 %v578_v61 }
  0x94   : > { %1011 = vmatmul.bf16.gmra.mxu1 %v922_v24  ;;  %v3475_v24 = vld [vmem:[%s4541_s6 + $0xf0] sm:$0xff] }
  0x96   : > { %1225 = vmatmul.bf16.vlgmr.msra.gmra.mxu3 %v3837_v8  ;;  %v1261_v8 = vld [vmem:[#allocation2 + $0xe1] sm:$0xff] }
  0x97   : > { %v1265_v44 = vpack.c.bf16 %v1261_v8, %v918_v31  ;;  %v3465_v31 = vld [vmem:[%s4541_s6 + $0xa0] sm:$0xff] }
  0x98   : > { %1746 = vmatpush.bf16.msrb.mxu3 %v3465_v31 }
  0x9b   : > { %1116 = vmatmul.bf16.gmra.mxu2 %v3740_v36  ;;  %v1037_v36 = vpack.c.bf16 %v1033_v42, %v690_v33  ;;  %v3476_v33 = vld [vmem:[%s4541_s6 + $0xf8] sm:$0xff]  ;;  %v3455_v42 = vld [vmem:[%s4541_s6 + $0x50] sm:$0xff] }
  0x9c   : > { %1857 = vmatpush.bf16.msrb.mxu0 %v3476_v33  ;;  %1634 = vmatpush.bf16.msrb.mxu2 %v3455_v42 }
  0x9d   : > { %1344 = vmatmul.bf16.gmra.mxu0 %v579_v19 }
  0xa0   : > { %1858 = vmatpush.bf16.msrb.mxu0 %v3475_v24  ;;  %v4183_v24 = vld [vmem:[%s4539_s4] ss:$0 sm:$0xff] }
  0xa6   : > { %1230 = vmatmul.bf16.gmra.mxu3 %v3735_v35 }
  0xa8   : > { %v3998_v0 = vpop.f32.mrf.mxu0 }
  0xab   : > { %1121 = vmatmul.bf16.gmra.mxu2 %v3885_v29 }
  0xad   : > { %1349 = vmatmul.bf16.gmra.mxu0 %v580_v28 }
  0xae   : > { %v482_v26 = vpop.f32.mrf.mxu2 }
  0xaf   : > { %v559_v39 = vpop.f32.mrf.mxu3 }
  0xb0   : > { %v4001_v40 = vadd.f32 %v559_v39, %v482_v26  ;;  %v4003_v41 = vpop.f32.mrf.mxu0 }
  0xb6   : > { %1235 = vmatmul.bf16.gmra.mxu3 %v3832_v7  ;;  %v4006_v43 = vpop.f32.mrf.mxu2 }
  0xb7   : > { %v4010_v29 = vpop.f32.mrf.mxu3 }
  0xb8   : > { %v4008_v35 = vpop.f32.mrf.mxu0 }
  0xbb   : > { %1126 = vmatmul.bf16.gmra.mxu2 %v1037_v36 }
  0xbd   : > { %1354 = vmatmul.bf16.gmra.mxu0 %v1265_v44  ;;  %v3464_v44 = vld [vmem:[%s4541_s6 + $0x98] sm:$0xff] }
  0xbe   : > { %v487_v45 = vpop.f32.mrf.mxu2  ;;  %1747 = vmatpush.bf16.msrb.mxu3 %v3464_v44  ;;  %v3469_v44 = vld [vmem:[%s4541_s6 + $0xc0] sm:$0xff] }
  0xc0   : > { %v4013_v47 = vpop.f32.mrf.mxu0 }
  0xc1   : > { %v549_v58 = vpop.f32.mrf.mxu1 }
  0xc2   : > { %v550_v26 = vadd.f32 %v549_v58, %v3998_v0  ;;  %v3474_v0 = vld [vmem:[%s4541_s6 + $0xe8] sm:$0xff]  ;;  %v3473_v58 = vld [vmem:[%s4541_s6 + $0xe0] sm:$0xff]  ;;  %1748 = vmatpush.bf16.msrb.mxu3 %v3463_v57 }
  0xc3   : > { %1859 = vmatpush.bf16.msrb.mxu0 %v3474_v0 }
  0xc6   : > { %1240 = vmatmul.bf16.gmra.mxu3 %v1151_v46  ;;  %v4015_v34 = vpop.f32.mrf.mxu2 }
  0xc7   : > { %1860 = vmatpush.bf16.msrb.mxu0 %v3473_v58 }
  0xc9   : > { %v564_v7 = vpop.f32.mrf.mxu3  ;;  %v4048_v1 = vpop.f32.mrf.mxu1 }
  0xca   : > { %v4017_v48 = vadd.f32 %v564_v7, %v487_v45  ;;  %v4019_v49 = vpop.f32.mrf.mxu0  ;;  %v3454_v45 = vld [vmem:[%s4541_s6 + $0x48] sm:$0xff]  ;;  %v552_v62 = vadd.f32 %v4048_v1, %v4003_v41  ;;  %v3472_v1 = vld [vmem:[%s4541_s6 + $0xd8] sm:$0xff] }
  0xcb   : > { %1635 = vmatpush.bf16.msrb.mxu2 %v3454_v45  ;;  %v3462_v41 = vld [vmem:[%s4541_s6 + $0x88] sm:$0xff]  ;;  %1861 = vmatpush.bf16.msrb.mxu0 %v3472_v1 }
  0xcc   : > { %1749 = vmatpush.bf16.msrb.mxu3 %v3462_v41 }
  0xce   : > { %v4021_v50 = vpop.f32.mrf.mxu2 }
  0xcf   : > { %v675_v8 = vadd.f32 %v4021_v50, %v550_v26  ;;  %v3445_v50 = vld [vmem:[%s4541_s6] sm:$0xff]  ;;  %1636 = vmatpush.bf16.msrb.mxu2 %v3453_v11 }
  0xd0   : > { %1522 = vmatpush.bf16.msra.mxu1 %v3445_v50 }
  0xd1   : > { %v4023_v51 = vpop.f32.mrf.mxu3  ;;  %v4061_v17 = vpop.f32.mrf.mxu1 }
  0xd2   : > { %v4025_v52 = vpop.f32.mrf.mxu0  ;;  %v555_v23 = vadd.f32 %v4061_v17, %v4008_v35  ;;  %v3470_v35 = vld [vmem:[%s4541_s6 + $0xc8] sm:$0xff] }
  0xd4   : > { %1971 = vmatpush.bf16.msrb.mxu1 %v3484_v22 }
  0xd6   : > { %v4030_v54 = vpop.f32.mrf.mxu2 }
  0xd7   : > { %v676_v15 = vadd.f32 %v4030_v54, %v552_v62  ;;  %v3471_v54 = vld [vmem:[%s4541_s6 + $0xd0] sm:$0xff] }
  0xd8   : > { %1862 = vmatpush.bf16.msrb.mxu0 %v3471_v54 }
  0xd9   : > { %v4032_v55 = vpop.f32.mrf.mxu3  ;;  %v4086_v20 = vpop.f32.mrf.mxu1 }
  0xda   : > { %v4034_v56 = vpop.f32.mrf.mxu0  ;;  %v789_v46 = vadd.f32 %v4032_v55, %v675_v8  ;;  %v557_v8 = vadd.f32 %v4086_v20, %v4013_v47 }
  0xdc   : > { %v903_v14 = vadd.f32 %v4019_v49, %v789_v46  ;;  %v3461_v49 = vld [vmem:[%s4541_s6 + $0x80] sm:$0xff]  ;;  %1863 = vmatpush.bf16.msrb.mxu0 %v3470_v35 }
  0xdd   : > { %1750 = vmatpush.bf16.msrb.mxu3 %v3461_v49  ;;  %v1439_v49 = vld [vmem:[#allocation3 + $0x7] sm:$0xff] }
  0xde   : > { %v4039_v59 = vpop.f32.mrf.mxu2 }
  0xdf   : > { %v677_v37 = vadd.f32 %v4039_v59, %v555_v23  ;;  %v3483_v59 = vld [vmem:[%s4541_s6 + $0x130] sm:$0xff] }
  0xe0   : > { %1972 = vmatpush.bf16.msrb.mxu1 %v3483_v59  ;;  %1864 = vmatpush.bf16.msrb.mxu0 %v3469_v44 }
  0xe1   : > { %v4041_v60 = vpop.f32.mrf.mxu3  ;;  %v997_v27 = vpop.f32.mrf.mxu1 }
  0xe2   : > { %v4043_v61 = vpop.f32.mrf.mxu0  ;;  %v1017_v30 = vadd.f32 %v997_v27, %v903_v14  ;;  %v790_v9 = vadd.f32 %v4041_v60, %v676_v15 }
  0xe4   : > { %v904_v33 = vadd.f32 %v4025_v52, %v790_v9  ;;  %v4192_v52 = vld [vmem:[%s4540_s5] ss:$0 sm:$0xff] }
  0xe6   : > { %v4050_v3 = vpop.f32.mrf.mxu2 }
  0xe7   : > { %v678_v45 = vadd.f32 %v4050_v3, %v557_v8 }
  0xe9   : > { %v4052_v4 = vpop.f32.mrf.mxu3  ;;  %v999_v7 = vpop.f32.mrf.mxu1 }
  0xea   : > { %v4054_v5 = vpop.f32.mrf.mxu0  ;;  %v1018_v17 = vadd.f32 %v999_v7, %v904_v33  ;;  %v791_v26 = vadd.f32 %v4052_v4, %v677_v37  ;;  %v3481_v37 = vld [vmem:[%s4541_s6 + $0x120] sm:$0xff] }
  0xec   : > { %v905_v7 = vadd.f32 %v4034_v56, %v791_v26  ;;  %v3482_v56 = vld [vmem:[%s4541_s6 + $0x128] sm:$0xff] }
  0xed   : > { %1973 = vmatpush.bf16.msrb.mxu1 %v3482_v56 }
  0xee   : > { %v4059_v12 = vpop.f32.mrf.mxu2 }
  0xf1   : > { %v4063_v6 = vpop.f32.mrf.mxu3  ;;  %v1002_v18 = vpop.f32.mrf.mxu1  ;;  %1974 = vmatpush.bf16.msrb.mxu1 %v3481_v37 }
  0xf2   : > { %v4065_v13 = vpop.f32.mrf.mxu0  ;;  %v792_v62 = vadd.f32 %v4063_v6, %v678_v45  ;;  %v679_v6 = vadd.f32 %v4059_v12, %v4001_v40 }
  0xf4   : > { %v906_v41 = vadd.f32 %v4043_v61, %v792_v62 }
  0xf6   : > { %v4082_v19 = vpop.f32.mrf.mxu2 }
  0xf9   : > { %v4084_v10 = vpop.f32.mrf.mxu3  ;;  %v1004_v50 = vpop.f32.mrf.mxu1 }
  0xfa   : > { %v4088_v21 = vpop.f32.mrf.mxu0 }
  0xfe   : > { %v4096_v25 = vpop.f32.mrf.mxu2 }
 0x101   : > { %v4101_v63 = vpop.f32.mrf.mxu3  ;;  %v1007_v54 = vpop.f32.mrf.mxu1 }
 0x102   : > { %v4103_v28 = vpop.f32.mrf.mxu0 }
 0x106   : > { %v4124_v39 = vpop.f32.mrf.mxu2 }
 0x109   : > { %v4130_v36 = vpop.f32.mrf.mxu3 }
 0x10a   : > { %v1340_v53 = vpop.f32.mrf.mxu0 }
 0x10e   : > { %v1112_v55 = vpop.f32.mrf.mxu2 }
 0x10f   : > { %v1132_v27 = vadd.f32 %v1112_v55, %v1017_v30  ;;  %v1019_v55 = vadd.f32 %v1002_v18, %v905_v7  ;;  %v1020_v18 = vadd.f32 %v1004_v50, %v906_v41  ;;  %v3480_v50 = vld [vmem:[%s4541_s6 + $0x118] sm:$0xff] }
 0x110   : > { %1975 = vmatpush.bf16.msrb.mxu1 %v3480_v50  ;;  %v3487_v50 = vld [vmem:[%s4541_s6 + $0x150] sm:$0xff] }
 0x111   : > { %v4158_v16 = vpop.f32.mrf.mxu3 }
 0x112   : > { %v1342_v60 = vpop.f32.mrf.mxu0 }
 0x116   : > { %v1114_v32 = vpop.f32.mrf.mxu2 }
 0x117   : > { %v1133_v0 = vadd.f32 %v1114_v32, %v1018_v17 }
 0x119   : > { %v1226_v38 = vpop.f32.mrf.mxu3 }
 0x11a   : > { %v1246_v31 = vadd.f32 %v1226_v38, %v1132_v27  ;;  %v1345_v58 = vpop.f32.mrf.mxu0  ;;  %v793_v27 = vadd.f32 %v4084_v10, %v679_v6  ;;  %v562_v10 = vadd.f32 %v4010_v29, %v4006_v43  ;;  %v3492_v29 = vld [vmem:[%s4541_s6 + $0x178] sm:$0xff] }
 0x11b   : > { %2085 = vmatpush.bf16.msra.mxu2 %v3492_v29  ;;  %v3497_v29 = vld [vmem:[%s4541_s6 + $0x1a0] sm:$0xff] }
 0x11c   : > { %v1360_v42 = vadd.f32 %v1340_v53, %v1246_v31  ;;  %v680_v17 = vadd.f32 %v4082_v19, %v562_v10 }
 0x11e   : > { %v1373_v4 = vmul.f32 %v4183_v24, %v1360_v42  ;;  %v1117_v46 = vpop.f32.mrf.mxu2  ;;  %v907_v42 = vadd.f32 %v4054_v5, %v793_v27 }
 0x11f   : > { %v1134_v15 = vadd.f32 %v1117_v46, %v1019_v55  ;;  %v1009_v46 = vpop.f32.mrf.mxu1  ;;  %v3491_v55 = vld [vmem:[%s4541_s6 + $0x170] sm:$0xff] }
 0x120   : > { %v1384_v53 = vadd.f32 %v4192_v52, %v1373_v4  ;;  %v1021_v45 = vadd.f32 %v1007_v54, %v907_v42  ;;  %2086 = vmatpush.bf16.msra.mxu2 %v3491_v55  ;;  %v567_v54 = vadd.f32 %v4023_v51, %v4015_v34 }
 0x121   : > { %v1228_v57 = vpop.f32.mrf.mxu3 }
 0x122   : > { %v4206_v47 = vmax.f32 %v1384_v53, 0.0  ;;  %v1247_v20 = vadd.f32 %v1228_v57, %v1133_v0  ;;  %v794_v0 = vadd.f32 %v4101_v63, %v680_v17  ;;  %v682_v34 = vadd.f32 %v4124_v39, %v567_v54  ;;  %v3495_v54 = vld [vmem:[%s4541_s6 + $0x190] sm:$0xff] }
 0x124   : > { %1431 = vst [vmem:[#allocation3 + $0x20] sm:$0xff] %v4206_v47  ;;  %v1361_v11 = vadd.f32 %v1342_v60, %v1247_v20  ;;  %v1560_v3 = vpack.c.bf16 %v4206_v47, %v3563_v2  ;;  %v1666_v2 = vld [vmem:[#allocation3 + $0x9] sm:$0xff]  ;;  %v1347_v60 = vpop.f32.mrf.mxu0  ;;  %v681_v20 = vadd.f32 %v4096_v25, %v4017_v48  ;;  %v796_v42 = vadd.f32 %v4158_v16, %v682_v34  ;;  %v3506_v16 = vld [vmem:[%s4541_s6 + $0x1e8] sm:$0xff]  ;;  %v3503_v34 = vld [vmem:[%s4541_s6 + $0x1d0] sm:$0xff] }
 0x125   : > { %v3500_v25 = vld [vmem:[%s4541_s6 + $0x1b8] sm:$0xff] }
 0x126   : > { %v1374_v14 = vmul.f32 %v4183_v24, %v1361_v11  ;;  %1637 = vmatmul.bf16.vlgmr.msrb.gmra.mxu2 %v1560_v3  ;;  %v1119_v1 = vpop.f32.mrf.mxu2  ;;  %2200 = vmatpush.bf16.msra.mxu3 %v3500_v25 }
 0x127   : > { %v1135_v35 = vadd.f32 %v1119_v1, %v1020_v18  ;;  %v3508_v18 = vld [vmem:[%s4541_s6 + $0x1f8] sm:$0xff]  ;;  %v1012_v27 = vpop.f32.mrf.mxu1 }
 0x128   : > { %v1385_v30 = vadd.f32 %v4192_v52, %v1374_v14  ;;  %2314 = vmatpush.bf16.msra.mxu0 %v3508_v18 }
 0x129   : > { %v1231_v9 = vpop.f32.mrf.mxu3 }
 0x12a   : > { %v4220_v22 = vmax.f32 %v1385_v30, 0.0  ;;  %v1248_v23 = vadd.f32 %v1231_v9, %v1134_v15 }
 0x12b   : > { %v1440_v32 = vld [vmem:[#allocation3 + $0x1f] sm:$0xff] }
 0x12c   : > { %v4223_v33 = vld [vmem:[#allocation3 + $0x21] sm:$0xff]  ;;  %1432 = vst [vmem:[#allocation3 + $0x38] sm:$0xff] %v4220_v22  ;;  %v1362_v40 = vadd.f32 %v1345_v58, %v1248_v23  ;;  %v1447_v61 = vpack.c.bf16 %v1440_v32, %v1439_v49  ;;  %v1902_v38 = vpack.c.bf16 %v4220_v22, %v4206_v47  ;;  %v1350_v63 = vpop.f32.mrf.mxu0  ;;  %v908_v58 = vadd.f32 %v4065_v13, %v794_v0  ;;  %v3490_v49 = vld [vmem:[%s4541_s6 + $0x168] sm:$0xff] }
 0x12d   : > { %v1674_v12 = vpack.c.bf16 %v4223_v33, %v1666_v2  ;;  %v795_v13 = vadd.f32 %v4130_v36, %v681_v20  ;;  %v3479_v36 = vld [vmem:[%s4541_s6 + $0x110] sm:$0xff]  ;;  %2087 = vmatpush.bf16.msra.mxu2 %v3490_v49  ;;  %v3504_v49 = vld [vmem:[%s4541_s6 + $0x1d8] sm:$0xff]  ;;  %v3510_v47 = vld [vmem:[%s4541_s6 + $0x208] sm:$0xff] }
 0x12e   : > { %v1375_v31 = vmul.f32 %v4183_v24, %v1362_v40  ;;  %1523 = vmatmul.bf16.vlgmr.msra.gmra.mxu1 %v1447_v61  ;;  %v1122_v26 = vpop.f32.mrf.mxu2  ;;  %v1022_v41 = vadd.f32 %v1009_v46, %v908_v58  ;;  %v3499_v23 = vld [vmem:[%s4541_s6 + $0x1b0] sm:$0xff]  ;;  %v3489_v61 = vld [vmem:[%s4541_s6 + $0x160] sm:$0xff] }
 0x12f   : > { %1751 = vmatmul.bf16.vlgmr.msrb.gmra.mxu3 %v1674_v12  ;;  %v1136_v57 = vadd.f32 %v1122_v26, %v1021_v45  ;;  %v909_v40 = vadd.f32 %v4088_v21, %v795_v13  ;;  %1976 = vmatpush.bf16.msrb.mxu1 %v3479_v36  ;;  %v3478_v12 = vld [vmem:[%s4541_s6 + $0x108] sm:$0xff]  ;;  %v3507_v21 = vld [vmem:[%s4541_s6 + $0x1f0] sm:$0xff] }
 0x130   : > { %v1386_v59 = vadd.f32 %v4192_v52, %v1375_v31  ;;  %2201 = vmatpush.bf16.msra.mxu3 %v3499_v23  ;;  %v3498_v31 = vld [vmem:[%s4541_s6 + $0x1a8] sm:$0xff]  ;;  %2315 = vmatpush.bf16.msra.mxu0 %v3507_v21 }
 0x131   : > { %v1233_v8 = vpop.f32.mrf.mxu3  ;;  %v1023_v26 = vadd.f32 %v1012_v27, %v909_v40  ;;  %2088 = vmatpush.bf16.msra.mxu2 %v3489_v61  ;;  %v3494_v61 = vld [vmem:[%s4541_s6 + $0x188] sm:$0xff] }
 0x132   : > { %v4238_v44 = vmax.f32 %v1386_v59, 0.0  ;;  %v1249_v4 = vadd.f32 %v1233_v8, %v1135_v35  ;;  %v3488_v8 = vld [vmem:[%s4541_s6 + $0x158] sm:$0xff] }
 0x133   : > { %v1781_v43 = vld [vmem:[#allocation3 + $0x37] sm:$0xff]  ;;  %1977 = vmatpush.bf16.msrb.mxu1 %v3478_v12 }
 0x134   : > { %1433 = vst [vmem:[#allocation3 + $0x50] sm:$0xff] %v4238_v44  ;;  %v1363_v19 = vadd.f32 %v1347_v60, %v1249_v4  ;;  %v1788_v7 = vpack.c.bf16 %v1781_v43, %v1440_v32  ;;  %v4247_v5 = vpack.c.bf16 %v4238_v44, %v4220_v22  ;;  %v4263_v15 = vld [vmem:[#allocation3 + $0x39] sm:$0xff]  ;;  %v1352_v51 = vpop.f32.mrf.mxu0  ;;  %2202 = vmatpush.bf16.msra.mxu3 %v3498_v31 }
 0x135   : > { %2089 = vmatpush.bf16.msra.mxu2 %v3488_v8  ;;  %2316 = vmatpush.bf16.msra.mxu0 %v3506_v16  ;;  %v3515_v8 = vld [vmem:[%s4541_s6 + $0x230] sm:$0xff] }
 0x136   : > { %v1376_v53 = vmul.f32 %v4183_v24, %v1363_v19  ;;  %1865 = vmatmul.bf16.vlgmr.msrb.gmra.mxu0 %v1788_v7  ;;  %1642 = vmatmul.bf16.gmra.mxu2 %v4247_v5  ;;  %v1124_v62 = vpop.f32.mrf.mxu2  ;;  %v3477_v19 = vld [vmem:[%s4541_s6 + $0x100] sm:$0xff]  ;;  %v910_v7 = vadd.f32 %v4103_v28, %v796_v42  ;;  %v3496_v28 = vld [vmem:[%s4541_s6 + $0x198] sm:$0xff] }
 0x137   : > { %v1137_v32 = vadd.f32 %v1124_v62, %v1022_v41  ;;  %1978 = vmatpush.bf16.msrb.mxu1 %v3477_v19  ;;  %v3493_v42 = vld [vmem:[%s4541_s6 + $0x180] sm:$0xff] }
 0x138   : > { %v1387_v11 = vadd.f32 %v4192_v52, %v1376_v53  ;;  %2203 = vmatpush.bf16.msra.mxu3 %v3497_v29 }
 0x139   : > { %v1236_v3 = vpop.f32.mrf.mxu3  ;;  %2090 = vmatpush.bf16.msra.mxu2 %v3487_v50 }
 0x13a   : > { %v4261_v56 = vmax.f32 %v1387_v11, 0.0  ;;  %v1250_v14 = vadd.f32 %v1236_v3, %v1136_v57  ;;  %v3505_v57 = vld [vmem:[%s4541_s6 + $0x1e0] sm:$0xff] }
 0x13b   : > { %v1442_v6 = vld [vmem:[#allocation3 + $0x4f] sm:$0xff]  ;;  %2317 = vmatpush.bf16.msra.mxu0 %v3505_v57 }
 0x13c   : > { %v4266_v48 = vld [vmem:[#allocation3 + $0x51] sm:$0xff]  ;;  %1434 = vst [vmem:[#allocation3 + $0x68] sm:$0xff] %v4261_v56  ;;  %v1364_v1 = vadd.f32 %v1350_v63, %v1250_v14  ;;  %v4272_v30 = vpack.c.bf16 %v1442_v6, %v1781_v43  ;;  %v1903_v2 = vpack.c.bf16 %v4261_v56, %v4238_v44  ;;  %v1014_v63 = vpop.f32.mrf.mxu1  ;;  %v1355_v58 = vpop.f32.mrf.mxu0  ;;  %2204 = vmatpush.bf16.msra.mxu3 %v3496_v28 }
 0x13d   : > { %v4276_v9 = vpack.c.bf16 %v4266_v48, %v4263_v15  ;;  %v1024_v3 = vadd.f32 %v1014_v63, %v910_v7  ;;  %v3513_v57 = vld [vmem:[%s4541_s6 + $0x220] sm:$0xff] }
 0x13e   : > { %v1377_v60 = vmul.f32 %v4183_v24, %v1364_v1  ;;  %1528 = vmatmul.bf16.gmra.mxu1 %v4272_v30  ;;  %v1127_v39 = vpop.f32.mrf.mxu2 }
 0x13f   : > { %1756 = vmatmul.bf16.gmra.mxu3 %v4276_v9  ;;  %v1138_v46 = vadd.f32 %v1127_v39, %v1023_v26  ;;  %2318 = vmatpush.bf16.msra.mxu0 %v3504_v49  ;;  %v3502_v26 = vld [vmem:[%s4541_s6 + $0x1c8] sm:$0xff] }
 0x140   : > { %v1388_v37 = vadd.f32 %v4192_v52, %v1377_v60  ;;  %v3516_v60 = vld [vmem:[%s4541_s6 + $0x238] sm:$0xff]  ;;  %2205 = vmatpush.bf16.msra.mxu3 %v3495_v54 }
 0x141   : > { %v1238_v10 = vpop.f32.mrf.mxu3  ;;  %2428 = vmatpush.bf16.msra.mxu1 %v3516_v60 }
 0x142   : > { %v4312_v35 = vmax.f32 %v1388_v37, 0.0  ;;  %v1251_v17 = vadd.f32 %v1238_v10, %v1137_v32  ;;  %v3485_v32 = vld [vmem:[%s4541_s6 + $0x140] sm:$0xff] }
 0x143   : > { %v1783_v59 = vld [vmem:[#allocation3 + $0x67] sm:$0xff]  ;;  %2319 = vmatpush.bf16.msra.mxu0 %v3503_v34 }
 0x144   : > { %1435 = vst [vmem:[#allocation3 + $0x80] sm:$0xff] %v4312_v35  ;;  %v1365_v4 = vadd.f32 %v1352_v51, %v1251_v17  ;;  %v1789_v0 = vpack.c.bf16 %v1783_v59, %v1442_v6  ;;  %v4321_v43 = vpack.c.bf16 %v4312_v35, %v4261_v56  ;;  %v4347_v11 = vld [vmem:[#allocation3 + $0x69] sm:$0xff]  ;;  %v3486_v6 = vld [vmem:[%s4541_s6 + $0x148] sm:$0xff]  ;;  %v1357_v21 = vpop.f32.mrf.mxu0  ;;  %2206 = vmatpush.bf16.msra.mxu3 %v3494_v61 }
 0x145   : > { %2091 = vmatpush.bf16.msra.mxu2 %v3486_v6  ;;  %2429 = vmatpush.bf16.msra.mxu1 %v3515_v8  ;;  %v2130_v56 = vld [vmem:[#allocation3 + $0xdf] sm:$0xff] }
 0x146   : > { %v1378_v45 = vmul.f32 %v4183_v24, %v1365_v4  ;;  %1870 = vmatmul.bf16.gmra.mxu0 %v1789_v0  ;;  %1647 = vmatmul.bf16.gmra.mxu2 %v4321_v43  ;;  %v1129_v13 = vpop.f32.mrf.mxu2  ;;  %v3501_v0 = vld [vmem:[%s4541_s6 + $0x1c0] sm:$0xff] }
 0x147   : > { %v1139_v27 = vadd.f32 %v1129_v13, %v1024_v3  ;;  %2320 = vmatpush.bf16.msra.mxu0 %v3502_v26 }
 0x148   : > { %v1389_v53 = vadd.f32 %v4192_v52, %v1378_v45  ;;  %2207 = vmatpush.bf16.msra.mxu3 %v3493_v42 }
 0x149   : > { %v1241_v20 = vpop.f32.mrf.mxu3  ;;  %2092 = vmatpush.bf16.msra.mxu2 %v3485_v32 }
 0x14a   : > { %v4345_v62 = vmax.f32 %v1389_v53, 0.0  ;;  %v1252_v55 = vadd.f32 %v1241_v20, %v1138_v46  ;;  %v2016_v53 = vpack.c.bf16 %v4263_v15, %v4223_v33  ;;  %v2017_v33 = vpack.c.bf16 %v4347_v11, %v4266_v48  ;;  %v3511_v15 = vld [vmem:[%s4541_s6 + $0x210] sm:$0xff] }
 0x14b   : > { %v1444_v14 = vld [vmem:[#allocation3 + $0x7f] sm:$0xff]  ;;  %2321 = vmatpush.bf16.msra.mxu0 %v3501_v0 }
 0x14c   : > { %v4349_v41 = vld [vmem:[#allocation3 + $0x81] sm:$0xff]  ;;  %1436 = vst [vmem:[#allocation3 + $0x98] sm:$0xff] %v4345_v62  ;;  %v1366_v25 = vadd.f32 %v1355_v58, %v1252_v55  ;;  %v4355_v1 = vpack.c.bf16 %v1444_v14, %v1783_v59  ;;  %v1904_v23 = vpack.c.bf16 %v4345_v62, %v4312_v35 }
 0x14d   : > { %v4359_v36 = vpack.c.bf16 %v4349_v41, %v4347_v11  ;;  %v3512_v58 = vld [vmem:[%s4541_s6 + $0x218] sm:$0xff] }
 0x14e   : > { %v1379_v18 = vmul.f32 %v4183_v24, %v1366_v25  ;;  %1533 = vmatmul.bf16.gmra.mxu1 %v4355_v1 }
 0x14f   : > { %1761 = vmatmul.bf16.gmra.mxu3 %v4359_v36 }
 0x150   : > { %v1390_v40 = vadd.f32 %v4192_v52, %v1379_v18 }
 0x151   : > { %v1243_v51 = vpop.f32.mrf.mxu3 }
 0x152   : > { %v4385_v12 = vmax.f32 %v1390_v40, 0.0  ;;  %v1253_v37 = vadd.f32 %v1243_v51, %v1139_v27 }
 0x153   : > { %v1785_v10 = vld [vmem:[#allocation3 + $0x97] sm:$0xff] }
 0x154   : > { %1437 = vst [vmem:[#allocation3 + $0xb0] sm:$0xff] %v4385_v12  ;;  %v1367_v39 = vadd.f32 %v1357_v21, %v1253_v37  ;;  %v1790_v31 = vpack.c.bf16 %v1785_v10, %v1444_v14  ;;  %v1563_v17 = vpack.c.bf16 %v4385_v12, %v4345_v62  ;;  %v1672_v45 = vld [vmem:[#allocation3 + $0x99] sm:$0xff] }
 0x155   : > { %v2018_v22 = vpack.c.bf16 %v1672_v45, %v4349_v41 }
 0x156   : > { %v1380_v59 = vmul.f32 %v4183_v24, %v1367_v39  ;;  %1875 = vmatmul.bf16.gmra.mxu0 %v1790_v31  ;;  %1652 = vmatmul.bf16.gmra.mxu2 %v1563_v17 }
 0x158   : > { %v1391_v4 = vadd.f32 %v4192_v52, %v1380_v59  ;;  %v3514_v52 = vld [vmem:[%s4541_s6 + $0x228] sm:$0xff] }
 0x159   : > { %2430 = vmatpush.bf16.msra.mxu1 %v3514_v52 }
 0x15a   : > { %v1399_v16 = vmax.f32 %v1391_v4, 0.0 }
 0x15b   : > { %v1446_v29 = vld [vmem:[#allocation3 + $0xaf] sm:$0xff] }
 0x15c   : > { %v1673_v46 = vld [vmem:[#allocation3 + $0xb1] sm:$0xff]  ;;  %1438 = vst [vmem:[#allocation3 + $0xc8] sm:$0xff] %v1399_v16  ;;  %v1450_v24 = vpack.c.bf16 %v1446_v29, %v1785_v10  ;;  %v1905_v7 = vpack.c.bf16 %v1399_v16, %v4385_v12 }
 0x15d   : > { %v1677_v19 = vpack.c.bf16 %v1673_v46, %v1672_v45  ;;  %2431 = vmatpush.bf16.msra.mxu1 %v3513_v57 }
 0x15e   : > { %1538 = vmatmul.bf16.gmra.mxu1 %v1450_v24 }
 0x15f   : > { %1766 = vmatmul.bf16.gmra.mxu3 %v1677_v19 }
 0x161   : > { %2432 = vmatpush.bf16.msra.mxu1 %v3512_v58 }
 0x163   : > { %v1787_v50 = vld [vmem:[#allocation3 + $0xc7] sm:$0xff] }
 0x164   : > { %v1791_v63 = vpack.c.bf16 %v1787_v50, %v1446_v29  ;;  %v2015_v44 = vld [vmem:[#allocation3 + $0xc9] sm:$0xff]  ;;  %v2134_v48 = vpack.c.bf16 %v2130_v56, %v1787_v50  ;;  %v3548_v50 = vld [vmem:[%s3642_s18 + $0x8] sm:$0xff] }
 0x165   : > { %2433 = vmatpush.bf16.msra.mxu1 %v3511_v15 }
 0x166   : > { %1880 = vmatmul.bf16.gmra.mxu0 %v1791_v63  ;;  %2093 = vmatmul.bf16.vlgmr.msra.gmra.mxu2 %v2016_v53 }
 0x169   : > { %2434 = vmatpush.bf16.msra.mxu1 %v3510_v47 }
 0x16e   : > { %1979 = vmatmul.bf16.vlgmr.msrb.gmra.mxu1 %v1902_v38  ;;  %v3509_v38 = vld [vmem:[%s4541_s6 + $0x200] sm:$0xff] }
 0x16f   : > { %2208 = vmatmul.bf16.vlgmr.msra.gmra.mxu3 %v4272_v30  ;;  %2435 = vmatpush.bf16.msra.mxu1 %v3509_v38  ;;  %v3546_v30 = vld [vmem:[#allocation2] sm:$0xff] }
 0x176   : > { %2322 = vmatmul.bf16.vlgmr.msra.gmra.mxu0 %v4247_v5  ;;  %2098 = vmatmul.bf16.gmra.mxu2 %v2017_v33  ;;  %v2019_v5 = vpack.c.bf16 %v2015_v44, %v1673_v46 }
 0x17e   : > { %1984 = vmatmul.bf16.gmra.mxu1 %v1903_v2  ;;  %v2248_v2 = vpack.c.bf16 %v3546_v30, %v1399_v16  ;;  %v3547_v16 = vld [vmem:[%s3642_s18] sm:$0xff] }
 0x17f   : > { %2213 = vmatmul.bf16.gmra.mxu3 %v4355_v1 }
 0x186   : > { %2327 = vmatmul.bf16.gmra.mxu0 %v4321_v43  ;;  %2103 = vmatmul.bf16.gmra.mxu2 %v2018_v22 }
 0x18e   : > { %1989 = vmatmul.bf16.gmra.mxu1 %v1904_v23 }
 0x18f   : > { %2218 = vmatmul.bf16.gmra.mxu3 %v1450_v24 }
 0x196   : > { %2332 = vmatmul.bf16.gmra.mxu0 %v1563_v17  ;;  %2108 = vmatmul.bf16.gmra.mxu2 %v2019_v5 }
 0x19e   : > { %1994 = vmatmul.bf16.gmra.mxu1 %v1905_v7 }
 0x19f   : > { %2223 = vmatmul.bf16.gmra.mxu3 %v2134_v48 }
 0x1a6   : > { %2337 = vmatmul.bf16.gmra.mxu0 %v2248_v2 }
 0x1a9   : > { %v1638_v62 = vpop.f32.mrf.mxu2 }
 0x1ab   : > { %v1524_v43 = vpop.f32.mrf.mxu1 }
 0x1ac   : > { %v1544_v29 = vadd.f32 %v3547_v16, %v1524_v43 }
 0x1ae   : > { %2436 = vmatmul.bf16.vlgmr.msra.gmra.mxu1 %v4276_v9  ;;  %v2358_v9 = vld [vmem:[#allocation3 + $0xe1] sm:$0xff]  ;;  %v1658_v24 = vadd.f32 %v1638_v62, %v1544_v29 }
 0x1af   : > { %v2362_v54 = vpack.c.bf16 %v2358_v9, %v2015_v44  ;;  %v3549_v44 = vld [vmem:[%s3642_s18 + $0x10] sm:$0xff] }
 0x1b1   : > { %v1640_v14 = vpop.f32.mrf.mxu2 }
 0x1b2   : > { %v1752_v55 = vpop.f32.mrf.mxu3 }
 0x1b3   : > { %v1526_v20 = vpop.f32.mrf.mxu1  ;;  %v1866_v11 = vpop.f32.mrf.mxu0  ;;  %v1772_v7 = vadd.f32 %v1752_v55, %v1658_v24 }
 0x1b4   : > { %v1545_v63 = vadd.f32 %v3548_v50, %v1526_v20 }
 0x1b5   : > { %v1886_v53 = vadd.f32 %v1866_v11, %v1772_v7 }
 0x1b6   : > { %v1659_v33 = vadd.f32 %v1640_v14, %v1545_v63 }
 0x1b9   : > { %v1643_v25 = vpop.f32.mrf.mxu2 }
 0x1ba   : > { %v1754_v41 = vpop.f32.mrf.mxu3 }
 0x1bb   : > { %v1529_v28 = vpop.f32.mrf.mxu1  ;;  %v1868_v13 = vpop.f32.mrf.mxu0  ;;  %v1773_v47 = vadd.f32 %v1754_v41, %v1659_v33  ;;  %v3550_v41 = vld [vmem:[%s3642_s18 + $0x18] sm:$0xff]  ;;  %v3552_v33 = vld [vmem:[%s3642_s18 + $0x28] sm:$0xff] }
 0x1bc   : > { %v1546_v5 = vadd.f32 %v3549_v44, %v1529_v28 }
 0x1bd   : > { %v1887_v48 = vadd.f32 %v1868_v13, %v1773_v47 }
 0x1be   : > { %2441 = vmatmul.bf16.gmra.mxu1 %v4359_v36  ;;  %v1660_v2 = vadd.f32 %v1643_v25, %v1546_v5 }
 0x1c1   : > { %v1645_v23 = vpop.f32.mrf.mxu2 }
 0x1c2   : > { %v1757_v1 = vpop.f32.mrf.mxu3 }
 0x1c3   : > { %v4443_v35 = vpop.f32.mrf.mxu1  ;;  %v1871_v36 = vpop.f32.mrf.mxu0  ;;  %v1774_v55 = vadd.f32 %v1757_v1, %v1660_v2 }
 0x1c4   : > { %v1547_v28 = vadd.f32 %v3550_v41, %v4443_v35 }
 0x1c6   : > { %v1661_v1 = vadd.f32 %v1645_v23, %v1547_v28 }
 0x1c9   : > { %v4455_v40 = vpop.f32.mrf.mxu2 }
 0x1ca   : > { %v1759_v18 = vpop.f32.mrf.mxu3 }
 0x1cb   : > { %v4445_v3 = vpop.f32.mrf.mxu1  ;;  %v4453_v60 = vpop.f32.mrf.mxu0  ;;  %v1775_v16 = vadd.f32 %v1759_v18, %v1661_v1 }
 0x1cd   : > { %v1889_v63 = vadd.f32 %v4453_v60, %v1775_v16 }
 0x1ce   : > { %2446 = vmatmul.bf16.gmra.mxu1 %v1677_v19 }
 0x1d1   : > { %v4461_v12 = vpop.f32.mrf.mxu2 }
 0x1d2   : > { %v4457_v34 = vpop.f32.mrf.mxu3 }
 0x1d3   : > { %v4447_v6 = vpop.f32.mrf.mxu1  ;;  %v4459_v51 = vpop.f32.mrf.mxu0 }
 0x1d9   : > { %v4467_v39 = vpop.f32.mrf.mxu2 }
 0x1da   : > { %v4463_v37 = vpop.f32.mrf.mxu3 }
 0x1db   : > { %v4449_v49 = vpop.f32.mrf.mxu1  ;;  %v4465_v21 = vpop.f32.mrf.mxu0 }
 0x1de   : > { %2451 = vmatmul.bf16.gmra.mxu1 %v2362_v54  ;;  %v1888_v54 = vadd.f32 %v1871_v36, %v1774_v55 }
 0x1e1   : > { %v4473_v42 = vpop.f32.mrf.mxu2 }
 0x1e2   : > { %v4469_v31 = vpop.f32.mrf.mxu3 }
 0x1e3   : > { %v4451_v27 = vpop.f32.mrf.mxu1  ;;  %v4471_v26 = vpop.f32.mrf.mxu0 }
 0x1e9   : > { %v2094_v45 = vpop.f32.mrf.mxu2 }
 0x1ea   : > { %v4475_v59 = vpop.f32.mrf.mxu3 }
 0x1eb   : > { %v1980_v32 = vpop.f32.mrf.mxu1  ;;  %v4479_v4 = vpop.f32.mrf.mxu0 }
 0x1ec   : > { %v2000_v15 = vadd.f32 %v1980_v32, %v1886_v53 }
 0x1ee   : > { %v2114_v56 = vadd.f32 %v2094_v45, %v2000_v15  ;;  %v1549_v15 = vadd.f32 %v3552_v33, %v4447_v6  ;;  %v3553_v6 = vld [vmem:[%s3642_s18 + $0x30] sm:$0xff] }
 0x1ef   : > { %v1550_v2 = vadd.f32 %v3553_v6, %v4449_v49 }
 0x1f1   : > { %v2096_v57 = vpop.f32.mrf.mxu2 }
 0x1f2   : > { %v2209_v46 = vpop.f32.mrf.mxu3 }
 0x1f3   : > { %v1982_v61 = vpop.f32.mrf.mxu1  ;;  %v2323_v19 = vpop.f32.mrf.mxu0  ;;  %v2229_v30 = vadd.f32 %v2209_v46, %v2114_v56 }
 0x1f4   : > { %v2001_v43 = vadd.f32 %v1982_v61, %v1887_v48 }
 0x1f5   : > { %v2343_v11 = vadd.f32 %v2323_v19, %v2229_v30  ;;  %v3551_v19 = vld [vmem:[%s3642_s18 + $0x20] sm:$0xff] }
 0x1f6   : > { %v2115_v13 = vadd.f32 %v2096_v57, %v2001_v43  ;;  %v1548_v7 = vadd.f32 %v3551_v19, %v4445_v3 }
 0x1f8   : > { %v1662_v23 = vadd.f32 %v4455_v40, %v1548_v7  ;;  %v1663_v40 = vadd.f32 %v4461_v12, %v1549_v15 }
 0x1f9   : > { %v2099_v62 = vpop.f32.mrf.mxu2 }
 0x1fa   : > { %v2211_v58 = vpop.f32.mrf.mxu3  ;;  %v1776_v18 = vadd.f32 %v4457_v34, %v1662_v23  ;;  %v1777_v56 = vadd.f32 %v4463_v37, %v1663_v40 }
 0x1fb   : > { %v1985_v10 = vpop.f32.mrf.mxu1  ;;  %v2325_v22 = vpop.f32.mrf.mxu0  ;;  %v2230_v32 = vadd.f32 %v2211_v58, %v2115_v13  ;;  %v3554_v13 = vld [vmem:[%s3642_s18 + $0x38] sm:$0xff] }
 0x1fc   : > { %v2002_v61 = vadd.f32 %v1985_v10, %v1888_v54  ;;  %v1890_v60 = vadd.f32 %v4459_v51, %v1776_v18  ;;  %v1891_v51 = vadd.f32 %v4465_v21, %v1777_v56  ;;  %v1551_v49 = vadd.f32 %v3554_v13, %v4451_v27 }
 0x1fd   : > { %v2344_v29 = vadd.f32 %v2325_v22, %v2230_v32 }
 0x1fe   : > { %v2116_v50 = vadd.f32 %v2099_v62, %v2002_v61  ;;  %v1665_v32 = vadd.f32 %v4473_v42, %v1551_v49 }
 0x201   : > { %v2101_v45 = vpop.f32.mrf.mxu2 }
 0x202   : > { %v2214_v20 = vpop.f32.mrf.mxu3 }
 0x203   : > { %v1987_v17 = vpop.f32.mrf.mxu1  ;;  %v2328_v25 = vpop.f32.mrf.mxu0  ;;  %v2231_v53 = vadd.f32 %v2214_v20, %v2116_v50 }
 0x204   : > { %v2003_v10 = vadd.f32 %v1987_v17, %v1889_v63 }
 0x205   : > { %v2345_v57 = vadd.f32 %v2328_v25, %v2231_v53 }
 0x206   : > { %v2117_v3 = vadd.f32 %v2101_v45, %v2003_v10 }
 0x209   : > { %v2104_v47 = vpop.f32.mrf.mxu2 }
 0x20a   : > { %v2216_v46 = vpop.f32.mrf.mxu3 }
 0x20b   : > { %v4477_v8 = vpop.f32.mrf.mxu1  ;;  %v2330_v36 = vpop.f32.mrf.mxu0  ;;  %v2232_v5 = vadd.f32 %v2216_v46, %v2117_v3 }
 0x20c   : > { %v2004_v17 = vadd.f32 %v4477_v8, %v1890_v60  ;;  %v1664_v8 = vadd.f32 %v4467_v39, %v1550_v2 }
 0x20d   : > { %v2346_v48 = vadd.f32 %v2330_v36, %v2232_v5 }
 0x20e   : > { %v2118_v43 = vadd.f32 %v2104_v47, %v2004_v17  ;;  %v1778_v37 = vadd.f32 %v4469_v31, %v1664_v8  ;;  %v1779_v31 = vadd.f32 %v4475_v59, %v1665_v32 }
 0x210   : > { %v1892_v21 = vadd.f32 %v4471_v26, %v1778_v37  ;;  %v1893_v46 = vadd.f32 %v4479_v4, %v1779_v31 }
 0x211   : > { %v2106_v55 = vpop.f32.mrf.mxu2 }
 0x212   : > { %v2219_v44 = vpop.f32.mrf.mxu3 }
 0x213   : > { %v4481_v0 = vpop.f32.mrf.mxu1  ;;  %v2333_v34 = vpop.f32.mrf.mxu0  ;;  %v2233_v20 = vadd.f32 %v2219_v44, %v2118_v43 }
 0x21a   : > { %v2221_v12 = vpop.f32.mrf.mxu3 }
 0x21b   : > { %v4484_v52 = vpop.f32.mrf.mxu1  ;;  %v2335_v41 = vpop.f32.mrf.mxu0 }
 0x21c   : > { %v2006_v39 = vadd.f32 %v4484_v52, %v1892_v21 }
 0x222   : > { %v2224_v1 = vpop.f32.mrf.mxu3 }
 0x223   : > { %v4487_v38 = vpop.f32.mrf.mxu1  ;;  %v2338_v45 = vpop.f32.mrf.mxu0 }
 0x22a   : > { %v2226_v52 = vpop.f32.mrf.mxu3 }
 0x22b   : > { %v2437_v14 = vpop.f32.mrf.mxu1  ;;  %v2340_v63 = vpop.f32.mrf.mxu0 }
 0x22c   : > { %v2457_v9 = vadd.f32 %v2437_v14, %v2343_v11  ;;  %v2005_v11 = vadd.f32 %v4481_v0, %v1891_v51  ;;  %v2347_v14 = vadd.f32 %v2333_v34, %v2233_v20  ;;  %v2109_v0 = vpop.f32.mrf.mxu2 }
 0x22e   : > { %2465 = vst [vmem:[%s4495_s20] sm:$0xff] %v2457_v9  ;;  %v2119_v9 = vadd.f32 %v2106_v55, %v2005_v11 }
 0x230   : > { %v2234_v54 = vadd.f32 %v2221_v12, %v2119_v9 }
 0x232   : > { %v2348_v61 = vadd.f32 %v2335_v41, %v2234_v54 }
 0x233   : > { %v2439_v24 = vpop.f32.mrf.mxu1 }
 0x234   : > { %v2458_v35 = vadd.f32 %v2439_v24, %v2344_v29  ;;  %v2120_v29 = vadd.f32 %v2109_v0, %v2006_v39  ;;  %v2007_v24 = vadd.f32 %v4487_v38, %v1893_v46  ;;  %v2111_v19 = vpop.f32.mrf.mxu2 }
 0x236   : > { %2466 = vst [vmem:[%s4495_s20 + $0x8] sm:$0xff] %v2458_v35  ;;  %v2235_v26 = vadd.f32 %v2224_v1, %v2120_v29  ;;  %v2121_v50 = vadd.f32 %v2111_v19, %v2007_v24 }
 0x238   : > { %v2349_v42 = vadd.f32 %v2338_v45, %v2235_v26  ;;  %v2236_v59 = vadd.f32 %v2226_v52, %v2121_v50 }
 0x23a   : > { %v2350_v53 = vadd.f32 %v2340_v63, %v2236_v59 }
 0x23b   : > { %v2442_v58 = vpop.f32.mrf.mxu1 }
 0x23c   : > { %v2459_v22 = vadd.f32 %v2442_v58, %v2345_v57 }
 0x23e   : > { %2467 = vst [vmem:[%s4495_s20 + $0x10] sm:$0xff] %v2459_v22 }
 0x243   : > { %v2444_v30 = vpop.f32.mrf.mxu1 }
 0x244   : > { %v2460_v62 = vadd.f32 %v2444_v30, %v2346_v48 }
 0x246   : > { %2468 = vst [vmem:[%s4495_s20 + $0x18] sm:$0xff] %v2460_v62 }
 0x24b   : > { %v2447_v28 = vpop.f32.mrf.mxu1 }
 0x24c   : > { %v2461_v25 = vadd.f32 %v2447_v28, %v2347_v14 }
 0x24e   : > { %2469 = vst [vmem:[%s4495_s20 + $0x20] sm:$0xff] %v2461_v25 }
 0x253   : > { %v2449_v16 = vpop.f32.mrf.mxu1 }
 0x254   : > { %v2462_v27 = vadd.f32 %v2449_v16, %v2348_v61 }
 0x256   : > { %2470 = vst [vmem:[%s4495_s20 + $0x28] sm:$0xff] %v2462_v27 }
 0x25b   : > { %v2452_v7 = vpop.f32.mrf.mxu1 }
 0x25c   : > { %v2463_v35 = vadd.f32 %v2452_v7, %v2349_v42 }
 0x25e   : > { %2471 = vst [vmem:[%s4495_s20 + $0x30] sm:$0xff] %v2463_v35 }
 0x263   : > { %v2454_v36 = vpop.f32.mrf.mxu1 }
 0x264   : > { %v2464_v23 = vadd.f32 %v2454_v36, %v2350_v53 }
 0x266   : > { %2472 = vst [vmem:[%s4495_s20 + $0x38] sm:$0xff] %v2464_v23 }
 0x267 PF: > { %s17_s24 = sadd.s32 1, %s3561_s24  }
 0x268   : > { %p14_p4 = scmp.ge.s32.totalorder %s17_s24, 4  }
 0x26a   :  { %16 = sbr.rel (!%p14_p4) target bundleno = 1 (0x1), region = 98 }

// kernel: _lambda_.2
= control target key start
LH: loop header
LB: loop body
LE: loop exit
PB: predicated region body
PF: predicated region fallthrough
CT: control target
= control target key end

     0   :  { %s4079_s17 = smov 0   ;;  %s5168_s0 = inlined_call_operand.vmem [shape: f32[2,8,8,128], index: 0, kind: input, shape index: {}]   ;;  %s5169_s1 = inlined_call_operand.vmem [shape: f32[2,8,8,128], index: 1, kind: input, shape index: {}]   ;;  %s5170_s2 = inlined_call_operand.vmem [shape: f32[2,8,8,128], index: 2, kind: input, shape index: {}]   ;;  %s5171_s3 = inlined_call_operand.vmem [shape: f32[2,8,8,128], index: 3, kind: input, shape index: {}]   ;;  %s5172_s4 = inlined_call_operand.vmem [shape: f32[1,128], index: 4, kind: input, shape index: {}]   ;;  %s5173_s5 = inlined_call_operand.vmem [shape: f32[1,128], index: 5, kind: input, shape index: {}]   ;;  %s5174_s6 = inlined_call_operand.vmem [shape: bf16[9,128,128], index: 6, kind: input, shape index: {}]   ;;  %s5175_s7 = inlined_call_operand.vmem [shape: f32[1,128], index: 7, kind: input, shape index: {}]   ;;  %s5176_s8 = inlined_call_operand.vmem [shape: f32[1,128], index: 8, kind: input, shape index: {}]   ;;  %s5177_s9 = inlined_call_operand.vmem [shape: bf16[9,128,128], index: 9, kind: input, shape index: {}]   ;;  %s5178_s10 = inlined_call_operand.vmem [shape: bf16[128,128], index: 10, kind: input, shape index: {}]   ;;  %s5179_s11 = inlined_call_operand.vmem [shape: f32[2,8,8,128], index: 11, kind: output, shape index: {}]  }
   0x1 LB: > { %s2934_s18 = sadd.s32 4294967295, %s4016_s17   ;;  %p2938_p0 = scmp.ge.s32.totalorder %s4016_s17, 1  ;;  %s4016_s17 = sphi %s4079_s17, %s21_s17  }
   0x2   : > { %p367_p1 = scmp.lt.s32.totalorder %s4016_s17, 3 }
   0x4   : > { %p368_p2 = pnand %p2938_p0, %p367_p1 }
   0x5   : > { %p422_p3 = scmp.lt.s32.totalorder (!%p368_p2), %s2934_s18, 1 }
   0x6   : > { %371 = sbr.rel (%p368_p2) target bundleno = 590 (0x24e), region = 64 }
   0xb   : > { %v3835_v0 = vld [vmem:[%s5174_s6 + $0x78] sm:$0xff]  ;;  %v4018_v3 = vmov 0.0   ;;  %v3834_v4 = vld [vmem:[%s5174_s6 + $0x70] sm:$0xff]  ;;  %v3833_v7 = vld [vmem:[%s5174_s6 + $0x68] sm:$0xff]  ;;  %s5181_s18 = smov (!%p422_p3, %s2934_s18), 1 }
   0xc   : > { %v3827_v1 = vld [vmem:[%s5174_s6 + $0x38] sm:$0xff]  ;;  %449 = vst [vmem:[#allocation2] sm:$0xff] %v4018_v3  ;;  %757 = vmatpush.bf16.msra.mxu0 %v3835_v0  ;;  %3972 = vmatpush.bf16.msra.mxu3 %v3835_v0  ;;  %v3826_v5 = vld [vmem:[%s5174_s6 + $0x30] sm:$0xff]  ;;  %v3825_v8 = vld [vmem:[%s5174_s6 + $0x28] sm:$0xff]  ;;  %s4128_s24 = sshll.u32 %s5181_s18, 6 }
   0xd   : > { %v3843_v2 = vld [vmem:[%s5174_s6 + $0xb8] sm:$0xff]  ;;  %450 = vst [vmem:[#allocation2 + $0x8] sm:$0xff] %v4018_v3  ;;  %834 = vmatpush.bf16.msra.mxu1 %v3827_v1  ;;  %v3842_v6 = vld [vmem:[%s5174_s6 + $0xb0] sm:$0xff]  ;;  %v3841_v9 = vld [vmem:[%s5174_s6 + $0xa8] sm:$0xff]  ;;  %s4138_s29 = scalar_lea.vmem %s5169_s1, %s4128_s24  ;;  %s4150_s14 = scalar_lea.vmem %s5168_s0, %s4128_s24 }
   0xe   : > { %940 = vmatpush.bf16.msra.mxu2 %v3843_v2  ;;  %451 = vst [vmem:[#allocation2 + $0x10] sm:$0xff] %v4018_v3  ;;  %v3832_v10 = vld [vmem:[%s5174_s6 + $0x60] sm:$0xff]  ;;  %v3831_v13 = vld [vmem:[%s5174_s6 + $0x58] sm:$0xff]  ;;  %v3830_v24 = vld [vmem:[%s5174_s6 + $0x50] sm:$0xff]  ;;  %s4279_s23 = scalar_lea.vmem %s5170_s2, %s4128_s24  ;;  %s4348_s21 = scalar_lea.vmem %s5171_s3, %s4128_s24 }
   0xf   : > { %453 = vst [vmem:[#allocation2 + $0x20] sm:$0xff] %v4018_v3  ;;  %v3824_v11 = vld [vmem:[%s5174_s6 + $0x20] sm:$0xff]  ;;  %v542_v15 = vld [vmem:[%s4138_s29 + $0x18] sm:$0xff]  ;;  %v3822_v25 = vld [vmem:[%s5174_s6 + $0x10] sm:$0xff]  ;;  %s5148_s12 = scalar_lea.vmem %s5179_s11, %s4128_s24 }
  0x10   : > { %455 = vst [vmem:[#allocation2 + $0x30] sm:$0xff] %v4018_v3  ;;  %758 = vmatpush.bf16.msra.mxu0 %v3834_v4  ;;  %3973 = vmatpush.bf16.msra.mxu3 %v3834_v4  ;;  %v3840_v12 = vld [vmem:[%s5174_s6 + $0xa0] sm:$0xff]  ;;  %v3823_v17 = vld [vmem:[%s5174_s6 + $0x18] sm:$0xff]  ;;  %v3838_v26 = vld [vmem:[%s5174_s6 + $0x90] sm:$0xff] }
  0x11   : > { %457 = vst [vmem:[#allocation2 + $0x40] sm:$0xff] %v4018_v3  ;;  %835 = vmatpush.bf16.msra.mxu1 %v3826_v5  ;;  %v539_v14 = vld [vmem:[%s4138_s29] sm:$0xff]  ;;  %v3839_v18 = vld [vmem:[%s5174_s6 + $0x98] sm:$0xff]  ;;  %v3829_v32 = vld [vmem:[%s5174_s6 + $0x48] sm:$0xff] }
  0x12   : > { %941 = vmatpush.bf16.msra.mxu2 %v3842_v6  ;;  %459 = vst [vmem:[#allocation2 + $0x50] sm:$0xff] %v4018_v3  ;;  %v543_v16 = vld [vmem:[%s4138_s29 + $0x20] sm:$0xff]  ;;  %v540_v33 = vld [vmem:[%s4138_s29 + $0x8] sm:$0xff]  ;;  %v3851_v45 = vld [vmem:[%s5174_s6 + $0xf8] sm:$0xff] }
  0x13   : > { %461 = vst [vmem:[#allocation2 + $0x60] sm:$0xff] %v4018_v3  ;;  %v4165_v19 = vld [vmem:[%s5172_s4] ss:$0 sm:$0xff]  ;;  %v3821_v34 = vld [vmem:[%s5174_s6 + $0x8] sm:$0xff]  ;;  %v3859_v48 = vld [vmem:[%s5174_s6 + $0x138] sm:$0xff] }
  0x14   : > { %759 = vmatpush.bf16.msra.mxu0 %v3833_v7  ;;  %3974 = vmatpush.bf16.msra.mxu3 %v3833_v7  ;;  %463 = vst [vmem:[#allocation2 + $0x70] sm:$0xff] %v4018_v3  ;;  %v547_v20 = vmul.f32 %v4165_v19, %v539_v14  ;;  %v550_v21 = vmul.f32 %v4165_v19, %v542_v15  ;;  %v492_v23 = vld [vmem:[%s4150_s14] sm:$0xff]  ;;  %v3837_v35 = vld [vmem:[%s5174_s6 + $0x88] sm:$0xff]  ;;  %v541_v49 = vld [vmem:[%s4138_s29 + $0x10] sm:$0xff] }
  0x15   : > { %836 = vmatpush.bf16.msra.mxu1 %v3825_v8  ;;  %465 = vst [vmem:[#allocation2 + $0x80] sm:$0xff] %v4018_v3  ;;  %v551_v22 = vmul.f32 %v4165_v19, %v543_v16  ;;  %v4187_v27 = vld [vmem:[%s5173_s5] ss:$0 sm:$0xff]  ;;  %v503_v28 = vmul.f32 %v4165_v19, %v492_v23  ;;  %v548_v36 = vmul.f32 %v4165_v19, %v540_v33  ;;  %v493_v50 = vld [vmem:[%s4150_s14 + $0x8] sm:$0xff]  ;;  %v494_v55 = vld [vmem:[%s4150_s14 + $0x10] sm:$0xff] }
  0x16   : > { %942 = vmatpush.bf16.msra.mxu2 %v3841_v9  ;;  %476 = vst [vmem:[#allocation4] sm:$0xff] %v4018_v3  ;;  %v555_v29 = vadd.f32 %v4187_v27, %v547_v20  ;;  %v4195_v30 = vadd.f32 %v4187_v27, %v550_v21  ;;  %v3828_v42 = vld [vmem:[%s5174_s6 + $0x40] sm:$0xff]  ;;  %v544_v54 = vld [vmem:[%s4138_s29 + $0x28] sm:$0xff]  ;;  %v545_v57 = vld [vmem:[%s4138_s29 + $0x30] sm:$0xff]  ;;  %v549_v58 = vmul.f32 %v4165_v19, %v541_v49 }
  0x17   : > { %478 = vst [vmem:[#allocation4 + $0x10] sm:$0xff] %v4018_v3  ;;  %v4198_v31 = vadd.f32 %v4187_v27, %v551_v22  ;;  %v514_v37 = vadd.f32 %v4187_v27, %v503_v28  ;;  %v4219_v41 = vadd.f32 %v4187_v27, %v548_v36  ;;  %v3820_v43 = vld [vmem:[%s5174_s6] sm:$0xff]  ;;  %v504_v59 = vmul.f32 %v4165_v19, %v493_v50  ;;  %v3850_v60 = vld [vmem:[%s5174_s6 + $0xf0] sm:$0xff]  ;;  %v495_v4 = vld [vmem:[%s4150_s14 + $0x18] sm:$0xff] }
  0x18   : > { %760 = vmatpush.bf16.msra.mxu0 %v3832_v10  ;;  %3975 = vmatpush.bf16.msra.mxu3 %v3832_v10  ;;  %480 = vst [vmem:[#allocation4 + $0x20] sm:$0xff] %v4018_v3  ;;  %v563_v38 = vmax.f32 %v555_v29, 0.0  ;;  %v566_v39 = vmax.f32 %v4195_v30, 0.0  ;;  %v3836_v44 = vld [vmem:[%s5174_s6 + $0x80] sm:$0xff]  ;;  %v3858_v61 = vld [vmem:[%s5174_s6 + $0x130] sm:$0xff]  ;;  %v552_v62 = vmul.f32 %v4165_v19, %v544_v54  ;;  %v505_v63 = vmul.f32 %v4165_v19, %v494_v55  ;;  %v3849_v5 = vld [vmem:[%s5174_s6 + $0xe8] sm:$0xff] }
  0x19   : > { %837 = vmatpush.bf16.msra.mxu1 %v3824_v11  ;;  %482 = vst [vmem:[#allocation4 + $0x30] sm:$0xff] %v4018_v3  ;;  %v567_v40 = vmax.f32 %v4198_v31, 0.0  ;;  %v564_v46 = vmax.f32 %v4219_v41, 0.0  ;;  %v4237_v47 = vmax.f32 %v514_v37, 0.0  ;;  %v553_v0 = vmul.f32 %v4165_v19, %v545_v57  ;;  %v3857_v6 = vld [vmem:[%s5174_s6 + $0x128] sm:$0xff]  ;;  %v3875_v11 = vld [vmem:[%s5174_s6 + $0x1b8] sm:$0xff] }
  0x1a   : > { %943 = vmatpush.bf16.msra.mxu2 %v3840_v12  ;;  %484 = vst [vmem:[#allocation4 + $0x40] sm:$0xff] %v4018_v3  ;;  %v688_v51 = vpack.c.bf16 %v563_v38, %v4018_v3  ;;  %v4283_v1 = vadd.f32 %v4187_v27, %v549_v58  ;;  %v515_v2 = vadd.f32 %v4187_v27, %v504_v59  ;;  %v496_v12 = vld [vmem:[%s4150_s14 + $0x20] sm:$0xff]  ;;  %v3855_v36 = vld [vmem:[%s5174_s6 + $0x118] sm:$0xff]  ;;  %v3846_v41 = vld [vmem:[%s5174_s6 + $0xd0] sm:$0xff] }
  0x1b   : > { %486 = vst [vmem:[#allocation4 + $0x50] sm:$0xff] %v4018_v3  ;;  %v690_v52 = vpack.c.bf16 %v567_v40, %v566_v39  ;;  %v4252_v53 = vpack.c.bf16 %v564_v46, %v563_v38  ;;  %v871_v56 = vpack.c.bf16 %v4237_v47, %v4018_v3  ;;  %v4295_v7 = vadd.f32 %v4187_v27, %v552_v62  ;;  %v580_v14 = vld [vmem:[%s4279_s23] sm:$0xff]  ;;  %v3854_v49 = vld [vmem:[%s5174_s6 + $0x110] sm:$0xff]  ;;  %v3867_v54 = vld [vmem:[%s5174_s6 + $0x178] sm:$0xff] }
  0x1c   : > { %761 = vmatpush.bf16.msra.mxu0 %v3831_v13  ;;  %3976 = vmatpush.bf16.msra.mxu3 %v3831_v13  ;;  %488 = vst [vmem:[#allocation4 + $0x60] sm:$0xff] %v4018_v3  ;;  %v516_v8 = vadd.f32 %v4187_v27, %v505_v63  ;;  %v506_v9 = vmul.f32 %v4165_v19, %v495_v4  ;;  %v4311_v15 = vmax.f32 %v515_v2, 0.0  ;;  %v3848_v20 = vld [vmem:[%s5174_s6 + $0xe0] sm:$0xff]  ;;  %v565_v22 = vmax.f32 %v4283_v1, 0.0  ;;  %v497_v55 = vld [vmem:[%s4150_s14 + $0x28] sm:$0xff]  ;;  %v3874_v62 = vld [vmem:[%s5174_s6 + $0x1b0] sm:$0xff] }
  0x1d   : > { %838 = vmatpush.bf16.msra.mxu1 %v3823_v17  ;;  %490 = vst [vmem:[#allocation4 + $0x70] sm:$0xff] %v4018_v3  ;;  %v4301_v10 = vadd.f32 %v4187_v27, %v553_v0  ;;  %v507_v16 = vmul.f32 %v4165_v19, %v496_v12  ;;  %v581_v17 = vld [vmem:[%s4279_s23 + $0x8] sm:$0xff]  ;;  %v3856_v21 = vld [vmem:[%s5174_s6 + $0x120] sm:$0xff]  ;;  %v568_v23 = vmax.f32 %v4295_v7, 0.0  ;;  %v508_v57 = vmul.f32 %v4165_v19, %v497_v55  ;;  %v546_v30 = vld [vmem:[%s4138_s29 + $0x38] sm:$0xff] }
  0x1e   : > { %944 = vmatpush.bf16.msra.mxu2 %v3839_v18  ;;  %1701 = vst [vmem:[#allocation5] sm:$0xff] %v4018_v3  ;;  %v517_v13 = vadd.f32 %v4187_v27, %v506_v9  ;;  %v588_v18 = vmul.f32 %v4165_v19, %v580_v14  ;;  %v689_v38 = vpack.c.bf16 %v565_v22, %v564_v46  ;;  %v3853_v58 = vld [vmem:[%s5174_s6 + $0x108] sm:$0xff]  ;;  %v3844_v0 = vld [vmem:[%s5174_s6 + $0xc0] sm:$0xff]  ;;  %v3899_v7 = vld [vmem:[%s5178_s10 + $0x38] sm:$0xff] }
  0x1f   : > { %1702 = vst [vmem:[#allocation5 + $0x8] sm:$0xff] %v4018_v3  ;;  %v518_v28 = vadd.f32 %v4187_v27, %v507_v16  ;;  %v519_v63 = vadd.f32 %v4187_v27, %v508_v57  ;;  %v3873_v2 = vld [vmem:[%s5174_s6 + $0x1a8] sm:$0xff]  ;;  %v3852_v4 = vld [vmem:[%s5174_s6 + $0x100] sm:$0xff]  ;;  %v583_v16 = vld [vmem:[%s4279_s23 + $0x18] sm:$0xff] }
  0x20   : > { %762 = vmatpush.bf16.msra.mxu0 %v3830_v24  ;;  %3977 = vmatpush.bf16.msra.mxu3 %v3830_v24  ;;  %1703 = vst [vmem:[#allocation5 + $0x10] sm:$0xff] %v4018_v3  ;;  %v4325_v24 = vmax.f32 %v516_v8, 0.0  ;;  %v4331_v29 = vmax.f32 %v517_v13, 0.0  ;;  %v582_v8 = vld [vmem:[%s4279_s23 + $0x10] sm:$0xff]  ;;  %v3883_v13 = vld [vmem:[%s5174_s6 + $0x1f8] sm:$0xff]  ;;  %v3864_v55 = vld [vmem:[%s5174_s6 + $0x160] sm:$0xff] }
  0x21   : > { %839 = vmatpush.bf16.msra.mxu1 %v3822_v25  ;;  %1704 = vst [vmem:[#allocation5 + $0x18] sm:$0xff] %v4018_v3  ;;  %v589_v25 = vmul.f32 %v4165_v19, %v581_v17  ;;  %v590_v17 = vmul.f32 %v4165_v19, %v582_v8  ;;  %v3870_v8 = vld [vmem:[%s5174_s6 + $0x190] sm:$0xff] }
  0x22   : > { %945 = vmatpush.bf16.msra.mxu2 %v3838_v26  ;;  %1706 = vst [vmem:[#allocation5 + $0x28] sm:$0xff] %v4018_v3  ;;  %v569_v26 = vmax.f32 %v4301_v10, 0.0 }
  0x23   : > { %1707 = vst [vmem:[#allocation5 + $0x30] sm:$0xff] %v4018_v3  ;;  %v4338_v33 = vadd.f32 %v4187_v27, %v589_v25  ;;  %v591_v25 = vmul.f32 %v4165_v19, %v583_v16 }
  0x24   : > { %763 = vmatpush.bf16.msra.mxu0 %v3829_v32  ;;  %3978 = vmatpush.bf16.msra.mxu3 %v3829_v32  ;;  %1709 = vst [vmem:[#allocation5 + $0x40] sm:$0xff] %v4018_v3  ;;  %v4334_v32 = vadd.f32 %v4187_v27, %v588_v18 }
  0x25   : > { %840 = vmatpush.bf16.msra.mxu1 %v3821_v34  ;;  %1710 = vst [vmem:[#allocation5 + $0x48] sm:$0xff] %v4018_v3  ;;  %v4341_v34 = vmax.f32 %v518_v28, 0.0  ;;  %v605_v37 = vmax.f32 %v4338_v33, 0.0  ;;  %v3872_v28 = vld [vmem:[%s5174_s6 + $0x1a0] sm:$0xff] }
  0x26   : > { %946 = vmatpush.bf16.msra.mxu2 %v3837_v35  ;;  %1712 = vst [vmem:[#allocation5 + $0x58] sm:$0xff] %v4018_v3  ;;  %v3847_v35 = vld [vmem:[%s5174_s6 + $0xd8] sm:$0xff] }
  0x27   : > { %1713 = vst [vmem:[#allocation5 + $0x60] sm:$0xff] %v4018_v3 }
  0x28   : > { %764 = vmatpush.bf16.msra.mxu0 %v3828_v42  ;;  %3979 = vmatpush.bf16.msra.mxu3 %v3828_v42  ;;  %1715 = vst [vmem:[#allocation5 + $0x70] sm:$0xff] %v4018_v3  ;;  %v691_v42 = vpack.c.bf16 %v569_v26, %v568_v23 }
  0x29   : > { %841 = vmatpush.bf16.msra.mxu1 %v3820_v43  ;;  %1716 = vst [vmem:[#allocation5 + $0x78] sm:$0xff] %v4018_v3  ;;  %v872_v43 = vpack.c.bf16 %v4325_v24, %v4311_v15 }
  0x2a   : > { %947 = vmatpush.bf16.msra.mxu2 %v3836_v44  ;;  %1718 = vst [vmem:[#allocation5 + $0x88] sm:$0xff] %v4018_v3  ;;  %v620_v44 = vld [vmem:[%s4348_s21] sm:$0xff] }
  0x2b   : > { %765 = vmatmul.bf16.vlgmr.msra.gmra.mxu0 %v688_v51  ;;  %1719 = vst [vmem:[#allocation5 + $0x90] sm:$0xff] %v4018_v3  ;;  %775 = vmatmul.bf16.vlgmr.msra.gmra.mxu3 %v690_v52  ;;  %v628_v50 = vmul.f32 %v4165_v19, %v620_v44 }
  0x2c   : > { %1054 = vmatpush.bf16.msrb.mxu3 %v3851_v45  ;;  %1160 = vmatpush.bf16.msrb.mxu0 %v3859_v48  ;;  %1721 = vst [vmem:[#allocation5 + $0xa0] sm:$0xff] %v4018_v3  ;;  %v621_v45 = vld [vmem:[%s4348_s21 + $0x8] sm:$0xff] }
  0x2d   : > { %948 = vmatmul.bf16.vlgmr.msra.gmra.mxu2 %v871_v56  ;;  %1722 = vst [vmem:[#allocation5 + $0xa8] sm:$0xff] %v4018_v3  ;;  %v652_v48 = vld [vmem:[#allocation2 + $0x7] sm:$0xff]  ;;  %v629_v51 = vmul.f32 %v4165_v19, %v621_v45  ;;  %v636_v59 = vadd.f32 %v4187_v27, %v628_v50  ;;  %1274 = vmatpush.bf16.msrb.mxu1 %v3867_v54  ;;  %v3882_v50 = vld [vmem:[%s5174_s6 + $0x1f0] sm:$0xff]  ;;  %v623_v54 = vld [vmem:[%s4348_s21 + $0x18] sm:$0xff] }
  0x2e   : > { %1724 = vst [vmem:[#allocation5 + $0xb8] sm:$0xff] %v4018_v3  ;;  %1388 = vmatpush.bf16.msrb.mxu2 %v3875_v11  ;;  %v3845_v56 = vld [vmem:[%s5174_s6 + $0xc8] sm:$0xff] }
  0x2f   : > { %1725 = vst [vmem:[#allocation5 + $0xc0] sm:$0xff] %v4018_v3  ;;  %v644_v11 = vmax.f32 %v636_v59, 0.0  ;;  %v3863_v59 = vld [vmem:[%s5174_s6 + $0x158] sm:$0xff] }
  0x30   : > { %1055 = vmatpush.bf16.msrb.mxu3 %v3850_v60  ;;  %1161 = vmatpush.bf16.msrb.mxu0 %v3858_v61  ;;  %1727 = vst [vmem:[#allocation5 + $0xd0] sm:$0xff] %v4018_v3  ;;  %v637_v60 = vadd.f32 %v4187_v27, %v629_v51  ;;  %v3866_v61 = vld [vmem:[%s5174_s6 + $0x170] sm:$0xff] }
  0x31   : > { %1728 = vst [vmem:[#allocation5 + $0xd8] sm:$0xff] %v4018_v3  ;;  %1275 = vmatpush.bf16.msrb.mxu1 %v3866_v61  ;;  %v584_v61 = vld [vmem:[%s4279_s23 + $0x20] sm:$0xff] }
  0x32   : > { %1729 = vst [vmem:[#allocation5 + $0xe0] sm:$0xff] %v4018_v3  ;;  %1389 = vmatpush.bf16.msrb.mxu2 %v3874_v62  ;;  %v645_v12 = vmax.f32 %v637_v60, 0.0  ;;  %v3871_v60 = vld [vmem:[%s5174_s6 + $0x198] sm:$0xff]  ;;  %v3881_v62 = vld [vmem:[%s5174_s6 + $0x1e8] sm:$0xff] }
  0x33   : > { %1730 = vst [vmem:[#allocation5 + $0xe8] sm:$0xff] %v4018_v3  ;;  %v604_v3 = vmax.f32 %v4334_v32, 0.0  ;;  %v3889_v32 = vld [vmem:[%s5174_s6 + $0x228] sm:$0xff] }
  0x34   : > { %1056 = vmatpush.bf16.msrb.mxu3 %v3849_v5  ;;  %1162 = vmatpush.bf16.msrb.mxu0 %v3857_v6  ;;  %531 = vst [vmem:[#allocation2 + $0x18] sm:$0xff] %v4237_v47  ;;  %v498_v5 = vld [vmem:[%s4150_s14 + $0x30] sm:$0xff]  ;;  %v4417_v6 = vmax.f32 %v519_v63, 0.0  ;;  %v4448_v45 = vpack.c.bf16 %v645_v12, %v644_v11 }
  0x35   : > { %532 = vst [vmem:[#allocation2 + $0x28] sm:$0xff] %v4311_v15  ;;  %v509_v14 = vmul.f32 %v4165_v19, %v498_v5  ;;  %v3890_v63 = vld [vmem:[%s5174_s6 + $0x230] sm:$0xff] }
  0x36   : > { %533 = vst [vmem:[#allocation2 + $0x38] sm:$0xff] %v4325_v24  ;;  %1390 = vmatpush.bf16.msrb.mxu2 %v3873_v2  ;;  %v4492_v2 = vpack.c.bf16 %v605_v37, %v604_v3 }
  0x37   : > { %534 = vst [vmem:[#allocation2 + $0x48] sm:$0xff] %v4331_v29 }
  0x38   : > { %1057 = vmatpush.bf16.msrb.mxu3 %v3848_v20  ;;  %1163 = vmatpush.bf16.msrb.mxu0 %v3856_v21  ;;  %535 = vst [vmem:[#allocation2 + $0x58] sm:$0xff] %v4341_v34  ;;  %v3891_v20 = vld [vmem:[%s5174_s6 + $0x238] sm:$0xff]  ;;  %v3865_v21 = vld [vmem:[%s5174_s6 + $0x168] sm:$0xff] }
  0x39   : > { %612 = vst [vmem:[#allocation4 + $0x8] sm:$0xff] %v604_v3  ;;  %1276 = vmatpush.bf16.msrb.mxu1 %v3865_v21  ;;  %v3862_v3 = vld [vmem:[%s5174_s6 + $0x150] sm:$0xff] }
  0x3a   : > { %613 = vst [vmem:[#allocation4 + $0x18] sm:$0xff] %v605_v37  ;;  %1391 = vmatpush.bf16.msrb.mxu2 %v3872_v28  ;;  %v585_v37 = vld [vmem:[%s4279_s23 + $0x28] sm:$0xff] }
  0x3b   : > { %v4379_v46 = vld [vmem:[#allocation2 + $0x17] sm:$0xff]  ;;  %770 = vmatmul.bf16.gmra.mxu0 %v689_v38  ;;  %780 = vmatmul.bf16.gmra.mxu3 %v691_v42  ;;  %536 = vst [vmem:[#allocation2 + $0x68] sm:$0xff] %v4417_v6  ;;  %v4442_v38 = vadd.f32 %v4187_v27, %v591_v25  ;;  %v593_v16 = vmul.f32 %v4165_v19, %v585_v37 }
  0x3c   : > { %1058 = vmatpush.bf16.msrb.mxu3 %v3847_v35  ;;  %1164 = vmatpush.bf16.msrb.mxu0 %v3855_v36  ;;  %v660_v52 = vpack.c.bf16 %v4379_v46, %v652_v48  ;;  %v520_v35 = vadd.f32 %v4187_v27, %v509_v14  ;;  %v4439_v36 = vadd.f32 %v4187_v27, %v590_v17  ;;  %v4444_v42 = vld [vmem:[#allocation2 + $0x27] sm:$0xff] }
  0x3d   : > { %953 = vmatmul.bf16.gmra.mxu2 %v872_v43  ;;  %v4446_v43 = vld [vmem:[#allocation2 + $0x37] sm:$0xff]  ;;  %v607_v51 = vmax.f32 %v4442_v38, 0.0  ;;  %1277 = vmatpush.bf16.msrb.mxu1 %v3864_v55  ;;  %v3869_v14 = vld [vmem:[%s5174_s6 + $0x188] sm:$0xff]  ;;  %v4523_v21 = vadd.f32 %v4187_v27, %v593_v16  ;;  %v3860_v55 = vld [vmem:[%s5174_s6 + $0x140] sm:$0xff] }
  0x3e   : > { %842 = vmatmul.bf16.vlgmr.msra.gmra.mxu1 %v660_v52  ;;  %v4450_v48 = vmax.f32 %v520_v35, 0.0  ;;  %v622_v52 = vld [vmem:[%s4348_s21 + $0x10] sm:$0xff]  ;;  %1392 = vmatpush.bf16.msrb.mxu2 %v3871_v60  ;;  %v4525_v25 = vld [vmem:[#allocation2 + $0x47] sm:$0xff] }
  0x3f   : > { %615 = vst [vmem:[#allocation4 + $0x38] sm:$0xff] %v607_v51  ;;  %v630_v57 = vmul.f32 %v4165_v19, %v622_v52  ;;  %v4527_v28 = vld [vmem:[#allocation2 + $0x57] sm:$0xff]  ;;  %v624_v52 = vld [vmem:[%s4348_s21 + $0x20] sm:$0xff] }
  0x40   : > { %1059 = vmatpush.bf16.msrb.mxu3 %v3846_v41  ;;  %1165 = vmatpush.bf16.msrb.mxu0 %v3854_v49  ;;  %v977_v9 = vld [vmem:[#allocation4 + $0x7] sm:$0xff]  ;;  %v606_v41 = vmax.f32 %v4439_v36, 0.0  ;;  %v873_v49 = vpack.c.bf16 %v4341_v34, %v4331_v29  ;;  %537 = vst [vmem:[#allocation2 + $0x78] sm:$0xff] %v4450_v48 }
  0x41   : > { %v978_v18 = vld [vmem:[#allocation4 + $0x17] sm:$0xff]  ;;  %1278 = vmatpush.bf16.msrb.mxu1 %v3863_v59  ;;  %v586_v60 = vld [vmem:[%s4279_s23 + $0x30] sm:$0xff] }
  0x42   : > { %v985_v44 = vpack.c.bf16 %v978_v18, %v977_v9  ;;  %614 = vst [vmem:[#allocation4 + $0x28] sm:$0xff] %v606_v41  ;;  %v3880_v9 = vld [vmem:[%s5174_s6 + $0x1e0] sm:$0xff]  ;;  %1393 = vmatpush.bf16.msrb.mxu2 %v3870_v8 }
  0x43   : > { %v658_v16 = vld [vmem:[#allocation2 + $0x67] sm:$0xff] }
  0x44   : > { %1060 = vmatpush.bf16.msrb.mxu3 %v3845_v56  ;;  %1166 = vmatpush.bf16.msrb.mxu0 %v3853_v58  ;;  %v661_v56 = vpack.c.bf16 %v4446_v43, %v4444_v42  ;;  %v631_v58 = vmul.f32 %v4165_v19, %v623_v54  ;;  %v625_v54 = vld [vmem:[%s4348_s21 + $0x28] sm:$0xff] }
  0x45   : > { %1279 = vmatpush.bf16.msrb.mxu1 %v3862_v3  ;;  %v633_v59 = vmul.f32 %v4165_v19, %v625_v54  ;;  %v3887_v3 = vld [vmem:[%s5174_s6 + $0x218] sm:$0xff] }
  0x46   : > { %v639_v5 = vadd.f32 %v4187_v27, %v631_v58  ;;  %v980_v18 = vld [vmem:[#allocation4 + $0x37] sm:$0xff]  ;;  %1394 = vmatpush.bf16.msrb.mxu2 %v3869_v14  ;;  %v632_v58 = vmul.f32 %v4165_v19, %v624_v52 }
  0x48   : > { %1061 = vmatpush.bf16.msrb.mxu3 %v3844_v0  ;;  %1167 = vmatpush.bf16.msrb.mxu0 %v3852_v4  ;;  %v592_v0 = vmul.f32 %v4165_v19, %v584_v61  ;;  %v638_v4 = vadd.f32 %v4187_v27, %v630_v57  ;;  %v662_v57 = vpack.c.bf16 %v4527_v28, %v4525_v25  ;;  %v587_v61 = vld [vmem:[%s4279_s23 + $0x38] sm:$0xff] }
  0x49   : > { %v979_v17 = vld [vmem:[#allocation4 + $0x27] sm:$0xff]  ;;  %v640_v8 = vadd.f32 %v4187_v27, %v632_v58 }
  0x4a   : > { %v4506_v33 = vadd.f32 %v4187_v27, %v592_v0  ;;  %v646_v12 = vmax.f32 %v638_v4, 0.0  ;;  %v986_v35 = vpack.c.bf16 %v980_v18, %v979_v17  ;;  %v594_v0 = vmul.f32 %v4165_v19, %v586_v60  ;;  %v659_v17 = vld [vmem:[#allocation2 + $0x77] sm:$0xff]  ;;  %v3885_v60 = vld [vmem:[%s5174_s6 + $0x208] sm:$0xff] }
  0x4b   : > { %1062 = vmatmul.bf16.vlgmr.msrb.gmra.mxu3 %v985_v44  ;;  %1168 = vmatmul.bf16.vlgmr.msrb.gmra.mxu0 %v4448_v45  ;;  %v595_v4 = vmul.f32 %v4165_v19, %v587_v61  ;;  %v648_v37 = vmax.f32 %v640_v8, 0.0  ;;  %v663_v52 = vpack.c.bf16 %v659_v17, %v658_v16  ;;  %v499_v8 = vld [vmem:[%s4150_s14 + $0x38] sm:$0xff] }
  0x4c   : > { %1502 = vmatpush.bf16.msra.mxu3 %v3883_v13  ;;  %1616 = vmatpush.bf16.msra.mxu0 %v3891_v20  ;;  %v608_v11 = vmax.f32 %v4506_v33, 0.0  ;;  %v647_v13 = vmax.f32 %v639_v5, 0.0  ;;  %v3861_v20 = vld [vmem:[%s5174_s6 + $0x148] sm:$0xff]  ;;  %v4561_v5 = vpack.c.bf16 %v607_v51, %v606_v41  ;;  %v602_v36 = vadd.f32 %v4187_v27, %v594_v0 }
  0x4d   : > { %958 = vmatmul.bf16.gmra.mxu2 %v873_v49  ;;  %v609_v49 = vmax.f32 %v4523_v21, 0.0  ;;  %1280 = vmatpush.bf16.msrb.mxu1 %v3861_v20  ;;  %v603_v38 = vadd.f32 %v4187_v27, %v595_v4  ;;  %v1319_v21 = vpack.c.bf16 %v4444_v42, %v4379_v46  ;;  %v3886_v46 = vld [vmem:[%s5174_s6 + $0x210] sm:$0xff]  ;;  %v1320_v4 = vpack.c.bf16 %v4525_v25, %v4446_v43 }
  0x4e   : > { %847 = vmatmul.bf16.gmra.mxu1 %v661_v56  ;;  %616 = vst [vmem:[#allocation4 + $0x48] sm:$0xff] %v608_v11  ;;  %v4529_v44 = vpack.c.bf16 %v647_v13, %v646_v12  ;;  %v3868_v56 = vld [vmem:[%s5174_s6 + $0x180] sm:$0xff]  ;;  %v610_v41 = vmax.f32 %v602_v36, 0.0  ;;  %v1321_v43 = vpack.c.bf16 %v658_v16, %v4527_v28  ;;  %v1434_v25 = vpack.c.bf16 %v566_v39, %v565_v22 }
  0x4f   : > { %617 = vst [vmem:[#allocation4 + $0x58] sm:$0xff] %v609_v49  ;;  %1395 = vmatpush.bf16.msrb.mxu2 %v3868_v56  ;;  %v611_v51 = vmax.f32 %v603_v38, 0.0  ;;  %v3877_v56 = vld [vmem:[%s5174_s6 + $0x1c8] sm:$0xff]  ;;  %v1207_v42 = vpack.c.bf16 %v609_v49, %v608_v11  ;;  %v3884_v11 = vld [vmem:[%s5174_s6 + $0x200] sm:$0xff]  ;;  %v1547_v38 = vpack.c.bf16 %v4311_v15, %v4237_v47  ;;  %v1435_v47 = vpack.c.bf16 %v568_v23, %v567_v40 }
  0x50   : > { %1503 = vmatpush.bf16.msra.mxu3 %v3882_v50  ;;  %1617 = vmatpush.bf16.msra.mxu0 %v3890_v63  ;;  %v874_v50 = vpack.c.bf16 %v4450_v48, %v4417_v6  ;;  %v3888_v63 = vld [vmem:[%s5174_s6 + $0x220] sm:$0xff]  ;;  %618 = vst [vmem:[#allocation4 + $0x68] sm:$0xff] %v610_v41  ;;  %v554_v39 = vmul.f32 %v4165_v19, %v546_v30 }
  0x51   : > { %1281 = vmatpush.bf16.msrb.mxu1 %v3860_v55  ;;  %619 = vst [vmem:[#allocation4 + $0x78] sm:$0xff] %v611_v51  ;;  %v3912_v30 = vld [vmem:[%s5177_s9 + $0x60] sm:$0xff] }
  0x52   : > { %v562_v31 = vadd.f32 %v4187_v27, %v554_v39  ;;  %v3938_v39 = vld [vmem:[%s5177_s9 + $0x130] sm:$0xff] }
  0x53   : > { %1893 = vmatpush.bf16.msra.mxu2 %v3899_v7  ;;  %v3921_v7 = vld [vmem:[%s5177_s9 + $0xa8] sm:$0xff] }
  0x54   : > { %1504 = vmatpush.bf16.msra.mxu3 %v3881_v62  ;;  %1618 = vmatpush.bf16.msra.mxu0 %v3889_v32  ;;  %v3879_v62 = vld [vmem:[%s5174_s6 + $0x1d8] sm:$0xff]  ;;  %v3878_v32 = vld [vmem:[%s5174_s6 + $0x1d0] sm:$0xff]  ;;  %v570_v40 = vmax.f32 %v562_v31, 0.0 }
  0x55   : > { %v981_v13 = vld [vmem:[#allocation4 + $0x47] sm:$0xff] }
  0x56   : > { %v982_v14 = vld [vmem:[#allocation4 + $0x57] sm:$0xff] }
  0x57   : > { %v987_v18 = vpack.c.bf16 %v982_v14, %v981_v13  ;;  %v3895_v13 = vld [vmem:[%s5178_s10 + $0x18] sm:$0xff] }
  0x58   : > { %1505 = vmatpush.bf16.msra.mxu3 %v3880_v9  ;;  %v641_v9 = vadd.f32 %v4187_v27, %v633_v59  ;;  %1619 = vmatpush.bf16.msra.mxu0 %v3888_v63  ;;  %v3876_v59 = vld [vmem:[%s5174_s6 + $0x1c0] sm:$0xff]  ;;  %v983_v63 = vld [vmem:[#allocation4 + $0x67] sm:$0xff] }
  0x59   : > { %v984_v33 = vld [vmem:[#allocation4 + $0x77] sm:$0xff] }
  0x5a   : > { %v649_v12 = vmax.f32 %v641_v9, 0.0  ;;  %v988_v49 = vpack.c.bf16 %v984_v33, %v983_v63  ;;  %v1208_v9 = vpack.c.bf16 %v611_v51, %v610_v41  ;;  %v1548_v41 = vpack.c.bf16 %v4331_v29, %v4325_v24 }
  0x5b   : > { %1067 = vmatmul.bf16.gmra.mxu3 %v986_v35  ;;  %1173 = vmatmul.bf16.gmra.mxu0 %v4529_v44  ;;  %v626_v35 = vld [vmem:[%s4348_s21 + $0x30] sm:$0xff] }
  0x5c   : > { %1506 = vmatpush.bf16.msra.mxu3 %v3879_v62  ;;  %1620 = vmatpush.bf16.msra.mxu0 %v3887_v3  ;;  %v4573_v20 = vpack.c.bf16 %v649_v12, %v648_v37  ;;  %v634_v54 = vmul.f32 %v4165_v19, %v626_v35  ;;  %v3896_v37 = vld [vmem:[%s5178_s10 + $0x20] sm:$0xff]  ;;  %v3893_v35 = vld [vmem:[%s5178_s10 + $0x8] sm:$0xff] }
  0x5d   : > { %963 = vmatmul.bf16.gmra.mxu2 %v874_v50  ;;  %v627_v50 = vld [vmem:[%s4348_s21 + $0x38] sm:$0xff] }
  0x5e   : > { %852 = vmatmul.bf16.gmra.mxu1 %v662_v57  ;;  %v635_v55 = vmul.f32 %v4165_v19, %v627_v50  ;;  %v642_v57 = vadd.f32 %v4187_v27, %v634_v54  ;;  %v3892_v54 = vld [vmem:[%s5178_s10] sm:$0xff] }
  0x60   : > { %1507 = vmatpush.bf16.msra.mxu3 %v3878_v32  ;;  %v643_v58 = vadd.f32 %v4187_v27, %v635_v55  ;;  %1621 = vmatpush.bf16.msra.mxu0 %v3886_v46  ;;  %v650_v61 = vmax.f32 %v642_v57, 0.0  ;;  %v510_v32 = vmul.f32 %v4165_v19, %v499_v8  ;;  %v1436_v19 = vpack.c.bf16 %v570_v40, %v569_v26  ;;  %v3907_v46 = vld [vmem:[%s5177_s9 + $0x38] sm:$0xff]  ;;  %v3904_v8 = vld [vmem:[%s5177_s9 + $0x20] sm:$0xff]  ;;  %v3902_v40 = vld [vmem:[%s5177_s9 + $0x10] sm:$0xff] }
  0x61   : > { %1816 = vmatpush.bf16.msra.mxu1 %v3907_v46  ;;  %v3919_v46 = vld [vmem:[%s5177_s9 + $0x98] sm:$0xff] }
  0x62   : > { %v651_v62 = vmax.f32 %v643_v58, 0.0  ;;  %v521_v3 = vadd.f32 %v4187_v27, %v510_v32  ;;  %v3898_v27 = vld [vmem:[%s5178_s10 + $0x30] sm:$0xff] }
  0x63   : > { %1894 = vmatpush.bf16.msra.mxu2 %v3898_v27 }
  0x64   : > { %1508 = vmatpush.bf16.msra.mxu3 %v3877_v56  ;;  %1622 = vmatpush.bf16.msra.mxu0 %v3885_v60  ;;  %v4601_v0 = vpack.c.bf16 %v651_v62, %v650_v61  ;;  %v529_v36 = vmax.f32 %v521_v3, 0.0 }
  0x66   : > { %538 = vst [vmem:[#allocation2 + $0x88] sm:$0xff] %v529_v36 }
  0x68   : > { %1509 = vmatpush.bf16.msra.mxu3 %v3876_v59  ;;  %1623 = vmatpush.bf16.msra.mxu0 %v3884_v11  ;;  %v3906_v59 = vld [vmem:[%s5177_s9 + $0x30] sm:$0xff] }
  0x69   : > { %1817 = vmatpush.bf16.msra.mxu1 %v3906_v59 }
  0x6b   : > { %1072 = vmatmul.bf16.gmra.mxu3 %v987_v18  ;;  %1178 = vmatmul.bf16.gmra.mxu0 %v4573_v20 }
  0x6d   : > { %1396 = vmatmul.bf16.vlgmr.msrb.gmra.mxu2 %v1319_v21 }
  0x6e   : > { %857 = vmatmul.bf16.gmra.mxu1 %v663_v52 }
  0x7b   : > { %1077 = vmatmul.bf16.gmra.mxu3 %v988_v49  ;;  %1183 = vmatmul.bf16.gmra.mxu0 %v4601_v0 }
  0x7d   : > { %1401 = vmatmul.bf16.gmra.mxu2 %v1320_v4 }
  0x7e   : > { %1282 = vmatmul.bf16.vlgmr.msrb.gmra.mxu1 %v4492_v2  ;;  %v1318_v2 = vld [vmem:[#allocation2 + $0x87] sm:$0xff] }
  0x7f   : > { %v1322_v51 = vpack.c.bf16 %v1318_v2, %v659_v17  ;;  %v3894_v17 = vld [vmem:[%s5178_s10 + $0x10] sm:$0xff]  ;;  %v3923_v2 = vld [vmem:[%s5177_s9 + $0xb8] sm:$0xff] }
  0x80   : > { %2113 = vmatpush.bf16.msrb.mxu0 %v3923_v2  ;;  %v3918_v2 = vld [vmem:[%s5177_s9 + $0x90] sm:$0xff] }
  0x8b   : > { %1510 = vmatmul.bf16.vlgmr.msra.gmra.mxu3 %v4252_v53  ;;  %1624 = vmatmul.bf16.vlgmr.msra.gmra.mxu0 %v1547_v38  ;;  %v1549_v53 = vpack.c.bf16 %v4417_v6, %v4341_v34  ;;  %v1550_v34 = vpack.c.bf16 %v529_v36, %v4450_v48 }
  0x8d   : > { %1406 = vmatmul.bf16.gmra.mxu2 %v1321_v43  ;;  %v3903_v43 = vld [vmem:[%s5177_s9 + $0x18] sm:$0xff] }
  0x8e   : > { %1287 = vmatmul.bf16.gmra.mxu1 %v4561_v5  ;;  %v3897_v5 = vld [vmem:[%s5178_s10 + $0x28] sm:$0xff] }
  0x8f   : > { %1895 = vmatpush.bf16.msra.mxu2 %v3897_v5 }
  0x93   : > { %1896 = vmatpush.bf16.msra.mxu2 %v3896_v37 }
  0x97   : > { %1897 = vmatpush.bf16.msra.mxu2 %v3895_v13  ;;  %v3920_v13 = vld [vmem:[%s5177_s9 + $0xa0] sm:$0xff] }
  0x9b   : > { %1515 = vmatmul.bf16.gmra.mxu3 %v1434_v25  ;;  %1629 = vmatmul.bf16.gmra.mxu0 %v1548_v41  ;;  %v3913_v25 = vld [vmem:[%s5177_s9 + $0x68] sm:$0xff]  ;;  %v3939_v41 = vld [vmem:[%s5177_s9 + $0x138] sm:$0xff] }
  0x9c   : > { %1898 = vmatpush.bf16.msra.mxu2 %v3894_v17  ;;  %v3910_v17 = vld [vmem:[%s5177_s9 + $0x50] sm:$0xff] }
  0x9d   : > { %1411 = vmatmul.bf16.gmra.mxu2 %v1322_v51 }
  0x9e   : > { %1292 = vmatmul.bf16.gmra.mxu1 %v1207_v42 }
  0xa0   : > { %1899 = vmatpush.bf16.msra.mxu2 %v3893_v35  ;;  %v3936_v35 = vld [vmem:[%s5177_s9 + $0x120] sm:$0xff] }
  0xa4   : > { %1900 = vmatpush.bf16.msra.mxu2 %v3892_v54 }
  0xa8   : > { %v4627_v1 = vpop.f32.mrf.mxu0  ;;  %2341 = vmatpush.bf16.msrb.mxu2 %v3939_v41 }
  0xab   : > { %1520 = vmatmul.bf16.gmra.mxu3 %v1435_v47  ;;  %1634 = vmatmul.bf16.gmra.mxu0 %v1549_v53  ;;  %v3922_v53 = vld [vmem:[%s5177_s9 + $0xb0] sm:$0xff] }
  0xac   : > { %2114 = vmatpush.bf16.msrb.mxu0 %v3922_v53  ;;  %2342 = vmatpush.bf16.msrb.mxu2 %v3938_v39  ;;  %v3933_v39 = vld [vmem:[%s5177_s9 + $0x108] sm:$0xff] }
  0xad   : > { %1901 = vmatmul.bf16.vlgmr.msra.gmra.mxu2 %v4448_v45  ;;  %v3905_v45 = vld [vmem:[%s5177_s9 + $0x28] sm:$0xff] }
  0xae   : > { %1297 = vmatmul.bf16.gmra.mxu1 %v1208_v9  ;;  %v4631_v15 = vpop.f32.mrf.mxu3  ;;  %v3915_v9 = vld [vmem:[%s5177_s9 + $0x78] sm:$0xff] }
  0xaf   : > { %1818 = vmatpush.bf16.msra.mxu1 %v3905_v45  ;;  %1999 = vmatpush.bf16.msrb.mxu3 %v3915_v9  ;;  %v3909_v45 = vld [vmem:[%s5177_s9 + $0x48] sm:$0xff] }
  0xb0   : > { %v4633_v22 = vpop.f32.mrf.mxu2  ;;  %v4636_v24 = vpop.f32.mrf.mxu0  ;;  %2115 = vmatpush.bf16.msrb.mxu0 %v3921_v7 }
  0xb3   : > { %1819 = vmatpush.bf16.msra.mxu1 %v3904_v8 }
  0xb4   : > { %2116 = vmatpush.bf16.msrb.mxu0 %v3920_v13  ;;  %v4851_v13 = vld [vmem:[%s5176_s8] ss:$0 sm:$0xff] }
  0xb6   : > { %v4641_v23 = vpop.f32.mrf.mxu3 }
  0xb7   : > { %1820 = vmatpush.bf16.msra.mxu1 %v3903_v43 }
  0xb8   : > { %v4643_v29 = vpop.f32.mrf.mxu2  ;;  %v4648_v6 = vpop.f32.mrf.mxu0  ;;  %2117 = vmatpush.bf16.msrb.mxu0 %v3919_v46 }
  0xbb   : > { %v4653_v28 = vpop.f32.mrf.mxu1  ;;  %1525 = vmatmul.bf16.gmra.mxu3 %v1436_v19  ;;  %1639 = vmatmul.bf16.gmra.mxu0 %v1550_v34  ;;  %v3911_v19 = vld [vmem:[%s5177_s9 + $0x58] sm:$0xff]  ;;  %v3937_v34 = vld [vmem:[%s5177_s9 + $0x128] sm:$0xff] }
  0xbc   : > { %1821 = vmatpush.bf16.msra.mxu1 %v3902_v40  ;;  %v844_v5 = vadd.f32 %v4653_v28, %v4627_v1  ;;  %2343 = vmatpush.bf16.msrb.mxu2 %v3937_v34  ;;  %v3901_v28 = vld [vmem:[%s5177_s9 + $0x8] sm:$0xff] }
  0xbd   : > { %1906 = vmatmul.bf16.gmra.mxu2 %v4529_v44  ;;  %v3914_v44 = vld [vmem:[%s5177_s9 + $0x70] sm:$0xff]  ;;  %2118 = vmatpush.bf16.msrb.mxu0 %v3918_v2 }
  0xbe   : > { %v4658_v10 = vpop.f32.mrf.mxu3  ;;  %2000 = vmatpush.bf16.msrb.mxu3 %v3914_v44  ;;  %v969_v54 = vadd.f32 %v4633_v22, %v844_v5  ;;  %v3935_v22 = vld [vmem:[%s5177_s9 + $0x118] sm:$0xff] }
  0xc0   : > { %v4660_v26 = vpop.f32.mrf.mxu2  ;;  %v4662_v48 = vpop.f32.mrf.mxu0  ;;  %2344 = vmatpush.bf16.msrb.mxu2 %v3936_v35  ;;  %1822 = vmatpush.bf16.msra.mxu1 %v3901_v28 }
  0xc2   : > { %2001 = vmatpush.bf16.msrb.mxu3 %v3913_v25  ;;  %v3908_v25 = vld [vmem:[%s5177_s9 + $0x40] sm:$0xff] }
  0xc3   : > { %v4667_v12 = vpop.f32.mrf.mxu1 }
  0xc4   : > { %2345 = vmatpush.bf16.msrb.mxu2 %v3935_v22 }
  0xc6   : > { %v4672_v14 = vpop.f32.mrf.mxu3  ;;  %2002 = vmatpush.bf16.msrb.mxu3 %v3912_v30 }
  0xc8   : > { %v4674_v16 = vpop.f32.mrf.mxu0  ;;  %v4679_v18 = vpop.f32.mrf.mxu2 }
  0xca   : > { %2003 = vmatpush.bf16.msrb.mxu3 %v3911_v19  ;;  %v4845_v19 = vld [vmem:[%s5175_s7] ss:$0 sm:$0xff] }
  0xcb   : > { %v4681_v21 = vpop.f32.mrf.mxu1 }
  0xcc   : > { %v849_v40 = vadd.f32 %v4681_v21, %v4648_v6  ;;  %v3916_v6 = vld [vmem:[%s5177_s9 + $0x80] sm:$0xff] }
  0xcd   : > { %1911 = vmatmul.bf16.gmra.mxu2 %v4573_v20  ;;  %v3932_v21 = vld [vmem:[%s5177_s9 + $0x100] sm:$0xff] }
  0xce   : > { %v4686_v50 = vpop.f32.mrf.mxu3  ;;  %2004 = vmatpush.bf16.msrb.mxu3 %v3910_v17  ;;  %v971_v17 = vadd.f32 %v4660_v26, %v849_v40  ;;  %v3930_v26 = vld [vmem:[%s5177_s9 + $0xf0] sm:$0xff] }
  0xcf   : > { %v1083_v59 = vadd.f32 %v4686_v50, %v969_v54  ;;  %v846_v50 = vadd.f32 %v4667_v12, %v4636_v24  ;;  %v3900_v24 = vld [vmem:[%s5177_s9] sm:$0xff]  ;;  %v3917_v12 = vld [vmem:[%s5177_s9 + $0x88] sm:$0xff] }
  0xd0   : > { %v4688_v52 = vpop.f32.mrf.mxu0  ;;  %v4695_v56 = vpop.f32.mrf.mxu2  ;;  %1823 = vmatpush.bf16.msra.mxu1 %v3900_v24  ;;  %2119 = vmatpush.bf16.msrb.mxu0 %v3917_v12 }
  0xd1   : > { %v1189_v43 = vadd.f32 %v4674_v16, %v1083_v59  ;;  %v970_v41 = vadd.f32 %v4643_v29, %v846_v50 }
  0xd2   : > { %2005 = vmatpush.bf16.msrb.mxu3 %v3909_v45 }
  0xd3   : > { %v4693_v55 = vpop.f32.mrf.mxu1 }
  0xd4   : > { %2120 = vmatpush.bf16.msrb.mxu0 %v3916_v6 }
  0xd6   : > { %v4700_v42 = vpop.f32.mrf.mxu3  ;;  %2006 = vmatpush.bf16.msrb.mxu3 %v3908_v25 }
  0xd7   : > { %v1084_v16 = vadd.f32 %v4700_v42, %v970_v41 }
  0xd8   : > { %v4703_v57 = vpop.f32.mrf.mxu0  ;;  %v4710_v60 = vpop.f32.mrf.mxu2 }
  0xdb   : > { %v4705_v58 = vpop.f32.mrf.mxu1 }
  0xdc   : > { %v854_v40 = vadd.f32 %v4705_v58, %v4631_v15 }
  0xdd   : > { %1916 = vmatmul.bf16.gmra.mxu2 %v4601_v0  ;;  %v3934_v0 = vld [vmem:[%s5177_s9 + $0x110] sm:$0xff] }
  0xde   : > { %v4712_v61 = vpop.f32.mrf.mxu3  ;;  %2346 = vmatpush.bf16.msrb.mxu2 %v3934_v0  ;;  %v973_v15 = vadd.f32 %v4695_v56, %v854_v40  ;;  %v4948_v40 = vld [vmem:[%s5177_s9 + $0x238] sm:$0xff] }
  0xdf   : > { %v1085_v28 = vadd.f32 %v4712_v61, %v971_v17 }
  0xe0   : > { %v4714_v62 = vpop.f32.mrf.mxu0  ;;  %v4724_v11 = vpop.f32.mrf.mxu2 }
  0xe1   : > { %v1191_v2 = vadd.f32 %v4703_v57, %v1085_v28 }
  0xe2   : > { %2347 = vmatpush.bf16.msrb.mxu2 %v3933_v39  ;;  %v2036_v39 = vld [vmem:[#allocation5 + $0x9] sm:$0xff] }
  0xe3   : > { %v4716_v63 = vpop.f32.mrf.mxu1 }
  0xe6   : > { %v4721_v33 = vpop.f32.mrf.mxu3  ;;  %2348 = vmatpush.bf16.msrb.mxu2 %v3932_v21  ;;  %v3928_v21 = vld [vmem:[%s5177_s9 + $0xe0] sm:$0xff] }
  0xe8   : > { %v4726_v49 = vpop.f32.mrf.mxu0  ;;  %v4743_v36 = vpop.f32.mrf.mxu2 }
  0xea   : > { %2798 = vmatpush.bf16.msra.mxu2 %v4948_v40 }
  0xeb   : > { %v4728_v4 = vpop.f32.mrf.mxu1 }
  0xee   : > { %v4736_v32 = vpop.f32.mrf.mxu3 }
  0xf0   : > { %v4738_v3 = vpop.f32.mrf.mxu0  ;;  %v1397_v20 = vpop.f32.mrf.mxu2 }
  0xf3   : > { %v4745_v38 = vpop.f32.mrf.mxu1 }
  0xf6   : > { %v4759_v51 = vpop.f32.mrf.mxu3 }
  0xf8   : > { %v4762_v47 = vpop.f32.mrf.mxu0  ;;  %v1399_v8 = vpop.f32.mrf.mxu2 }
  0xfb   : > { %v1283_v31 = vpop.f32.mrf.mxu1 }
  0xfc   : > { %v1303_v53 = vadd.f32 %v1283_v31, %v1189_v43 }
  0xfe   : > { %v4785_v27 = vpop.f32.mrf.mxu3  ;;  %v1417_v30 = vadd.f32 %v1397_v20, %v1303_v53  ;;  %v1190_v20 = vadd.f32 %v4688_v52, %v1084_v16  ;;  %v3931_v52 = vld [vmem:[%s5177_s9 + $0xf8] sm:$0xff]  ;;  %v3929_v53 = vld [vmem:[%s5177_s9 + $0xe8] sm:$0xff] }
  0xff   : > { %2227 = vmatpush.bf16.msrb.mxu1 %v3931_v52 }
 0x100   : > { %v4789_v37 = vpop.f32.mrf.mxu0  ;;  %v1402_v34 = vpop.f32.mrf.mxu2 }
 0x103   : > { %v1285_v1 = vpop.f32.mrf.mxu1  ;;  %2228 = vmatpush.bf16.msrb.mxu1 %v3930_v26  ;;  %v856_v26 = vadd.f32 %v4716_v63, %v4641_v23 }
 0x104   : > { %v1304_v35 = vadd.f32 %v1285_v1, %v1190_v20 }
 0x105   : > { %v974_v23 = vadd.f32 %v4710_v60, %v856_v26 }
 0x106   : > { %v4814_v9 = vpop.f32.mrf.mxu3  ;;  %v1418_v46 = vadd.f32 %v1399_v8, %v1304_v35  ;;  %v4872_v8 = vld [vmem:[#allocation2] sm:$0xff] }
 0x107   : > { %2229 = vmatpush.bf16.msrb.mxu1 %v3929_v53 }
 0x108   : > { %v1625_v44 = vpop.f32.mrf.mxu0  ;;  %v1404_v41 = vpop.f32.mrf.mxu2 }
 0x10b   : > { %v1288_v29 = vpop.f32.mrf.mxu1  ;;  %2230 = vmatpush.bf16.msrb.mxu1 %v3928_v21 }
 0x10c   : > { %v1305_v24 = vadd.f32 %v1288_v29, %v1191_v2  ;;  %v1088_v2 = vadd.f32 %v4759_v51, %v974_v23 }
 0x10e   : > { %v1511_v31 = vpop.f32.mrf.mxu3  ;;  %v1419_v57 = vadd.f32 %v1402_v34, %v1305_v24 }
 0x10f   : > { %v1531_v7 = vadd.f32 %v1511_v31, %v1417_v30  ;;  %v1740_v30 = vld [vmem:[#allocation5 + $0x7] sm:$0xff] }
 0x110   : > { %v1627_v42 = vpop.f32.mrf.mxu0  ;;  %v1407_v35 = vpop.f32.mrf.mxu2 }
 0x111   : > { %v1645_v5 = vadd.f32 %v1625_v44, %v1531_v7  ;;  %v851_v44 = vadd.f32 %v4693_v55, %v4662_v48 }
 0x113   : > { %v1674_v54 = vmul.f32 %v4845_v19, %v1645_v5  ;;  %v1290_v50 = vpop.f32.mrf.mxu1  ;;  %v972_v0 = vadd.f32 %v4679_v18, %v851_v44  ;;  %v3947_v44 = vld [vmem:[%s5177_s9 + $0x178] sm:$0xff] }
 0x114   : > { %2455 = vmatpush.bf16.msra.mxu3 %v3947_v44 }
 0x115   : > { %v1685_v59 = vadd.f32 %v4851_v13, %v1674_v54  ;;  %v1086_v55 = vadd.f32 %v4721_v33, %v972_v0  ;;  %v1087_v54 = vadd.f32 %v4736_v32, %v973_v15  ;;  %v3927_v32 = vld [vmem:[%s5177_s9 + $0xd8] sm:$0xff]  ;;  %v3925_v15 = vld [vmem:[%s5177_s9 + $0xc8] sm:$0xff] }
 0x116   : > { %v1513_v45 = vpop.f32.mrf.mxu3  ;;  %2231 = vmatpush.bf16.msrb.mxu1 %v3927_v32 }
 0x117   : > { %v1693_v1 = vmax.f32 %v1685_v59, 0.0  ;;  %v1532_v22 = vadd.f32 %v1513_v45, %v1418_v46  ;;  %v1192_v7 = vadd.f32 %v4714_v62, %v1086_v55  ;;  %v1193_v56 = vadd.f32 %v4726_v49, %v1087_v54 }
 0x118   : > { %v1630_v43 = vpop.f32.mrf.mxu0  ;;  %v859_v55 = vadd.f32 %v4728_v4, %v4658_v10  ;;  %v3946_v10 = vld [vmem:[%s5177_s9 + $0x170] sm:$0xff] }
 0x119   : > { %1732 = vst [vmem:[#allocation5 + $0x20] sm:$0xff] %v1693_v1  ;;  %v1646_v61 = vadd.f32 %v1627_v42, %v1532_v22  ;;  %v1930_v25 = vpack.c.bf16 %v1693_v1, %v4872_v8  ;;  %v1306_v58 = vadd.f32 %v1290_v50, %v1192_v7  ;;  %v3955_v50 = vld [vmem:[%s5177_s9 + $0x1b8] sm:$0xff]  ;;  %v3954_v4 = vld [vmem:[%s5177_s9 + $0x1b0] sm:$0xff]  ;;  %2456 = vmatpush.bf16.msra.mxu3 %v3946_v10 }
 0x11a   : > { %2570 = vmatpush.bf16.msra.mxu0 %v3955_v50  ;;  %v975_v7 = vadd.f32 %v4724_v11, %v859_v55  ;;  %v3953_v11 = vld [vmem:[%s5177_s9 + $0x1a8] sm:$0xff]  ;;  %v3943_v50 = vld [vmem:[%s5177_s9 + $0x158] sm:$0xff] }
 0x11b   : > { %v1675_v48 = vmul.f32 %v4845_v19, %v1646_v61  ;;  %2007 = vmatmul.bf16.vlgmr.msrb.gmra.mxu3 %v1930_v25  ;;  %v1293_v17 = vpop.f32.mrf.mxu1  ;;  %v1420_v52 = vadd.f32 %v1404_v41, %v1306_v58  ;;  %v1409_v41 = vpop.f32.mrf.mxu2 }
 0x11c   : > { %v1307_v49 = vadd.f32 %v1293_v17, %v1193_v56  ;;  %v3952_v56 = vld [vmem:[%s5177_s9 + $0x1a0] sm:$0xff] }
 0x11d   : > { %v1686_v12 = vadd.f32 %v4851_v13, %v1675_v48 }
 0x11e   : > { %v1516_v16 = vpop.f32.mrf.mxu3  ;;  %v1421_v25 = vadd.f32 %v1407_v35, %v1307_v49  ;;  %2571 = vmatpush.bf16.msra.mxu0 %v3954_v4  ;;  %v3950_v4 = vld [vmem:[%s5177_s9 + $0x190] sm:$0xff] }
 0x11f   : > { %v1694_v18 = vmax.f32 %v1686_v12, 0.0  ;;  %v1533_v31 = vadd.f32 %v1516_v16, %v1419_v57  ;;  %v1194_v57 = vadd.f32 %v4738_v3, %v1088_v2  ;;  %v3926_v3 = vld [vmem:[%s5177_s9 + $0xd0] sm:$0xff] }
 0x120   : > { %v1632_v29 = vpop.f32.mrf.mxu0  ;;  %v4885_v42 = vld [vmem:[#allocation5 + $0x1f] sm:$0xff]  ;;  %2232 = vmatpush.bf16.msrb.mxu1 %v3926_v3  ;;  %v5035_v3 = vld [vmem:[%s5177_s9 + $0x218] sm:$0xff] }
 0x121   : > { %v4887_v20 = vld [vmem:[#allocation5 + $0x21] sm:$0xff]  ;;  %1733 = vst [vmem:[#allocation5 + $0x38] sm:$0xff] %v1694_v18  ;;  %v1647_v33 = vadd.f32 %v1630_v43, %v1533_v31  ;;  %v1748_v34 = vpack.c.bf16 %v4885_v42, %v1740_v30  ;;  %v2272_v6 = vpack.c.bf16 %v1694_v18, %v1693_v1 }
 0x122   : > { %v2044_v5 = vpack.c.bf16 %v4887_v20, %v2036_v39  ;;  %2572 = vmatpush.bf16.msra.mxu0 %v3953_v11  ;;  %v3949_v11 = vld [vmem:[%s5177_s9 + $0x188] sm:$0xff] }
 0x123   : > { %v1676_v62 = vmul.f32 %v4845_v19, %v1647_v33  ;;  %1824 = vmatmul.bf16.vlgmr.msra.gmra.mxu1 %v1748_v34  ;;  %2349 = vmatmul.bf16.vlgmr.msrb.gmra.mxu2 %v2272_v6  ;;  %v1295_v61 = vpop.f32.mrf.mxu1  ;;  %v1089_v6 = vadd.f32 %v4785_v27, %v975_v7  ;;  %v4969_v27 = vld [vmem:[%s5177_s9 + $0x230] sm:$0xff] }
 0x124   : > { %2121 = vmatmul.bf16.vlgmr.msrb.gmra.mxu0 %v2044_v5  ;;  %v3945_v5 = vld [vmem:[%s5177_s9 + $0x168] sm:$0xff]  ;;  %2233 = vmatpush.bf16.msrb.mxu1 %v3925_v15  ;;  %v3966_v15 = vld [vmem:[%s5177_s9 + $0x210] sm:$0xff] }
 0x125   : > { %v1687_v28 = vadd.f32 %v4851_v13, %v1676_v62  ;;  %2457 = vmatpush.bf16.msra.mxu3 %v3945_v5  ;;  %2799 = vmatpush.bf16.msra.mxu2 %v4969_v27 }
 0x126   : > { %v1518_v46 = vpop.f32.mrf.mxu3  ;;  %2573 = vmatpush.bf16.msra.mxu0 %v3952_v56 }
 0x127   : > { %v1695_v59 = vmax.f32 %v1687_v28, 0.0  ;;  %v1534_v45 = vadd.f32 %v1518_v46, %v1420_v52  ;;  %v861_v52 = vadd.f32 %v4745_v38, %v4672_v14  ;;  %v1412_v28 = vpop.f32.mrf.mxu2  ;;  %v3944_v46 = vld [vmem:[%s5177_s9 + $0x160] sm:$0xff] }
 0x128   : > { %v1635_v63 = vpop.f32.mrf.mxu0  ;;  %v4917_v60 = vld [vmem:[#allocation5 + $0x37] sm:$0xff] }
 0x129   : > { %1734 = vst [vmem:[#allocation5 + $0x50] sm:$0xff] %v1695_v59  ;;  %v1648_v1 = vadd.f32 %v1632_v29, %v1534_v45  ;;  %v4901_v22 = vpack.c.bf16 %v1695_v59, %v1694_v18  ;;  %v4924_v51 = vld [vmem:[#allocation5 + $0x39] sm:$0xff]  ;;  %v1308_v29 = vadd.f32 %v1295_v61, %v1194_v57  ;;  %v3924_v14 = vld [vmem:[%s5177_s9 + $0xc0] sm:$0xff]  ;;  %v976_v38 = vadd.f32 %v4743_v36, %v861_v52 }
 0x12a   : > { %2458 = vmatpush.bf16.msra.mxu3 %v3944_v46  ;;  %2234 = vmatpush.bf16.msrb.mxu1 %v3924_v14  ;;  %v3948_v46 = vld [vmem:[%s5177_s9 + $0x180] sm:$0xff] }
 0x12b   : > { %v1677_v43 = vmul.f32 %v4845_v19, %v1648_v1  ;;  %2012 = vmatmul.bf16.gmra.mxu3 %v4901_v22  ;;  %v1422_v21 = vadd.f32 %v1409_v41, %v1308_v29  ;;  %v1298_v58 = vpop.f32.mrf.mxu1  ;;  %v1090_v32 = vadd.f32 %v4814_v9, %v976_v38  ;;  %v5006_v9 = vld [vmem:[%s5177_s9 + $0x220] sm:$0xff] }
 0x12c   : > { %v3964_v14 = vld [vmem:[%s5177_s9 + $0x200] sm:$0xff] }
 0x12d   : > { %v1688_v0 = vadd.f32 %v4851_v13, %v1677_v43  ;;  %v3951_v43 = vld [vmem:[%s5177_s9 + $0x198] sm:$0xff]  ;;  %v1196_v41 = vadd.f32 %v4789_v37, %v1090_v32 }
 0x12e   : > { %v1521_v53 = vpop.f32.mrf.mxu3  ;;  %2459 = vmatpush.bf16.msra.mxu3 %v3943_v50  ;;  %2574 = vmatpush.bf16.msra.mxu0 %v3951_v43 }
 0x12f   : > { %v1696_v24 = vmax.f32 %v1688_v0, 0.0  ;;  %v1535_v48 = vadd.f32 %v1521_v53, %v1421_v25  ;;  %v3942_v0 = vld [vmem:[%s5177_s9 + $0x150] sm:$0xff]  ;;  %v1414_v37 = vpop.f32.mrf.mxu2 }
 0x130   : > { %v4922_v12 = vld [vmem:[#allocation5 + $0x4f] sm:$0xff]  ;;  %v1637_v34 = vpop.f32.mrf.mxu0 }
 0x131   : > { %v4926_v16 = vld [vmem:[#allocation5 + $0x51] sm:$0xff]  ;;  %1735 = vst [vmem:[#allocation5 + $0x68] sm:$0xff] %v1696_v24  ;;  %v1649_v30 = vadd.f32 %v1635_v63, %v1535_v48  ;;  %v4930_v39 = vpack.c.bf16 %v4922_v12, %v4917_v60  ;;  %v2273_v31 = vpack.c.bf16 %v1696_v24, %v1695_v59  ;;  %v1195_v59 = vadd.f32 %v4762_v47, %v1089_v6 }
 0x132   : > { %v4934_v18 = vpack.c.bf16 %v4926_v16, %v4924_v51  ;;  %v4990_v47 = vld [vmem:[%s5177_s9 + $0x228] sm:$0xff]  ;;  %2460 = vmatpush.bf16.msra.mxu3 %v3942_v0  ;;  %2575 = vmatpush.bf16.msra.mxu0 %v3950_v4 }
 0x133   : > { %v1678_v33 = vmul.f32 %v4845_v19, %v1649_v30  ;;  %1829 = vmatmul.bf16.gmra.mxu1 %v4930_v39  ;;  %2354 = vmatmul.bf16.gmra.mxu2 %v2273_v31  ;;  %v1309_v1 = vadd.f32 %v1298_v58, %v1195_v59  ;;  %v1300_v53 = vpop.f32.mrf.mxu1  ;;  %v3965_v59 = vld [vmem:[%s5177_s9 + $0x208] sm:$0xff] }
 0x134   : > { %2126 = vmatmul.bf16.gmra.mxu0 %v4934_v18  ;;  %2800 = vmatpush.bf16.msra.mxu2 %v4990_v47  ;;  %v1310_v7 = vadd.f32 %v1300_v53, %v1196_v41  ;;  %v2500_v0 = vld [vmem:[#allocation5 + $0xdf] sm:$0xff] }
 0x135   : > { %v1689_v17 = vadd.f32 %v4851_v13, %v1678_v33  ;;  %v1423_v36 = vadd.f32 %v1412_v28, %v1309_v1  ;;  %v3963_v33 = vld [vmem:[%s5177_s9 + $0x1f8] sm:$0xff] }
 0x136   : > { %v1523_v62 = vpop.f32.mrf.mxu3  ;;  %v1424_v5 = vadd.f32 %v1414_v37, %v1310_v7  ;;  %3980 = vmatpush.bf16.msra.mxu1 %v3963_v33  ;;  %2576 = vmatpush.bf16.msra.mxu0 %v3949_v11 }
 0x137   : > { %v1697_v35 = vmax.f32 %v1689_v17, 0.0  ;;  %v1536_v54 = vadd.f32 %v1523_v62, %v1422_v21  ;;  %v3962_v21 = vld [vmem:[%s5177_s9 + $0x1f0] sm:$0xff] }
 0x138   : > { %v1640_v63 = vpop.f32.mrf.mxu0  ;;  %v5008_v25 = vld [vmem:[#allocation5 + $0x67] sm:$0xff]  ;;  %2801 = vmatpush.bf16.msra.mxu2 %v5006_v9 }
 0x139   : > { %1736 = vst [vmem:[#allocation5 + $0x80] sm:$0xff] %v1697_v35  ;;  %v1650_v45 = vadd.f32 %v1637_v34, %v1536_v54  ;;  %v4977_v26 = vpack.c.bf16 %v1697_v35, %v1696_v24  ;;  %v5016_v48 = vld [vmem:[#allocation5 + $0x69] sm:$0xff]  ;;  %v3941_v34 = vld [vmem:[%s5177_s9 + $0x148] sm:$0xff] }
 0x13a   : > { %2461 = vmatpush.bf16.msra.mxu3 %v3941_v34  ;;  %v3940_v54 = vld [vmem:[%s5177_s9 + $0x140] sm:$0xff]  ;;  %3981 = vmatpush.bf16.msra.mxu1 %v3962_v21 }
 0x13b   : > { %v1679_v44 = vmul.f32 %v4845_v19, %v1650_v45  ;;  %2017 = vmatmul.bf16.gmra.mxu3 %v4977_v26  ;;  %2577 = vmatpush.bf16.msra.mxu0 %v3948_v46 }
 0x13c   : > { %2802 = vmatpush.bf16.msra.mxu2 %v5035_v3 }
 0x13d   : > { %v1690_v23 = vadd.f32 %v4851_v13, %v1679_v44 }
 0x13e   : > { %v1526_v49 = vpop.f32.mrf.mxu3  ;;  %2462 = vmatpush.bf16.msra.mxu3 %v3940_v54 }
 0x13f   : > { %v1698_v2 = vmax.f32 %v1690_v23, 0.0  ;;  %v1537_v61 = vadd.f32 %v1526_v49, %v1423_v36  ;;  %2684 = vmatpush.bf16.msrb.mxu0 %v3963_v33  ;;  %v3961_v36 = vld [vmem:[%s5177_s9 + $0x1e8] sm:$0xff]  ;;  %v3960_v23 = vld [vmem:[%s5177_s9 + $0x1e0] sm:$0xff] }
 0x140   : > { %v5014_v24 = vld [vmem:[#allocation5 + $0x7f] sm:$0xff]  ;;  %2803 = vmatpush.bf16.msra.mxu2 %v3966_v15  ;;  %3982 = vmatpush.bf16.msra.mxu1 %v3961_v36 }
 0x141   : > { %v5018_v55 = vld [vmem:[#allocation5 + $0x81] sm:$0xff]  ;;  %1737 = vst [vmem:[#allocation5 + $0x98] sm:$0xff] %v1698_v2  ;;  %v1651_v57 = vadd.f32 %v1640_v63, %v1537_v61  ;;  %v5022_v30 = vpack.c.bf16 %v5014_v24, %v5008_v25  ;;  %v2274_v10 = vpack.c.bf16 %v1698_v2, %v1697_v35  ;;  %v1642_v35 = vpop.f32.mrf.mxu0  ;;  %v2158_v63 = vpack.c.bf16 %v4917_v60, %v4885_v42 }
 0x142   : > { %v5026_v31 = vpack.c.bf16 %v5018_v55, %v5016_v48  ;;  %3988 = vmatpush.bf16.msrb.mxu3 %v4948_v40  ;;  %v2387_v42 = vpack.c.bf16 %v5016_v48, %v4926_v16  ;;  %v2159_v60 = vpack.c.bf16 %v5008_v25, %v4922_v12  ;;  %v3956_v16 = vld [vmem:[%s5177_s9 + $0x1c0] sm:$0xff] }
 0x143   : > { %v1680_v29 = vmul.f32 %v4845_v19, %v1651_v57  ;;  %1834 = vmatmul.bf16.gmra.mxu1 %v5022_v30  ;;  %2359 = vmatmul.bf16.gmra.mxu2 %v2274_v10 }
 0x144   : > { %2131 = vmatmul.bf16.gmra.mxu0 %v5026_v31  ;;  %2804 = vmatpush.bf16.msra.mxu2 %v3965_v59 }
 0x145   : > { %v1691_v6 = vadd.f32 %v4851_v13, %v1680_v29  ;;  %2685 = vmatpush.bf16.msrb.mxu0 %v3962_v21  ;;  %3983 = vmatpush.bf16.msra.mxu1 %v3960_v23 }
 0x146   : > { %v1528_v17 = vpop.f32.mrf.mxu3  ;;  %3989 = vmatpush.bf16.msrb.mxu3 %v4969_v27  ;;  %v2386_v27 = vpack.c.bf16 %v4924_v51, %v4887_v20  ;;  %v3958_v20 = vld [vmem:[%s5177_s9 + $0x1d0] sm:$0xff]  ;;  %v1902_v51 = vpop.f32.mrf.mxu2 }
 0x147   : > { %v1699_v58 = vmax.f32 %v1691_v6, 0.0  ;;  %v1538_v62 = vadd.f32 %v1528_v17, %v1424_v5 }
 0x148   : > { %v1746_v1 = vld [vmem:[#allocation5 + $0x97] sm:$0xff]  ;;  %2805 = vmatpush.bf16.msra.mxu2 %v3964_v14 }
 0x149   : > { %1738 = vst [vmem:[#allocation5 + $0xb0] sm:$0xff] %v1699_v58  ;;  %v1652_v52 = vadd.f32 %v1642_v35, %v1538_v62  ;;  %v5060_v28 = vpack.c.bf16 %v1699_v58, %v1698_v2  ;;  %2686 = vmatpush.bf16.msrb.mxu0 %v3961_v36  ;;  %v2160_v43 = vpack.c.bf16 %v1746_v1, %v5014_v24 }
 0x14a   : > { %3990 = vmatpush.bf16.msrb.mxu3 %v4990_v47  ;;  %v3959_v47 = vld [vmem:[%s5177_s9 + $0x1d8] sm:$0xff] }
 0x14b   : > { %v1681_v45 = vmul.f32 %v4845_v19, %v1652_v52  ;;  %2022 = vmatmul.bf16.gmra.mxu3 %v5060_v28  ;;  %v2042_v19 = vld [vmem:[#allocation5 + $0x99] sm:$0xff]  ;;  %3984 = vmatpush.bf16.msra.mxu1 %v3959_v47 }
 0x14c   : > { %v2388_v49 = vpack.c.bf16 %v2042_v19, %v5018_v55  ;;  %v2728_v55 = vld [vmem:[#allocation5 + $0xe1] sm:$0xff] }
 0x14d   : > { %v1692_v56 = vadd.f32 %v4851_v13, %v1681_v45  ;;  %2687 = vmatpush.bf16.msrb.mxu0 %v3960_v23 }
 0x14e   : > { %3991 = vmatpush.bf16.msrb.mxu3 %v5006_v9 }
 0x14f   : > { %v5075_v38 = vmax.f32 %v1692_v56, 0.0  ;;  %3985 = vmatpush.bf16.msra.mxu1 %v3958_v20 }
 0x150   : > { %v5077_v44 = vld [vmem:[#allocation5 + $0xaf] sm:$0xff] }
 0x151   : > { %v2043_v32 = vld [vmem:[#allocation5 + $0xb1] sm:$0xff]  ;;  %1739 = vst [vmem:[#allocation5 + $0xc8] sm:$0xff] %v5075_v38  ;;  %v1751_v13 = vpack.c.bf16 %v5077_v44, %v1746_v1  ;;  %v2275_v40 = vpack.c.bf16 %v5075_v38, %v1699_v58  ;;  %2688 = vmatpush.bf16.msrb.mxu0 %v3959_v47 }
 0x152   : > { %v2047_v50 = vpack.c.bf16 %v2043_v32, %v2042_v19  ;;  %3992 = vmatpush.bf16.msrb.mxu3 %v5035_v3 }
 0x153   : > { %1839 = vmatmul.bf16.gmra.mxu1 %v1751_v13  ;;  %2364 = vmatmul.bf16.gmra.mxu2 %v2275_v40 }
 0x154   : > { %2136 = vmatmul.bf16.gmra.mxu0 %v2047_v50 }
 0x155   : > { %2689 = vmatpush.bf16.msrb.mxu0 %v3958_v20 }
 0x156   : > { %3993 = vmatpush.bf16.msrb.mxu3 %v3966_v15 }
 0x158   : > { %v2385_v2 = vld [vmem:[#allocation5 + $0xc9] sm:$0xff] }
 0x159   : > { %v2389_v61 = vpack.c.bf16 %v2385_v2, %v2043_v32  ;;  %v2157_v25 = vld [vmem:[#allocation5 + $0xc7] sm:$0xff] }
 0x15a   : > { %3994 = vmatpush.bf16.msrb.mxu3 %v3965_v59  ;;  %v2161_v53 = vpack.c.bf16 %v2157_v25, %v5077_v44  ;;  %v2504_v48 = vpack.c.bf16 %v2500_v0, %v2157_v25 }
 0x15b   : > { %2463 = vmatmul.bf16.vlgmr.msra.gmra.mxu3 %v2386_v27 }
 0x15e   : > { %3995 = vmatpush.bf16.msrb.mxu3 %v3964_v14 }
 0x163   : > { %2235 = vmatmul.bf16.vlgmr.msrb.gmra.mxu1 %v2158_v63  ;;  %2806 = vmatmul.bf16.vlgmr.msra.gmra.mxu2 %v4934_v18  ;;  %v3957_v18 = vld [vmem:[%s5177_s9 + $0x1c8] sm:$0xff] }
 0x164   : > { %2578 = vmatmul.bf16.vlgmr.msra.gmra.mxu0 %v4930_v39  ;;  %v1904_v39 = vpop.f32.mrf.mxu2  ;;  %3986 = vmatpush.bf16.msra.mxu1 %v3957_v18 }
 0x165   : > { %2690 = vmatpush.bf16.msrb.mxu0 %v3957_v18 }
 0x168   : > { %3987 = vmatpush.bf16.msra.mxu1 %v3956_v16 }
 0x169   : > { %2691 = vmatpush.bf16.msrb.mxu0 %v3956_v16 }
 0x16b   : > { %2468 = vmatmul.bf16.gmra.mxu3 %v2387_v42 }
 0x16c   : > { %v1907_v12 = vpop.f32.mrf.mxu2 }
 0x173   : > { %2240 = vmatmul.bf16.gmra.mxu1 %v2159_v60  ;;  %2811 = vmatmul.bf16.gmra.mxu2 %v5026_v31 }
 0x174   : > { %2583 = vmatmul.bf16.gmra.mxu0 %v5022_v30  ;;  %v1909_v9 = vpop.f32.mrf.mxu2  ;;  %v2732_v30 = vpack.c.bf16 %v2728_v55, %v2385_v2 }
 0x17b   : > { %2473 = vmatmul.bf16.gmra.mxu3 %v2388_v49 }
 0x17c   : > { %v1912_v41 = vpop.f32.mrf.mxu2 }
 0x183   : > { %2245 = vmatmul.bf16.gmra.mxu1 %v2160_v43  ;;  %2816 = vmatmul.bf16.gmra.mxu2 %v2047_v50 }
 0x184   : > { %2588 = vmatmul.bf16.gmra.mxu0 %v1751_v13  ;;  %v1914_v57 = vpop.f32.mrf.mxu2  ;;  %v2618_v13 = vpack.c.bf16 %v4872_v8, %v5075_v38 }
 0x18b   : > { %2478 = vmatmul.bf16.gmra.mxu3 %v2389_v61 }
 0x18c   : > { %v1917_v4 = vpop.f32.mrf.mxu2 }
 0x193   : > { %2250 = vmatmul.bf16.gmra.mxu1 %v2161_v53 }
 0x194   : > { %2593 = vmatmul.bf16.gmra.mxu0 %v2504_v48  ;;  %v1919_v21 = vpop.f32.mrf.mxu2 }
 0x19b   : > { %2821 = vmatmul.bf16.vlgmr.msrb.gmra.mxu3 %v2732_v30 }
 0x19e   : > { %v2008_v24 = vpop.f32.mrf.mxu3 }
 0x1a0   : > { %v1825_v31 = vpop.f32.mrf.mxu1 }
 0x1a1   : > { %v2122_v10 = vpop.f32.mrf.mxu0  ;;  %v1903_v37 = vadd.f32 %v1902_v51, %v1825_v31 }
 0x1a3   : > { %2697 = vmatmul.bf16.vlgmr.msra.gmra.mxu1 %v4977_v26  ;;  %v2028_v3 = vadd.f32 %v2008_v24, %v1903_v37 }
 0x1a4   : > { %2692 = vmatmul.bf16.vlgmr.msrb.gmra.mxu0 %v4901_v22 }
 0x1a5   : > { %v2142_v7 = vadd.f32 %v2122_v10, %v2028_v3 }
 0x1a6   : > { %v2010_v29 = vpop.f32.mrf.mxu3  ;;  %v2350_v26 = vpop.f32.mrf.mxu2 }
 0x1a8   : > { %v1827_v33 = vpop.f32.mrf.mxu1 }
 0x1a9   : > { %v2124_v34 = vpop.f32.mrf.mxu0  ;;  %v1905_v5 = vadd.f32 %v1904_v39, %v1827_v33 }
 0x1ab   : > { %v2029_v6 = vadd.f32 %v2010_v29, %v1905_v5 }
 0x1ad   : > { %v2143_v17 = vadd.f32 %v2124_v34, %v2029_v6 }
 0x1ae   : > { %v2013_v11 = vpop.f32.mrf.mxu3  ;;  %v2352_v19 = vpop.f32.mrf.mxu2 }
 0x1b0   : > { %v1830_v15 = vpop.f32.mrf.mxu1 }
 0x1b1   : > { %v2127_v58 = vpop.f32.mrf.mxu0  ;;  %v1908_v62 = vadd.f32 %v1907_v12, %v1830_v15 }
 0x1b3   : > { %2702 = vmatmul.bf16.gmra.mxu1 %v5060_v28  ;;  %v2030_v35 = vadd.f32 %v2013_v11, %v1908_v62 }
 0x1b5   : > { %v5122_v54 = vadd.f32 %v2127_v58, %v2030_v35 }
 0x1b6   : > { %v2015_v22 = vpop.f32.mrf.mxu3  ;;  %v2355_v63 = vpop.f32.mrf.mxu2 }
 0x1b8   : > { %v1832_v52 = vpop.f32.mrf.mxu1 }
 0x1b9   : > { %v2129_v46 = vpop.f32.mrf.mxu0  ;;  %v1910_v59 = vadd.f32 %v1909_v9, %v1832_v52 }
 0x1bb   : > { %v2031_v45 = vadd.f32 %v2015_v22, %v1910_v59 }
 0x1bd   : > { %v5124_v56 = vadd.f32 %v2129_v46, %v2031_v45 }
 0x1be   : > { %v2018_v14 = vpop.f32.mrf.mxu3  ;;  %v2357_v16 = vpop.f32.mrf.mxu2 }
 0x1c0   : > { %v1835_v1 = vpop.f32.mrf.mxu1 }
 0x1c1   : > { %v2132_v44 = vpop.f32.mrf.mxu0  ;;  %v1913_v32 = vadd.f32 %v1912_v41, %v1835_v1 }
 0x1c3   : > { %2707 = vmatmul.bf16.gmra.mxu1 %v2618_v13  ;;  %v2032_v28 = vadd.f32 %v2018_v14, %v1913_v32 }
 0x1c5   : > { %v5128_v50 = vadd.f32 %v2132_v44, %v2032_v28 }
 0x1c6   : > { %v2020_v40 = vpop.f32.mrf.mxu3  ;;  %v2360_v61 = vpop.f32.mrf.mxu2 }
 0x1c8   : > { %v1837_v36 = vpop.f32.mrf.mxu1 }
 0x1c9   : > { %v2134_v23 = vpop.f32.mrf.mxu0  ;;  %v1915_v27 = vadd.f32 %v1914_v57, %v1837_v36 }
 0x1cb   : > { %v2033_v47 = vadd.f32 %v2020_v40, %v1915_v27 }
 0x1cd   : > { %v5130_v20 = vadd.f32 %v2134_v23, %v2033_v47 }
 0x1ce   : > { %v2023_v51 = vpop.f32.mrf.mxu3  ;;  %v2362_v57 = vpop.f32.mrf.mxu2 }
 0x1d0   : > { %v1840_v42 = vpop.f32.mrf.mxu1 }
 0x1d1   : > { %v2137_v60 = vpop.f32.mrf.mxu0  ;;  %v1918_v39 = vadd.f32 %v1917_v4, %v1840_v42 }
 0x1d3   : > { %v2034_v18 = vadd.f32 %v2023_v51, %v1918_v39 }
 0x1d5   : > { %v5132_v49 = vadd.f32 %v2137_v60, %v2034_v18 }
 0x1d6   : > { %v2025_v43 = vpop.f32.mrf.mxu3  ;;  %v5136_v4 = vpop.f32.mrf.mxu2 }
 0x1d8   : > { %v1842_v8 = vpop.f32.mrf.mxu1 }
 0x1d9   : > { %v2139_v38 = vpop.f32.mrf.mxu0  ;;  %v1920_v12 = vadd.f32 %v1919_v21, %v1842_v8 }
 0x1db   : > { %v2035_v9 = vadd.f32 %v2025_v43, %v1920_v12 }
 0x1dd   : > { %v5134_v2 = vadd.f32 %v2139_v38, %v2035_v9 }
 0x1de   : > { %v2464_v31 = vpop.f32.mrf.mxu3  ;;  %v5138_v34 = vpop.f32.mrf.mxu2 }
 0x1e0   : > { %v2236_v25 = vpop.f32.mrf.mxu1 }
 0x1e1   : > { %v2579_v0 = vpop.f32.mrf.mxu0  ;;  %v2256_v41 = vadd.f32 %v2236_v25, %v2142_v7 }
 0x1e3   : > { %v2370_v53 = vadd.f32 %v2350_v26, %v2256_v41 }
 0x1e5   : > { %v2484_v45 = vadd.f32 %v2464_v31, %v2370_v53 }
 0x1e6   : > { %v2466_v33 = vpop.f32.mrf.mxu3  ;;  %v2807_v7 = vpop.f32.mrf.mxu2 }
 0x1e7   : > { %v2599_v32 = vadd.f32 %v2579_v0, %v2484_v45 }
 0x1e8   : > { %v2238_v48 = vpop.f32.mrf.mxu1 }
 0x1e9   : > { %v2581_v55 = vpop.f32.mrf.mxu0  ;;  %v2257_v30 = vadd.f32 %v2238_v48, %v2143_v17 }
 0x1eb   : > { %v2371_v24 = vadd.f32 %v2352_v19, %v2257_v30 }
 0x1ed   : > { %v2485_v27 = vadd.f32 %v2466_v33, %v2371_v24 }
 0x1ee   : > { %v2469_v21 = vpop.f32.mrf.mxu3  ;;  %v2809_v35 = vpop.f32.mrf.mxu2 }
 0x1ef   : > { %v2600_v39 = vadd.f32 %v2581_v55, %v2485_v27 }
 0x1f0   : > { %v2241_v10 = vpop.f32.mrf.mxu1 }
 0x1f1   : > { %v2584_v37 = vpop.f32.mrf.mxu0  ;;  %v2258_v22 = vadd.f32 %v2241_v10, %v5122_v54 }
 0x1f3   : > { %v2372_v26 = vadd.f32 %v2355_v63, %v2258_v22 }
 0x1f5   : > { %v2486_v14 = vadd.f32 %v2469_v21, %v2372_v26 }
 0x1f6   : > { %v2471_v58 = vpop.f32.mrf.mxu3  ;;  %v2812_v44 = vpop.f32.mrf.mxu2 }
 0x1f7   : > { %v2601_v13 = vadd.f32 %v2584_v37, %v2486_v14 }
 0x1f8   : > { %v2243_v3 = vpop.f32.mrf.mxu1 }
 0x1f9   : > { %v2586_v29 = vpop.f32.mrf.mxu0  ;;  %v2259_v1 = vadd.f32 %v2243_v3, %v5124_v56 }
 0x1fb   : > { %v2373_v19 = vadd.f32 %v2357_v16, %v2259_v1 }
 0x1fd   : > { %v2487_v63 = vadd.f32 %v2471_v58, %v2373_v19 }
 0x1fe   : > { %v2474_v52 = vpop.f32.mrf.mxu3  ;;  %v2814_v42 = vpop.f32.mrf.mxu2 }
 0x1ff   : > { %v2602_v18 = vadd.f32 %v2586_v29, %v2487_v63 }
 0x200   : > { %v2246_v5 = vpop.f32.mrf.mxu1 }
 0x201   : > { %v2589_v6 = vpop.f32.mrf.mxu0  ;;  %v2260_v56 = vadd.f32 %v2246_v5, %v5128_v50 }
 0x203   : > { %v2374_v60 = vadd.f32 %v2360_v61, %v2260_v56 }
 0x205   : > { %v2488_v43 = vadd.f32 %v2474_v52, %v2374_v60 }
 0x206   : > { %v2476_v54 = vpop.f32.mrf.mxu3  ;;  %v2817_v48 = vpop.f32.mrf.mxu2 }
 0x207   : > { %v2603_v53 = vadd.f32 %v2589_v6, %v2488_v43 }
 0x208   : > { %v2248_v11 = vpop.f32.mrf.mxu1 }
 0x209   : > { %v2591_v15 = vpop.f32.mrf.mxu0  ;;  %v2261_v9 = vadd.f32 %v2248_v11, %v5130_v20 }
 0x20b   : > { %v2375_v41 = vadd.f32 %v2362_v57, %v2261_v9 }
 0x20d   : > { %v2489_v30 = vadd.f32 %v2476_v54, %v2375_v41 }
 0x20e   : > { %v2479_v0 = vpop.f32.mrf.mxu3  ;;  %v2819_v33 = vpop.f32.mrf.mxu2 }
 0x20f   : > { %v2604_v20 = vadd.f32 %v2591_v15, %v2489_v30 }
 0x210   : > { %v2251_v62 = vpop.f32.mrf.mxu1 }
 0x211   : > { %v2594_v17 = vpop.f32.mrf.mxu0  ;;  %v2262_v24 = vadd.f32 %v2251_v62, %v5132_v49 }
 0x213   : > { %v2376_v37 = vadd.f32 %v5136_v4, %v2262_v24 }
 0x215   : > { %v2490_v5 = vadd.f32 %v2479_v0, %v2376_v37 }
 0x216   : > { %v2481_v10 = vpop.f32.mrf.mxu3 }
 0x218   : > { %v2253_v46 = vpop.f32.mrf.mxu1 }
 0x219   : > { %v5141_v59 = vpop.f32.mrf.mxu0  ;;  %v2263_v57 = vadd.f32 %v2253_v46, %v5134_v2 }
 0x21b   : > { %v2377_v21 = vadd.f32 %v5138_v34, %v2263_v57 }
 0x21d   : > { %v2491_v62 = vadd.f32 %v2481_v10, %v2377_v21 }
 0x21e   : > { %v2822_v49 = vpop.f32.mrf.mxu3 }
 0x21f   : > { %v2606_v4 = vadd.f32 %v5141_v59, %v2491_v62 }
 0x220   : > { %v2698_v40 = vpop.f32.mrf.mxu1 }
 0x221   : > { %v2693_v28 = vpop.f32.mrf.mxu0  ;;  %v2715_v23 = vadd.f32 %v2698_v40, %v2601_v13 }
 0x222   : > { %v2713_v36 = vadd.f32 %v2693_v28, %v2599_v32 }
 0x223   : > { %v2829_v51 = vadd.f32 %v2812_v44, %v2715_v23 }
 0x224   : > { %v2827_v47 = vadd.f32 %v2807_v7, %v2713_v36  ;;  %v2605_v7 = vadd.f32 %v2594_v17, %v2490_v5 }
 0x225   : > { %2837 = vst [vmem:[%s5148_s12 + $0x10] sm:$0xff] %v2829_v51 }
 0x226   : > { %2835 = vst [vmem:[%s5148_s12] sm:$0xff] %v2827_v47  ;;  %v2824_v26 = vpop.f32.mrf.mxu3 }
 0x228   : > { %v2700_v8 = vpop.f32.mrf.mxu1 }
 0x229   : > { %v2695_v16 = vpop.f32.mrf.mxu0  ;;  %v2716_v12 = vadd.f32 %v2700_v8, %v2602_v18 }
 0x22a   : > { %v2714_v38 = vadd.f32 %v2695_v16, %v2600_v39 }
 0x22b   : > { %v2830_v50 = vadd.f32 %v2814_v42, %v2716_v12 }
 0x22c   : > { %v2828_v25 = vadd.f32 %v2809_v35, %v2714_v38 }
 0x22d   : > { %2838 = vst [vmem:[%s5148_s12 + $0x18] sm:$0xff] %v2830_v50 }
 0x22e   : > { %2836 = vst [vmem:[%s5148_s12 + $0x8] sm:$0xff] %v2828_v25 }
 0x230   : > { %v2703_v61 = vpop.f32.mrf.mxu1 }
 0x231   : > { %v2717_v55 = vadd.f32 %v2703_v61, %v2603_v53 }
 0x233   : > { %v2831_v31 = vadd.f32 %v2817_v48, %v2717_v55 }
 0x235   : > { %2839 = vst [vmem:[%s5148_s12 + $0x20] sm:$0xff] %v2831_v31 }
 0x238   : > { %v2705_v3 = vpop.f32.mrf.mxu1 }
 0x239   : > { %v2718_v29 = vadd.f32 %v2705_v3, %v2604_v20 }
 0x23b   : > { %v2832_v6 = vadd.f32 %v2819_v33, %v2718_v29 }
 0x23d   : > { %2840 = vst [vmem:[%s5148_s12 + $0x28] sm:$0xff] %v2832_v6 }
 0x240   : > { %v2708_v11 = vpop.f32.mrf.mxu1 }
 0x241   : > { %v2719_v58 = vadd.f32 %v2708_v11, %v2605_v7 }
 0x243   : > { %v2833_v35 = vadd.f32 %v2822_v49, %v2719_v58 }
 0x245   : > { %2841 = vst [vmem:[%s5148_s12 + $0x30] sm:$0xff] %v2833_v35 }
 0x248   : > { %v2710_v15 = vpop.f32.mrf.mxu1 }
 0x249   : > { %v2720_v22 = vadd.f32 %v2710_v15, %v2606_v4 }
 0x24b   : > { %v2834_v52 = vadd.f32 %v2824_v26, %v2720_v22 }
 0x24d   : > { %2842 = vst [vmem:[%s5148_s12 + $0x38] sm:$0xff] %v2834_v52 }
 0x24e PF: > { %s21_s17 = sadd.s32 1, %s4016_s17  }
 0x24f   : > { %p18_p4 = scmp.ge.s32.totalorder %s21_s17, 4  }
 0x251   :  { %20 = sbr.rel (!%p18_p4) target bundleno = 1 (0x1), region = 123 }

</bundles_post_ra>
